<compile_context>
chip_gen: v5e
topology: v5e:2x2
jax: 0.10.0
libtpu: 0.0.40
codegen_flags: <defaults>
</compile_context>

<pallas_src>
import functools

import jax
import jax.numpy as jnp
from jax.experimental import pallas as pl
from jax.experimental.pallas import tpu as pltpu

HIDDEN = 1000
BN_EPS = 1e-5


def _round_up(n, m):
    return (n + m - 1) // m * m


def _mlp_kernel(x_ref, w1_ref, gamma_ref, beta_ref, b3_ref,
                w2_hbm, w3_hbm, out_ref, w2_vmem, w3_vmem, dma_sem):
    """Fused 3-layer MLP with shared training-mode BatchNorm1d."""
    n_chunks, ck, hid_p = w2_vmem.shape

    # Issue all w2 chunk DMAs first (w2 is on the critical path), then w3.
    # In-order DMA servicing keeps w3 from stealing bandwidth from w2, while
    # w3 still overlaps the tail of layer-2 compute.
    w2_copies = []
    for c in range(n_chunks):
        cp = pltpu.make_async_copy(w2_hbm.at[pl.ds(c * ck, ck), :],
                                   w2_vmem.at[c], dma_sem.at[c])
        cp.start()
        w2_copies.append(cp)
    cp_w3 = pltpu.make_async_copy(w3_hbm, w3_vmem, dma_sem.at[n_chunks])
    cp_w3.start()

    inv_b = jnp.float32(1.0 / x_ref.shape[0])
    gamma = gamma_ref[...]
    beta = beta_ref[...]

    def batchnorm(h):
        # Single pass: E[h], E[h^2]; biased variance (training mode), all f32.
        s1 = jnp.sum(h, axis=0, keepdims=True)
        s2 = jnp.sum(h * h, axis=0, keepdims=True)
        mean = s1 * inv_b
        var = s2 * inv_b - mean * mean
        scale = gamma * jax.lax.rsqrt(var + BN_EPS)
        shift = beta - mean * scale
        return h * scale + shift            # one FMA over the [B, H] tile
        # Padded columns: h==0 -> mean=var=0, gamma_pad=0 -> scale=shift=0 -> 0.

    # Layer 1 (+ BN, ReLU) -- f32 weights; l1 bias folded away by training BN.
    h = jnp.dot(x_ref[...], w1_ref[...], preferred_element_type=jnp.float32)
    h = jnp.maximum(batchnorm(h), 0.0)

    # Layer 2: accumulate a partial dot as each w2 K-chunk lands, so compute
    # overlaps the remaining w2 DMA.  bf16 chunk up-cast to f32 in VMEM keeps
    # the accumulation / BN-statistics path in f32.  l2 bias folded away.
    acc = None
    for c in range(n_chunks):
        w2_copies[c].wait()
        part = jnp.dot(h[:, c * ck:(c + 1) * ck],
                       w2_vmem[c].astype(jnp.float32),
                       preferred_element_type=jnp.float32)
        acc = part if acc is None else acc + part
    h = jnp.maximum(batchnorm(acc), 0.0)

    # Layer 3 (bias kept).
    cp_w3.wait()
    out_ref[...] = (jnp.dot(h, w3_vmem[...].astype(jnp.float32),
                            preferred_element_type=jnp.float32)
                    + b3_ref[...])


def prepare_params(params, weight_dtype=jnp.bfloat16):
    """Pad/cast parameters ONCE (cache & reuse across forward calls).

    * w2/w3 stored in `weight_dtype` (bf16 by default) -> halves HBM traffic.
    * w1 kept f32 and UN-padded along the input dim (full-array block).
    * Padding is mathematically inert: padded rows/cols are zero and padded
      BN columns map to exactly zero inside the kernel.
    * b1/b2 intentionally dropped (pre-BN bias cancels in training mode).
    Returns (padded_param_dict, out_features).
    """
    w1, w2, w3 = params["w1"], params["w2"], params["w3"]
    b3, gamma, beta = params["b3"], params["gamma"], params["beta"]
    in_f, hid = w1.shape
    out_f = w3.shape[1]
    hid_p = _round_up(hid, 128)
    out_p = _round_up(out_f, 128)

    w1p = jnp.zeros((in_f, hid_p), jnp.float32).at[:, :hid].set(
        w1.astype(jnp.float32))
    w2p = jnp.zeros((hid_p, hid_p), weight_dtype).at[:hid, :hid].set(
        w2.astype(weight_dtype))
    w3p = jnp.zeros((hid_p, out_p), weight_dtype).at[:hid, :out_f].set(
        w3.astype(weight_dtype))
    b3p = jnp.zeros((1, out_p), jnp.float32).at[:, :out_f].set(b3[None, :])
    gp = jnp.zeros((1, hid_p), jnp.float32).at[:, :hid].set(gamma[None, :])
    bp = jnp.zeros((1, hid_p), jnp.float32).at[:, :hid].set(beta[None, :])
    padded = dict(w1=w1p, w2=w2p, w3=w3p, b3=b3p, gamma=gp, beta=bp)
    return padded, out_f


@functools.partial(jax.jit, static_argnames="out_features")
def net_forward(x, padded, out_features):
    """x: [B, input_size] float32. padded: output of prepare_params()."""
    B, in_f = x.shape
    hid_p = padded["w2"].shape[0]
    out_p = padded["w3"].shape[1]
    w2_dt = padded["w2"].dtype
    w3_dt = padded["w3"].dtype

    n_chunks = 4 if hid_p % 4 == 0 else 1        # hid_p is a multiple of 128
    ck = hid_p // n_chunks

    x = x.astype(jnp.float32)                    # no input-dim padding needed

    vmem = pl.BlockSpec(memory_space=pltpu.MemorySpace.VMEM)
    hbm = pl.BlockSpec(memory_space=pl.ANY)

    # Advisory cost estimate so XLA overlaps surrounding ops with the kernel.
    flops = 2 * B * (in_f * hid_p + hid_p * hid_p + hid_p * out_p)
    bytes_accessed = (
        padded["w1"].size * 4
        + padded["w2"].size * w2_dt.itemsize
        + padded["w3"].size * w3_dt.itemsize
        + (padded["b3"].size + padded["gamma"].size + padded["beta"].size) * 4
        + B * in_f * 4 + B * out_p * 4)
    cost = pl.CostEstimate(flops=flops, transcendentals=2 * hid_p,
                           bytes_accessed=bytes_accessed)

    out = pl.pallas_call(
        _mlp_kernel,
        out_shape=jax.ShapeDtypeStruct((B, out_p), jnp.float32),
        in_specs=[vmem, vmem, vmem, vmem, vmem, hbm, hbm],
        out_specs=vmem,
        scratch_shapes=[
            pltpu.VMEM((n_chunks, ck, hid_p), w2_dt),   # w2 chunk staging
            pltpu.VMEM((hid_p, out_p), w3_dt),          # w3 staging
            pltpu.SemaphoreType.DMA((n_chunks + 1,)),
        ],
        compiler_params=pltpu.CompilerParams(vmem_limit_bytes=16 << 20),
        cost_estimate=cost,
    )(x, padded["w1"], padded["gamma"], padded["beta"], padded["b3"],
      padded["w2"], padded["w3"])

    return out[:, :out_features]


def init_params(key, input_size, output_size):
    """Deterministic init mimicking torch Linear/BatchNorm defaults."""
    ks = jax.random.split(key, 6)

    def linear(kw, kb, fan_in, fan_out):
        bound = 1.0 / jnp.sqrt(fan_in)
        w = jax.random.uniform(kw, (fan_in, fan_out), jnp.float32, -bound, bound)
        b = jax.random.uniform(kb, (fan_out,), jnp.float32, -bound, bound)
        return w, b

    w1, b1 = linear(ks[0], ks[1], input_size, HIDDEN)
    w2, b2 = linear(ks[2], ks[3], HIDDEN, HIDDEN)
    w3, b3 = linear(ks[4], ks[5], HIDDEN, output_size)
    gamma = jnp.ones((HIDDEN,), jnp.float32)
    beta = jnp.zeros((HIDDEN,), jnp.float32)
    return dict(w1=w1, b1=b1, w2=w2, b2=b2, w3=w3, b3=b3,
                gamma=gamma, beta=beta)


def _reference(x, p):
    """Pure-JAX f32 reference of the original module (biases included)."""
    def bn(h):
        m = jnp.mean(h, axis=0, keepdims=True)
        v = jnp.mean((h - m) ** 2, axis=0, keepdims=True)
        return (h - m) / jnp.sqrt(v + BN_EPS) * p["gamma"] + p["beta"]

    h = jnp.maximum(bn(x @ p["w1"] + p["b1"]), 0.0)
    h = jnp.maximum(bn(h @ p["w2"] + p["b2"]), 0.0)
    return h @ p["w3"] + p["b3"]


if __name__ == "__main__":
    key = jax.random.PRNGKey(0)
    k_x, k_p = jax.random.split(key)

    batch, input_size, output_size = 8, 32, 16
    x = jax.random.normal(k_x, (batch, input_size), jnp.float32)
    params = init_params(k_p, input_size, output_size)
    ref = _reference(x, params)

    # 1) Structural check with f32 weights: must match the reference tightly.
    padded_f32, out_f = prepare_params(params, weight_dtype=jnp.float32)
    out_f32 = jax.block_until_ready(net_forward(x, padded_f32, out_features=out_f))
    assert out_f32.shape == (batch, output_size)
    assert jnp.allclose(out_f32, ref, atol=1e-3, rtol=1e-3), "f32 path mismatch"

    # 2) Production (bf16-weight) path: tolerance loosened to cover bf16
    #    weight quantization of w2/w3 (~2-3e-3 worst-case output error);
    #    structural bugs would be orders of magnitude larger.
    padded_bf16, out_f = prepare_params(params, weight_dtype=jnp.bfloat16)
    padded_bf16 = jax.block_until_ready(padded_bf16)
    out_bf16 = jax.block_until_ready(net_forward(x, padded_bf16, out_features=out_f))
    assert out_bf16.shape == (batch, output_size)
    assert jnp.allclose(out_bf16, ref, atol=1e-2, rtol=1e-2), "bf16 path mismatch"

    print("KERNEL_OK")
</pallas_src>

<mosaic_0001>
module attributes {stable_mosaic.version = 11 : i64} {
  func.func @_mlp_kernel(%arg0: memref<8x32xf32, #tpu.memory_space<vmem>>, %arg1: memref<32x1024xf32, #tpu.memory_space<vmem>>, %arg2: memref<1x1024xf32, #tpu.memory_space<vmem>>, %arg3: memref<1x1024xf32, #tpu.memory_space<vmem>>, %arg4: memref<1x128xf32, #tpu.memory_space<vmem>>, %arg5: memref<1024x1024xf32, #tpu.memory_space<any>>, %arg6: memref<1024x128xf32, #tpu.memory_space<any>>, %arg7: memref<8x128xf32, #tpu.memory_space<vmem>>, %arg8: memref<4x256x1024xf32, #tpu.memory_space<vmem>>, %arg9: memref<1024x128xf32, #tpu.memory_space<vmem>>, %arg10: memref<5x!tpu.dma_semaphore, #tpu.memory_space<semaphore_mem>>) attributes {dimension_semantics = [], scalar_prefetch = 0 : i64, scratch_operands = 3 : i64, tpu.core_type = #tpu.core_type<tc>} {
    %c0_i32 = arith.constant 0 : i32
    %c0_i32_0 = arith.constant 0 : i32
    %c0_i32_1 = arith.constant 0 : i32
    %c0_i32_2 = arith.constant 0 : i32
    %0 = tpu.memref_slice %arg5[%c0_i32_1, %c0_i32_2] : memref<1024x1024xf32, #tpu.memory_space<any>> -> memref<256x1024xf32, #tpu.memory_space<any>>
    %c0_i32_3 = arith.constant 0 : i32
    %c0_i32_4 = arith.constant 0 : i32
    %1 = tpu.memref_slice %arg8[%c0_i32, %c0_i32_3, %c0_i32_4] : memref<4x256x1024xf32, #tpu.memory_space<vmem>> -> memref<1x256x1024xf32, #tpu.memory_space<vmem>>
    %2 = tpu.memref_squeeze %1 : memref<1x256x1024xf32, #tpu.memory_space<vmem>> -> memref<256x1024xf32, #tpu.memory_space<vmem>>
    %3 = tpu.memref_slice %arg10[%c0_i32_0] : memref<5x!tpu.dma_semaphore, #tpu.memory_space<semaphore_mem>> -> memref<1x!tpu.dma_semaphore, #tpu.memory_space<semaphore_mem>>
    %4 = tpu.memref_squeeze %3 : memref<1x!tpu.dma_semaphore, #tpu.memory_space<semaphore_mem>> -> memref<!tpu.dma_semaphore, #tpu.memory_space<semaphore_mem>>
    tpu.enqueue_dma source(%0 : memref<256x1024xf32, #tpu.memory_space<any>>) target(%2 : memref<256x1024xf32, #tpu.memory_space<vmem>>) target_semaphore(%4 : memref<!tpu.dma_semaphore, #tpu.memory_space<semaphore_mem>>)
    %c1_i32 = arith.constant 1 : i32
    %c1_i32_5 = arith.constant 1 : i32
    %c256_i32 = arith.constant 256 : i32
    %c0_i32_6 = arith.constant 0 : i32
    %5 = tpu.memref_slice %arg5[%c256_i32, %c0_i32_6] : memref<1024x1024xf32, #tpu.memory_space<any>> -> memref<256x1024xf32, #tpu.memory_space<any>>
    %c0_i32_7 = arith.constant 0 : i32
    %c0_i32_8 = arith.constant 0 : i32
    %6 = tpu.memref_slice %arg8[%c1_i32, %c0_i32_7, %c0_i32_8] : memref<4x256x1024xf32, #tpu.memory_space<vmem>> -> memref<1x256x1024xf32, #tpu.memory_space<vmem>>
    %7 = tpu.memref_squeeze %6 : memref<1x256x1024xf32, #tpu.memory_space<vmem>> -> memref<256x1024xf32, #tpu.memory_space<vmem>>
    %8 = tpu.memref_slice %arg10[%c1_i32_5] : memref<5x!tpu.dma_semaphore, #tpu.memory_space<semaphore_mem>> -> memref<1x!tpu.dma_semaphore, #tpu.memory_space<semaphore_mem>>
    %9 = tpu.memref_squeeze %8 : memref<1x!tpu.dma_semaphore, #tpu.memory_space<semaphore_mem>> -> memref<!tpu.dma_semaphore, #tpu.memory_space<semaphore_mem>>
    tpu.enqueue_dma source(%5 : memref<256x1024xf32, #tpu.memory_space<any>>) target(%7 : memref<256x1024xf32, #tpu.memory_space<vmem>>) target_semaphore(%9 : memref<!tpu.dma_semaphore, #tpu.memory_space<semaphore_mem>>)
    %c2_i32 = arith.constant 2 : i32
    %c2_i32_9 = arith.constant 2 : i32
    %c512_i32 = arith.constant 512 : i32
    %c0_i32_10 = arith.constant 0 : i32
    %10 = tpu.memref_slice %arg5[%c512_i32, %c0_i32_10] : memref<1024x1024xf32, #tpu.memory_space<any>> -> memref<256x1024xf32, #tpu.memory_space<any>>
    %c0_i32_11 = arith.constant 0 : i32
    %c0_i32_12 = arith.constant 0 : i32
    %11 = tpu.memref_slice %arg8[%c2_i32, %c0_i32_11, %c0_i32_12] : memref<4x256x1024xf32, #tpu.memory_space<vmem>> -> memref<1x256x1024xf32, #tpu.memory_space<vmem>>
    %12 = tpu.memref_squeeze %11 : memref<1x256x1024xf32, #tpu.memory_space<vmem>> -> memref<256x1024xf32, #tpu.memory_space<vmem>>
    %13 = tpu.memref_slice %arg10[%c2_i32_9] : memref<5x!tpu.dma_semaphore, #tpu.memory_space<semaphore_mem>> -> memref<1x!tpu.dma_semaphore, #tpu.memory_space<semaphore_mem>>
    %14 = tpu.memref_squeeze %13 : memref<1x!tpu.dma_semaphore, #tpu.memory_space<semaphore_mem>> -> memref<!tpu.dma_semaphore, #tpu.memory_space<semaphore_mem>>
    tpu.enqueue_dma source(%10 : memref<256x1024xf32, #tpu.memory_space<any>>) target(%12 : memref<256x1024xf32, #tpu.memory_space<vmem>>) target_semaphore(%14 : memref<!tpu.dma_semaphore, #tpu.memory_space<semaphore_mem>>)
    %c3_i32 = arith.constant 3 : i32
    %c3_i32_13 = arith.constant 3 : i32
    %c768_i32 = arith.constant 768 : i32
    %c0_i32_14 = arith.constant 0 : i32
    %15 = tpu.memref_slice %arg5[%c768_i32, %c0_i32_14] : memref<1024x1024xf32, #tpu.memory_space<any>> -> memref<256x1024xf32, #tpu.memory_space<any>>
    %c0_i32_15 = arith.constant 0 : i32
    %c0_i32_16 = arith.constant 0 : i32
    %16 = tpu.memref_slice %arg8[%c3_i32, %c0_i32_15, %c0_i32_16] : memref<4x256x1024xf32, #tpu.memory_space<vmem>> -> memref<1x256x1024xf32, #tpu.memory_space<vmem>>
    %17 = tpu.memref_squeeze %16 : memref<1x256x1024xf32, #tpu.memory_space<vmem>> -> memref<256x1024xf32, #tpu.memory_space<vmem>>
    %18 = tpu.memref_slice %arg10[%c3_i32_13] : memref<5x!tpu.dma_semaphore, #tpu.memory_space<semaphore_mem>> -> memref<1x!tpu.dma_semaphore, #tpu.memory_space<semaphore_mem>>
    %19 = tpu.memref_squeeze %18 : memref<1x!tpu.dma_semaphore, #tpu.memory_space<semaphore_mem>> -> memref<!tpu.dma_semaphore, #tpu.memory_space<semaphore_mem>>
    tpu.enqueue_dma source(%15 : memref<256x1024xf32, #tpu.memory_space<any>>) target(%17 : memref<256x1024xf32, #tpu.memory_space<vmem>>) target_semaphore(%19 : memref<!tpu.dma_semaphore, #tpu.memory_space<semaphore_mem>>)
    %c4_i32 = arith.constant 4 : i32
    %20 = tpu.memref_slice %arg10[%c4_i32] : memref<5x!tpu.dma_semaphore, #tpu.memory_space<semaphore_mem>> -> memref<1x!tpu.dma_semaphore, #tpu.memory_space<semaphore_mem>>
    %21 = tpu.memref_squeeze %20 : memref<1x!tpu.dma_semaphore, #tpu.memory_space<semaphore_mem>> -> memref<!tpu.dma_semaphore, #tpu.memory_space<semaphore_mem>>
    tpu.enqueue_dma source(%arg6 : memref<1024x128xf32, #tpu.memory_space<any>>) target(%arg9 : memref<1024x128xf32, #tpu.memory_space<vmem>>) target_semaphore(%21 : memref<!tpu.dma_semaphore, #tpu.memory_space<semaphore_mem>>)
    %c0 = arith.constant 0 : index
    %c0_17 = arith.constant 0 : index
    %22 = vector.load %arg2[%c0, %c0_17] : memref<1x1024xf32, #tpu.memory_space<vmem>>, vector<1x1024xf32>
    %c0_18 = arith.constant 0 : index
    %c0_19 = arith.constant 0 : index
    %23 = vector.load %arg3[%c0_18, %c0_19] : memref<1x1024xf32, #tpu.memory_space<vmem>>, vector<1x1024xf32>
    %c0_20 = arith.constant 0 : index
    %c0_21 = arith.constant 0 : index
    %24 = vector.load %arg0[%c0_20, %c0_21] : memref<8x32xf32, #tpu.memory_space<vmem>>, vector<8x32xf32>
    %c0_22 = arith.constant 0 : index
    %c0_23 = arith.constant 0 : index
    %25 = vector.load %arg1[%c0_22, %c0_23] : memref<32x1024xf32, #tpu.memory_space<vmem>>, vector<32x1024xf32>
    %cst = arith.constant dense<0.000000e+00> : vector<8x1024xf32>
    %26 = tpu.matmul %24, %25, %cst {dimension_numbers = #tpu.dot_dimension_numbers<[1], [0], [0], [1], [0, 0, 1, 1], [], []>} : vector<8x32xf32>, vector<32x1024xf32>, vector<8x1024xf32> -> vector<8x1024xf32>
    %cst_24 = arith.constant dense<0.000000e+00> : vector<1024xf32>
    %27 = vector.multi_reduction <add>, %26, %cst_24 [0] : vector<8x1024xf32> to vector<1024xf32>
    %28 = vector.shape_cast %27 : vector<1024xf32> to vector<1x1024xf32>
    %29 = arith.mulf %26, %26 : vector<8x1024xf32>
    %cst_25 = arith.constant dense<0.000000e+00> : vector<1024xf32>
    %30 = vector.multi_reduction <add>, %29, %cst_25 [0] : vector<8x1024xf32> to vector<1024xf32>
    %31 = vector.shape_cast %30 : vector<1024xf32> to vector<1x1024xf32>
    %cst_26 = arith.constant 1.250000e-01 : f32
    %32 = vector.broadcast %cst_26 : f32 to vector<1x1024xf32>
    %33 = arith.mulf %28, %32 : vector<1x1024xf32>
    %cst_27 = arith.constant 1.250000e-01 : f32
    %34 = vector.broadcast %cst_27 : f32 to vector<1x1024xf32>
    %35 = arith.mulf %31, %34 : vector<1x1024xf32>
    %36 = arith.mulf %33, %33 : vector<1x1024xf32>
    %37 = arith.subf %35, %36 : vector<1x1024xf32>
    %cst_28 = arith.constant 9.99999974E-6 : f32
    %38 = vector.broadcast %cst_28 : f32 to vector<1x1024xf32>
    %39 = arith.addf %37, %38 : vector<1x1024xf32>
    %40 = math.rsqrt %39 : vector<1x1024xf32>
    %41 = arith.mulf %22, %40 : vector<1x1024xf32>
    %42 = arith.mulf %33, %41 : vector<1x1024xf32>
    %43 = arith.subf %23, %42 : vector<1x1024xf32>
    %44 = vector.broadcast %41 : vector<1x1024xf32> to vector<8x1024xf32>
    %45 = arith.mulf %26, %44 : vector<8x1024xf32>
    %46 = vector.broadcast %43 : vector<1x1024xf32> to vector<8x1024xf32>
    %47 = arith.addf %45, %46 : vector<8x1024xf32>
    %cst_29 = arith.constant 0.000000e+00 : f32
    %48 = vector.broadcast %cst_29 : f32 to vector<8x1024xf32>
    %49 = arith.maximumf %47, %48 : vector<8x1024xf32>
    %c0_i32_30 = arith.constant 0 : i32
    %c0_i32_31 = arith.constant 0 : i32
    %c0_i32_32 = arith.constant 0 : i32
    %c0_i32_33 = arith.constant 0 : i32
    %50 = tpu.memref_slice %arg5[%c0_i32_32, %c0_i32_33] : memref<1024x1024xf32, #tpu.memory_space<any>> -> memref<256x1024xf32, #tpu.memory_space<any>>
    %c0_i32_34 = arith.constant 0 : i32
    %c0_i32_35 = arith.constant 0 : i32
    %51 = tpu.memref_slice %arg8[%c0_i32_30, %c0_i32_34, %c0_i32_35] : memref<4x256x1024xf32, #tpu.memory_space<vmem>> -> memref<1x256x1024xf32, #tpu.memory_space<vmem>>
    %52 = tpu.memref_squeeze %51 : memref<1x256x1024xf32, #tpu.memory_space<vmem>> -> memref<256x1024xf32, #tpu.memory_space<vmem>>
    %53 = tpu.memref_slice %arg10[%c0_i32_31] : memref<5x!tpu.dma_semaphore, #tpu.memory_space<semaphore_mem>> -> memref<1x!tpu.dma_semaphore, #tpu.memory_space<semaphore_mem>>
    %54 = tpu.memref_squeeze %53 : memref<1x!tpu.dma_semaphore, #tpu.memory_space<semaphore_mem>> -> memref<!tpu.dma_semaphore, #tpu.memory_space<semaphore_mem>>
    tpu.wait_dma2 semaphore(%54 : memref<!tpu.dma_semaphore, #tpu.memory_space<semaphore_mem>>) src(%50 : memref<256x1024xf32, #tpu.memory_space<any>>) dst(%52 : memref<256x1024xf32, #tpu.memory_space<vmem>>)
    %55 = vector.extract_strided_slice %49 {offsets = [0, 0], sizes = [8, 256], strides = [1, 1]} : vector<8x1024xf32> to vector<8x256xf32>
    %c0_36 = arith.constant 0 : index
    %c0_37 = arith.constant 0 : index
    %c0_38 = arith.constant 0 : index
    %56 = vector.load %arg8[%c0_36, %c0_37, %c0_38] : memref<4x256x1024xf32, #tpu.memory_space<vmem>>, vector<1x256x1024xf32>
    %57 = vector.shape_cast %56 : vector<1x256x1024xf32> to vector<256x1024xf32>
    %cst_39 = arith.constant dense<0.000000e+00> : vector<8x1024xf32>
    %58 = tpu.matmul %55, %57, %cst_39 {dimension_numbers = #tpu.dot_dimension_numbers<[1], [0], [0], [1], [0, 0, 1, 1], [], []>} : vector<8x256xf32>, vector<256x1024xf32>, vector<8x1024xf32> -> vector<8x1024xf32>
    %c1_i32_40 = arith.constant 1 : i32
    %c1_i32_41 = arith.constant 1 : i32
    %c256_i32_42 = arith.constant 256 : i32
    %c0_i32_43 = arith.constant 0 : i32
    %59 = tpu.memref_slice %arg5[%c256_i32_42, %c0_i32_43] : memref<1024x1024xf32, #tpu.memory_space<any>> -> memref<256x1024xf32, #tpu.memory_space<any>>
    %c0_i32_44 = arith.constant 0 : i32
    %c0_i32_45 = arith.constant 0 : i32
    %60 = tpu.memref_slice %arg8[%c1_i32_40, %c0_i32_44, %c0_i32_45] : memref<4x256x1024xf32, #tpu.memory_space<vmem>> -> memref<1x256x1024xf32, #tpu.memory_space<vmem>>
    %61 = tpu.memref_squeeze %60 : memref<1x256x1024xf32, #tpu.memory_space<vmem>> -> memref<256x1024xf32, #tpu.memory_space<vmem>>
    %62 = tpu.memref_slice %arg10[%c1_i32_41] : memref<5x!tpu.dma_semaphore, #tpu.memory_space<semaphore_mem>> -> memref<1x!tpu.dma_semaphore, #tpu.memory_space<semaphore_mem>>
    %63 = tpu.memref_squeeze %62 : memref<1x!tpu.dma_semaphore, #tpu.memory_space<semaphore_mem>> -> memref<!tpu.dma_semaphore, #tpu.memory_space<semaphore_mem>>
    tpu.wait_dma2 semaphore(%63 : memref<!tpu.dma_semaphore, #tpu.memory_space<semaphore_mem>>) src(%59 : memref<256x1024xf32, #tpu.memory_space<any>>) dst(%61 : memref<256x1024xf32, #tpu.memory_space<vmem>>)
    %64 = vector.extract_strided_slice %49 {offsets = [0, 256], sizes = [8, 256], strides = [1, 1]} : vector<8x1024xf32> to vector<8x256xf32>
    %c1 = arith.constant 1 : index
    %c0_46 = arith.constant 0 : index
    %c0_47 = arith.constant 0 : index
    %65 = vector.load %arg8[%c1, %c0_46, %c0_47] : memref<4x256x1024xf32, #tpu.memory_space<vmem>>, vector<1x256x1024xf32>
    %66 = vector.shape_cast %65 : vector<1x256x1024xf32> to vector<256x1024xf32>
    %cst_48 = arith.constant dense<0.000000e+00> : vector<8x1024xf32>
    %67 = tpu.matmul %64, %66, %cst_48 {dimension_numbers = #tpu.dot_dimension_numbers<[1], [0], [0], [1], [0, 0, 1, 1], [], []>} : vector<8x256xf32>, vector<256x1024xf32>, vector<8x1024xf32> -> vector<8x1024xf32>
    %68 = arith.addf %58, %67 : vector<8x1024xf32>
    %c2_i32_49 = arith.constant 2 : i32
    %c2_i32_50 = arith.constant 2 : i32
    %c512_i32_51 = arith.constant 512 : i32
    %c0_i32_52 = arith.constant 0 : i32
    %69 = tpu.memref_slice %arg5[%c512_i32_51, %c0_i32_52] : memref<1024x1024xf32, #tpu.memory_space<any>> -> memref<256x1024xf32, #tpu.memory_space<any>>
    %c0_i32_53 = arith.constant 0 : i32
    %c0_i32_54 = arith.constant 0 : i32
    %70 = tpu.memref_slice %arg8[%c2_i32_49, %c0_i32_53, %c0_i32_54] : memref<4x256x1024xf32, #tpu.memory_space<vmem>> -> memref<1x256x1024xf32, #tpu.memory_space<vmem>>
    %71 = tpu.memref_squeeze %70 : memref<1x256x1024xf32, #tpu.memory_space<vmem>> -> memref<256x1024xf32, #tpu.memory_space<vmem>>
    %72 = tpu.memref_slice %arg10[%c2_i32_50] : memref<5x!tpu.dma_semaphore, #tpu.memory_space<semaphore_mem>> -> memref<1x!tpu.dma_semaphore, #tpu.memory_space<semaphore_mem>>
    %73 = tpu.memref_squeeze %72 : memref<1x!tpu.dma_semaphore, #tpu.memory_space<semaphore_mem>> -> memref<!tpu.dma_semaphore, #tpu.memory_space<semaphore_mem>>
    tpu.wait_dma2 semaphore(%73 : memref<!tpu.dma_semaphore, #tpu.memory_space<semaphore_mem>>) src(%69 : memref<256x1024xf32, #tpu.memory_space<any>>) dst(%71 : memref<256x1024xf32, #tpu.memory_space<vmem>>)
    %74 = vector.extract_strided_slice %49 {offsets = [0, 512], sizes = [8, 256], strides = [1, 1]} : vector<8x1024xf32> to vector<8x256xf32>
    %c2 = arith.constant 2 : index
    %c0_55 = arith.constant 0 : index
    %c0_56 = arith.constant 0 : index
    %75 = vector.load %arg8[%c2, %c0_55, %c0_56] : memref<4x256x1024xf32, #tpu.memory_space<vmem>>, vector<1x256x1024xf32>
    %76 = vector.shape_cast %75 : vector<1x256x1024xf32> to vector<256x1024xf32>
    %cst_57 = arith.constant dense<0.000000e+00> : vector<8x1024xf32>
    %77 = tpu.matmul %74, %76, %cst_57 {dimension_numbers = #tpu.dot_dimension_numbers<[1], [0], [0], [1], [0, 0, 1, 1], [], []>} : vector<8x256xf32>, vector<256x1024xf32>, vector<8x1024xf32> -> vector<8x1024xf32>
    %78 = arith.addf %68, %77 : vector<8x1024xf32>
    %c3_i32_58 = arith.constant 3 : i32
    %c3_i32_59 = arith.constant 3 : i32
    %c768_i32_60 = arith.constant 768 : i32
    %c0_i32_61 = arith.constant 0 : i32
    %79 = tpu.memref_slice %arg5[%c768_i32_60, %c0_i32_61] : memref<1024x1024xf32, #tpu.memory_space<any>> -> memref<256x1024xf32, #tpu.memory_space<any>>
    %c0_i32_62 = arith.constant 0 : i32
    %c0_i32_63 = arith.constant 0 : i32
    %80 = tpu.memref_slice %arg8[%c3_i32_58, %c0_i32_62, %c0_i32_63] : memref<4x256x1024xf32, #tpu.memory_space<vmem>> -> memref<1x256x1024xf32, #tpu.memory_space<vmem>>
    %81 = tpu.memref_squeeze %80 : memref<1x256x1024xf32, #tpu.memory_space<vmem>> -> memref<256x1024xf32, #tpu.memory_space<vmem>>
    %82 = tpu.memref_slice %arg10[%c3_i32_59] : memref<5x!tpu.dma_semaphore, #tpu.memory_space<semaphore_mem>> -> memref<1x!tpu.dma_semaphore, #tpu.memory_space<semaphore_mem>>
    %83 = tpu.memref_squeeze %82 : memref<1x!tpu.dma_semaphore, #tpu.memory_space<semaphore_mem>> -> memref<!tpu.dma_semaphore, #tpu.memory_space<semaphore_mem>>
    tpu.wait_dma2 semaphore(%83 : memref<!tpu.dma_semaphore, #tpu.memory_space<semaphore_mem>>) src(%79 : memref<256x1024xf32, #tpu.memory_space<any>>) dst(%81 : memref<256x1024xf32, #tpu.memory_space<vmem>>)
    %84 = vector.extract_strided_slice %49 {offsets = [0, 768], sizes = [8, 256], strides = [1, 1]} : vector<8x1024xf32> to vector<8x256xf32>
    %c3 = arith.constant 3 : index
    %c0_64 = arith.constant 0 : index
    %c0_65 = arith.constant 0 : index
    %85 = vector.load %arg8[%c3, %c0_64, %c0_65] : memref<4x256x1024xf32, #tpu.memory_space<vmem>>, vector<1x256x1024xf32>
    %86 = vector.shape_cast %85 : vector<1x256x1024xf32> to vector<256x1024xf32>
    %cst_66 = arith.constant dense<0.000000e+00> : vector<8x1024xf32>
    %87 = tpu.matmul %84, %86, %cst_66 {dimension_numbers = #tpu.dot_dimension_numbers<[1], [0], [0], [1], [0, 0, 1, 1], [], []>} : vector<8x256xf32>, vector<256x1024xf32>, vector<8x1024xf32> -> vector<8x1024xf32>
    %88 = arith.addf %78, %87 : vector<8x1024xf32>
    %cst_67 = arith.constant dense<0.000000e+00> : vector<1024xf32>
    %89 = vector.multi_reduction <add>, %88, %cst_67 [0] : vector<8x1024xf32> to vector<1024xf32>
    %90 = vector.shape_cast %89 : vector<1024xf32> to vector<1x1024xf32>
    %91 = arith.mulf %88, %88 : vector<8x1024xf32>
    %cst_68 = arith.constant dense<0.000000e+00> : vector<1024xf32>
    %92 = vector.multi_reduction <add>, %91, %cst_68 [0] : vector<8x1024xf32> to vector<1024xf32>
    %93 = vector.shape_cast %92 : vector<1024xf32> to vector<1x1024xf32>
    %cst_69 = arith.constant 1.250000e-01 : f32
    %94 = vector.broadcast %cst_69 : f32 to vector<1x1024xf32>
    %95 = arith.mulf %90, %94 : vector<1x1024xf32>
    %cst_70 = arith.constant 1.250000e-01 : f32
    %96 = vector.broadcast %cst_70 : f32 to vector<1x1024xf32>
    %97 = arith.mulf %93, %96 : vector<1x1024xf32>
    %98 = arith.mulf %95, %95 : vector<1x1024xf32>
    %99 = arith.subf %97, %98 : vector<1x1024xf32>
    %cst_71 = arith.constant 9.99999974E-6 : f32
    %100 = vector.broadcast %cst_71 : f32 to vector<1x1024xf32>
    %101 = arith.addf %99, %100 : vector<1x1024xf32>
    %102 = math.rsqrt %101 : vector<1x1024xf32>
    %103 = arith.mulf %22, %102 : vector<1x1024xf32>
    %104 = arith.mulf %95, %103 : vector<1x1024xf32>
    %105 = arith.subf %23, %104 : vector<1x1024xf32>
    %106 = vector.broadcast %103 : vector<1x1024xf32> to vector<8x1024xf32>
    %107 = arith.mulf %88, %106 : vector<8x1024xf32>
    %108 = vector.broadcast %105 : vector<1x1024xf32> to vector<8x1024xf32>
    %109 = arith.addf %107, %108 : vector<8x1024xf32>
    %cst_72 = arith.constant 0.000000e+00 : f32
    %110 = vector.broadcast %cst_72 : f32 to vector<8x1024xf32>
    %111 = arith.maximumf %109, %110 : vector<8x1024xf32>
    %c4_i32_73 = arith.constant 4 : i32
    %112 = tpu.memref_slice %arg10[%c4_i32_73] : memref<5x!tpu.dma_semaphore, #tpu.memory_space<semaphore_mem>> -> memref<1x!tpu.dma_semaphore, #tpu.memory_space<semaphore_mem>>
    %113 = tpu.memref_squeeze %112 : memref<1x!tpu.dma_semaphore, #tpu.memory_space<semaphore_mem>> -> memref<!tpu.dma_semaphore, #tpu.memory_space<semaphore_mem>>
    tpu.wait_dma2 semaphore(%113 : memref<!tpu.dma_semaphore, #tpu.memory_space<semaphore_mem>>) src(%arg6 : memref<1024x128xf32, #tpu.memory_space<any>>) dst(%arg9 : memref<1024x128xf32, #tpu.memory_space<vmem>>)
    %c0_74 = arith.constant 0 : index
    %c0_75 = arith.constant 0 : index
    %114 = vector.load %arg9[%c0_74, %c0_75] : memref<1024x128xf32, #tpu.memory_space<vmem>>, vector<1024x128xf32>
    %cst_76 = arith.constant dense<0.000000e+00> : vector<8x128xf32>
    %115 = tpu.matmul %111, %114, %cst_76 {dimension_numbers = #tpu.dot_dimension_numbers<[1], [0], [0], [1], [0, 0, 1, 1], [], []>} : vector<8x1024xf32>, vector<1024x128xf32>, vector<8x128xf32> -> vector<8x128xf32>
    %c0_77 = arith.constant 0 : index
    %c0_78 = arith.constant 0 : index
    %116 = vector.load %arg4[%c0_77, %c0_78] : memref<1x128xf32, #tpu.memory_space<vmem>>, vector<1x128xf32>
    %117 = vector.broadcast %116 : vector<1x128xf32> to vector<8x128xf32>
    %118 = arith.addf %115, %117 : vector<8x128xf32>
    %c0_79 = arith.constant 0 : index
    %c0_80 = arith.constant 0 : index
    %119 = vector.load %arg7[%c0_79, %c0_80] : memref<8x128xf32, #tpu.memory_space<vmem>>, vector<8x128xf32>
    tpu.vector_store %arg7[%c0_79, %c0_80], %118 {strides = array<i32>} : memref<8x128xf32, #tpu.memory_space<vmem>>, vector<8x128xf32>,
    return
  }
}

</mosaic_0001>

<bundles_post_ra>
// kernel: net_forward.1
= control target key start
LH: loop header
LB: loop body
LE: loop exit
PB: predicated region body
PF: predicated region fallthrough
CT: control target
= control target key end

     0   :  { %12 = vsyncpa [#allocation6], 0  ;;  %s5586_s0 = inlined_call_operand.hbm [shape: f32[8,32], index: 0, kind: input, shape index: {}]   ;;  %s5587_s1 = inlined_call_operand.hbm [shape: f32[32,1024], index: 1, kind: input, shape index: {}]   ;;  %s5588_s2 = inlined_call_operand.hbm [shape: f32[1,1024], index: 2, kind: input, shape index: {}]   ;;  %s5589_s3 = inlined_call_operand.hbm [shape: f32[1,1024], index: 3, kind: input, shape index: {}]   ;;  %s5590_s4 = inlined_call_operand.hbm [shape: f32[1,128], index: 4, kind: input, shape index: {}]   ;;  %s5591_s5 = inlined_call_operand.hbm [shape: f32[1024,1024], index: 5, kind: input, shape index: {}]   ;;  %s5592_s6 = inlined_call_operand.hbm [shape: f32[1024,128], index: 6, kind: input, shape index: {}]   ;;  %s5593_s7 = inlined_call_operand.hbm [shape: f32[8,128], index: 7, kind: output, shape index: {}]  }
   0x1   :  { %13 = vsyncpa [#allocation9], 0 }
   0x2   :  { %14 = vsyncpa [#allocation12], 0  ;;  %s31_s26 = sshll.u32 %s5587_s1, 4  ;;  %s32_s26 = int_to_ptr.hbm [resolvable:$true] %s31_s26 }
   0x3   :  { %15 = vsyncpa [#allocation7], 0  ;;  %s4070_s27 = smov [#allocation8]   ;;  %s56_s8 = sshll.u32 %s5589_s3, 4  ;;  %s57_s8 = int_to_ptr.hbm [resolvable:$true] %s56_s8 }
   0x4   :  { %s33_s28 = sshll.u32 %s4070_s27, 4  ;;  %s4071_s9 = smov 1024   ;;  %s34_s28 = int_to_ptr.vmem [resolvable:$true] %s33_s28 }
   0x5   :  { %s4072_s10 = smov 64   ;;  %s4073_s11 = smov [#allocation11]  }
   0x6   :  { %39 = dma.hbm_to_vmem [thread:$0]  %s32_s26, 4096, %s34_s28, [#allocation9], %s4071_s9, %s4071_s9, %s4072_s10  }
   0x7   :  { %s58_s12 = sshll.u32 %s4073_s11, 4  ;;  %s21_s15 = sshll.u32 %s5586_s0, 4  ;;  %s59_s12 = int_to_ptr.vmem [resolvable:$true] %s58_s12  ;;  %s22_s15 = int_to_ptr.hbm [resolvable:$true] %s21_s15 }
   0x8   :  { %61 = dma.hbm_to_vmem [thread:$0]  %s57_s8, 128, %s59_s12, [#allocation12]  }
   0x9   :  { %s45_s17 = sshll.u32 %s5588_s2, 4  ;;  %s4074_s18 = smov [#allocation5]   ;;  %s46_s17 = int_to_ptr.hbm [resolvable:$true] %s45_s17 }
   0xa   :  { %s23_s19 = sshll.u32 %s4074_s18, 4  ;;  %s4075_s3 = smov [#allocation10]   ;;  %s24_s19 = int_to_ptr.vmem [resolvable:$true] %s23_s19 }
   0xb   :  { %26 = dma.hbm_to_vmem [thread:$0]  %s22_s15, 128, %s24_s19, [#allocation6]  }
   0xc   :  { %s47_s20 = sshll.u32 %s4075_s3, 4  ;;  %s67_s23 = sshll.u32 %s5590_s4, 4  ;;  %s48_s20 = int_to_ptr.vmem [resolvable:$true] %s47_s20  ;;  %s68_s23 = int_to_ptr.hbm [resolvable:$true] %s67_s23 }
   0xd   :  { %50 = dma.hbm_to_vmem [thread:$0]  %s46_s17, 128, %s48_s20, [#allocation9]  }
   0xe   :  { %s4076_s0 = smov [#allocation13]  }
   0xf   :  { %s69_s24 = sshll.u32 %s4076_s0, 4  ;;  %s70_s24 = int_to_ptr.vmem [resolvable:$true] %s69_s24 }
  0x10   :  { %72 = dma.hbm_to_vmem [thread:$0]  %s68_s23, 16, %s70_s24, [#allocation12]  }
  0x11   :  { %4052 = dma.done.wait [#allocation6], 128  }
  0x12   :  { %4053 = vsyncadd [#allocation6], 4294967168 }
  0x13   :  { %4054 = dma.done.wait [#allocation9], 4224  }
  0x14   :  { %4055 = vsyncadd [#allocation9], 4294963072 }
  0x15   :  { %4056 = dma.done.wait [#allocation12], 144  }
  0x16   :  { %4057 = vsyncadd [#allocation12], 4294967152  ;;  %v195_v0 = vld [vmem:[#allocation8 + $0xc0] sm:$0xff]  ;;  %v196_v1 = vld [vmem:[#allocation8 + $0xc8] sm:$0xff]  ;;  %vm203_vm0 = vcmask 261120   ;;  %s100_s25 = sshll.u32 %s5591_s5, 4  ;;  %s101_s25 = int_to_ptr.hbm [resolvable:$true] %s100_s25 }
  0x17   :  { %v197_v2 = vld [vmem:[#allocation8 + $0xd0] sm:$0xff]  ;;  %219 = vmatpush.msra.mxu0 %v195_v0  ;;  %239 = vmatpush.msra.mxu1 %v196_v1  ;;  %v198_v3 = vld [vmem:[#allocation8 + $0xd8] sm:$0xff]  ;;  %v187_v4 = vld [vmem:[#allocation8 + $0x80] sm:$0xff]  ;;  %s4077_s26 = smov [#allocation2]   ;;  %s106_s30 = scalar_lea.hbm %s5591_s5, 2048 }
  0x18   :  { %v188_v5 = vld [vmem:[#allocation8 + $0x88] sm:$0xff]  ;;  %259 = vmatpush.msra.mxu2 %v197_v2  ;;  %279 = vmatpush.msra.mxu3 %v198_v3  ;;  %v189_v6 = vld [vmem:[#allocation8 + $0x90] sm:$0xff]  ;;  %v190_v7 = vld [vmem:[#allocation8 + $0x98] sm:$0xff]  ;;  %s102_s27 = sshll.u32 %s4077_s26, 4  ;;  %s116_s8 = sshll.u32 %s106_s30, 4  ;;  %s103_s27 = int_to_ptr.vmem [resolvable:$true] %s102_s27  ;;  %s117_s8 = int_to_ptr.hbm [resolvable:$true] %s116_s8 }
  0x19   :  { %v179_v8 = vld [vmem:[#allocation8 + $0x40] sm:$0xff]  ;;  %220 = vmatpush.msra.mxu0 %v187_v4  ;;  %240 = vmatpush.msra.mxu1 %v188_v5  ;;  %v180_v9 = vld [vmem:[#allocation8 + $0x48] sm:$0xff]  ;;  %v181_v10 = vld [vmem:[#allocation8 + $0x50] sm:$0xff]  ;;  %105 = dma.hbm_to_vmem [thread:$0]  %s101_s25, 32768, %s103_s27, [#allocation4] }
  0x1a   :  { %v182_v11 = vld [vmem:[#allocation8 + $0x58] sm:$0xff]  ;;  %260 = vmatpush.msra.mxu2 %v189_v6  ;;  %280 = vmatpush.msra.mxu3 %v190_v7  ;;  %v171_v12 = vld [vmem:[#allocation8] sm:$0xff]  ;;  %v172_v13 = vld [vmem:[#allocation8 + $0x8] sm:$0xff]  ;;  %s4078_s9 = smov [#allocation2 + $0x800]   ;;  %s122_s13 = scalar_lea.hbm %s5591_s5, 4096 }
  0x1b   :  { %221 = vmatpush.msra.mxu0 %v179_v8  ;;  %241 = vmatpush.msra.mxu1 %v180_v9  ;;  %v173_v14 = vld [vmem:[#allocation8 + $0x10] sm:$0xff]  ;;  %v174_v15 = vld [vmem:[#allocation8 + $0x18] sm:$0xff]  ;;  %v199_v19 = vld [vmem:[#allocation8 + $0xe0] sm:$0xff]  ;;  %s118_s10 = sshll.u32 %s4078_s9, 4  ;;  %s132_s14 = sshll.u32 %s122_s13, 4  ;;  %s119_s10 = int_to_ptr.vmem [resolvable:$true] %s118_s10  ;;  %s133_s14 = int_to_ptr.hbm [resolvable:$true] %s132_s14 }
  0x1c   :  { %261 = vmatpush.msra.mxu2 %v181_v10  ;;  %281 = vmatpush.msra.mxu3 %v182_v11  ;;  %v170_v16 = vld [vmem:[#allocation5] sm:$0xff]  ;;  %v201_v17 = vld [vmem:[#allocation8 + $0xf0] sm:$0xff]  ;;  %v200_v20 = vld [vmem:[#allocation8 + $0xe8] sm:$0xff]  ;;  %121 = dma.hbm_to_vmem [thread:$0]  %s117_s8, 32768, %s119_s10, [#allocation4 + $0x1] }
  0x1d   :  { %222 = vmatpush.msra.mxu0 %v171_v12  ;;  %242 = vmatpush.msra.mxu1 %v172_v13  ;;  %v202_v18 = vld [vmem:[#allocation8 + $0xf8] sm:$0xff]  ;;  %v193_v21 = vld [vmem:[#allocation8 + $0xb0] sm:$0xff]  ;;  %v191_v23 = vld [vmem:[#allocation8 + $0xa0] sm:$0xff]  ;;  %s4079_s15 = smov [#allocation2 + $0x1000]   ;;  %s138_s18 = scalar_lea.hbm %s5591_s5, 6144 }
  0x1e   :  { %262 = vmatpush.msra.mxu2 %v173_v14  ;;  %282 = vmatpush.msra.mxu3 %v174_v15  ;;  %v194_v22 = vld [vmem:[#allocation8 + $0xb8] sm:$0xff]  ;;  %v192_v24 = vld [vmem:[#allocation8 + $0xa8] sm:$0xff]  ;;  %v185_v25 = vld [vmem:[#allocation8 + $0x70] sm:$0xff]  ;;  %s134_s1 = sshll.u32 %s4079_s15, 4  ;;  %s148_s19 = sshll.u32 %s138_s18, 4  ;;  %s135_s1 = int_to_ptr.vmem [resolvable:$true] %s134_s1  ;;  %s149_s19 = int_to_ptr.hbm [resolvable:$true] %s148_s19 }
  0x1f   :  { %3729 = vmatmul.msk.f32.vlgmr.msra.gmra.mxu0 %vm203_vm0, %v170_v16  ;;  %3730 = vmatmul.msk.f32.vlgmr.msra.gmra.mxu1 %vm203_vm0, %v170_v16  ;;  %v186_v26 = vld [vmem:[#allocation8 + $0x78] sm:$0xff]  ;;  %v183_v27 = vld [vmem:[#allocation8 + $0x60] sm:$0xff]  ;;  %v184_v28 = vld [vmem:[#allocation8 + $0x68] sm:$0xff]  ;;  %137 = dma.hbm_to_vmem [thread:$0]  %s133_s14, 32768, %s135_s1, [#allocation4 + $0x2] }
  0x20   :  { %3731 = vmatmul.msk.f32.vlgmr.msra.gmra.mxu2 %vm203_vm0, %v170_v16  ;;  %3732 = vmatmul.msk.f32.vlgmr.msra.gmra.mxu3 %vm203_vm0, %v170_v16  ;;  %v177_v29 = vld [vmem:[#allocation8 + $0x30] sm:$0xff]  ;;  %v178_v30 = vld [vmem:[#allocation8 + $0x38] sm:$0xff]  ;;  %v175_v31 = vld [vmem:[#allocation8 + $0x20] sm:$0xff]  ;;  %s4080_s3 = smov [#allocation2 + $0x1800]   ;;  %s162_s23 = sshll.u32 %s5592_s6, 4  ;;  %s163_s23 = int_to_ptr.hbm [resolvable:$true] %s162_s23 }
  0x21   :  { %339 = vmatpush.msrb.mxu2 %v201_v17  ;;  %359 = vmatpush.msrb.mxu3 %v202_v18  ;;  %v176_v32 = vld [vmem:[#allocation8 + $0x28] sm:$0xff]  ;;  %s150_s20 = sshll.u32 %s4080_s3, 4  ;;  %s4081_s0 = smov [#allocation3]   ;;  %s151_s20 = int_to_ptr.vmem [resolvable:$true] %s150_s20 }
  0x22   :  { %299 = vmatpush.msrb.mxu0 %v199_v19  ;;  %319 = vmatpush.msrb.mxu1 %v200_v20  ;;  %153 = dma.hbm_to_vmem [thread:$0]  %s149_s19, 32768, %s151_s20, [#allocation4 + $0x3] }
  0x23   :  { %340 = vmatpush.msrb.mxu2 %v193_v21  ;;  %360 = vmatpush.msrb.mxu3 %v194_v22  ;;  %s164_s24 = sshll.u32 %s4081_s0, 4  ;;  %s165_s24 = int_to_ptr.vmem [resolvable:$true] %s164_s24 }
  0x24   :  { %300 = vmatpush.msrb.mxu0 %v191_v23  ;;  %320 = vmatpush.msrb.mxu1 %v192_v24  ;;  %167 = dma.hbm_to_vmem [thread:$0]  %s163_s23, 16384, %s165_s24, [#allocation4 + $0x4] }
  0x25   :  { %341 = vmatpush.msrb.mxu2 %v185_v25  ;;  %361 = vmatpush.msrb.mxu3 %v186_v26 }
  0x26   :  { %301 = vmatpush.msrb.mxu0 %v183_v27  ;;  %321 = vmatpush.msrb.mxu1 %v184_v28 }
  0x27   :  { %342 = vmatpush.msrb.mxu2 %v177_v29  ;;  %362 = vmatpush.msrb.mxu3 %v178_v30 }
  0x28   :  { %302 = vmatpush.msrb.mxu0 %v175_v31  ;;  %322 = vmatpush.msrb.mxu1 %v176_v32 }
  0x29   :  { %3733 = vmatmul.msk.f32.vlgmr.msrb.gmra.mxu0 %vm203_vm0, %v170_v16  ;;  %3734 = vmatmul.msk.f32.vlgmr.msrb.gmra.mxu1 %vm203_vm0, %v170_v16 }
  0x2a   :  { %3735 = vmatmul.msk.f32.vlgmr.msrb.gmra.mxu2 %vm203_vm0, %v170_v16  ;;  %3736 = vmatmul.msk.f32.vlgmr.msrb.gmra.mxu3 %vm203_vm0, %v170_v16 }
  0x9c   :  { %v4161_v33 = vpop.f32.mrf.mxu1  ;;  %v4166_v36 = vpop.f32.mrf.mxu0 }
  0x9d   :  { %v373_v34 = vrot.slane %v4161_v33, 4  ;;  %v416_v35 = vmul.f32 %v4161_v33, %v4161_v33  ;;  %v367_v37 = vrot.slane %v4166_v36, 4  ;;  %v415_v47 = vmul.f32 %v4166_v36, %v4166_v36 }
  0x9f   :  { %v374_v38 = vadd.f32 %v373_v34, %v4161_v33  ;;  %v429_v39 = vrot.slane %v416_v35, 4  ;;  %v368_v46 = vadd.f32 %v367_v37, %v4166_v36  ;;  %v423_v58 = vrot.slane %v415_v47, 4 }
  0xa1   :  { %v375_v48 = vrot.slane %v374_v38, 2  ;;  %v430_v49 = vadd.f32 %v429_v39, %v416_v35  ;;  %v369_v59 = vrot.slane %v368_v46, 2  ;;  %v424_v3 = vadd.f32 %v423_v58, %v415_v47 }
  0xa3   :  { %v4170_v40 = vpop.f32.mrf.mxu2  ;;  %v4172_v41 = vpop.f32.mrf.mxu3  ;;  %v376_v60 = vadd.f32 %v375_v48, %v374_v38  ;;  %v431_v61 = vrot.slane %v430_v49, 2  ;;  %v370_v6 = vadd.f32 %v369_v59, %v368_v46  ;;  %v425_v16 = vrot.slane %v424_v3, 2 }
  0xa4   :  { %v379_v42 = vrot.slane %v4170_v40, 4  ;;  %v417_v43 = vmul.f32 %v4170_v40, %v4170_v40  ;;  %v385_v44 = vrot.slane %v4172_v41, 4  ;;  %v418_v45 = vmul.f32 %v4172_v41, %v4172_v41 }
  0xa5   :  { %v377_v7 = vrot.slane %v376_v60, 1  ;;  %v432_v8 = vadd.f32 %v431_v61, %v430_v49  ;;  %v371_v19 = vrot.slane %v370_v6, 1  ;;  %v426_v37 = vadd.f32 %v425_v16, %v424_v3 }
  0xa6   :  { %v380_v50 = vadd.f32 %v379_v42, %v4170_v40  ;;  %v435_v51 = vrot.slane %v417_v43, 4  ;;  %v386_v52 = vadd.f32 %v385_v44, %v4172_v41  ;;  %v441_v53 = vrot.slane %v418_v45, 4  ;;  %v4185_v63 = vpop.f32.mrf.mxu0  ;;  %v4191_v15 = vpop.f32.mrf.mxu1 }
  0xa7   :  { %v391_v4 = vrot.slane %v4185_v63, 4  ;;  %v419_v5 = vmul.f32 %v4185_v63, %v4185_v63  ;;  %v378_v20 = vadd.f32 %v377_v7, %v376_v60  ;;  %v433_v21 = vrot.slane %v432_v8, 1 }
  0xa8   :  { %v381_v54 = vrot.slane %v380_v50, 2  ;;  %v436_v55 = vadd.f32 %v435_v51, %v417_v43  ;;  %v387_v56 = vrot.slane %v386_v52, 2  ;;  %v442_v57 = vadd.f32 %v441_v53, %v418_v45 }
  0xa9   :  { %v392_v11 = vadd.f32 %v391_v4, %v4185_v63  ;;  %v447_v12 = vrot.slane %v419_v5, 4  ;;  %v397_v26 = vrot.slane %v4191_v15, 4  ;;  %v420_v29 = vmul.f32 %v4191_v15, %v4191_v15 }
  0xaa   :  { %v382_v62 = vadd.f32 %v381_v54, %v380_v50  ;;  %v437_v0 = vrot.slane %v436_v55, 2  ;;  %v388_v1 = vadd.f32 %v387_v56, %v386_v52  ;;  %v443_v2 = vrot.slane %v442_v57, 2 }
  0xab   :  { %v393_v17 = vrot.slane %v392_v11, 2  ;;  %v448_v25 = vadd.f32 %v447_v12, %v419_v5  ;;  %v398_v34 = vadd.f32 %v397_v26, %v4191_v15  ;;  %v434_v38 = vadd.f32 %v433_v21, %v432_v8 }
  0xac   :  { %v383_v9 = vrot.slane %v382_v62, 1  ;;  %v438_v10 = vadd.f32 %v437_v0, %v436_v55  ;;  %v389_v13 = vrot.slane %v388_v1, 1  ;;  %v444_v14 = vadd.f32 %v443_v2, %v442_v57 }
  0xad   :  { %v4193_v18 = vpop.f32.mrf.mxu2  ;;  %v394_v24 = vadd.f32 %v393_v17, %v392_v11  ;;  %v449_v32 = vrot.slane %v448_v25, 2  ;;  %v4202_v39 = vmul.f32 0.125, %v378_v20  ;;  %v453_v42 = vrot.slane %v420_v29, 4  ;;  %v4219_v12 = vpop.f32.mrf.mxu3 }
  0xae   :  { %v384_v22 = vadd.f32 %v383_v9, %v382_v62  ;;  %v439_v23 = vrot.slane %v438_v10, 1  ;;  %v390_v27 = vadd.f32 %v389_v13, %v388_v1  ;;  %v445_v28 = vrot.slane %v444_v14, 1 }
  0xaf   :  { %v403_v30 = vrot.slane %v4193_v18, 4  ;;  %v395_v31 = vrot.slane %v394_v24, 1  ;;  %v421_v35 = vmul.f32 %v4193_v18, %v4193_v18  ;;  %v450_v44 = vadd.f32 %v449_v32, %v448_v25 }
  0xb0   :  { %v399_v45 = vrot.slane %v398_v34, 2  ;;  %v440_v47 = vadd.f32 %v439_v23, %v438_v10  ;;  %v4205_v48 = vmul.f32 0.125, %v384_v22  ;;  %v372_v49 = vadd.f32 %v371_v19, %v370_v6 }
  0xb1   :  { %v396_v43 = vadd.f32 %v395_v31, %v394_v24  ;;  %v404_v46 = vadd.f32 %v403_v30, %v4193_v18  ;;  %v446_v50 = vadd.f32 %v445_v28, %v444_v14  ;;  %v4207_v51 = vmul.f32 0.125, %v390_v27 }
  0xb2   :  { %v459_v52 = vrot.slane %v421_v35, 4  ;;  %v427_v53 = vrot.slane %v426_v37, 1  ;;  %v451_v54 = vrot.slane %v450_v44, 1  ;;  %v400_v56 = vadd.f32 %v399_v45, %v398_v34 }
  0xb3   :  { %v4209_v55 = vmul.f32 0.125, %v396_v43  ;;  %v480_v57 = vmul.f32 0.125, %v434_v38  ;;  %v488_v58 = vmul.f32 %v4202_v39, %v4202_v39  ;;  %v454_v59 = vadd.f32 %v453_v42, %v420_v29 }
  0xb4   :  { %v405_v60 = vrot.slane %v404_v46, 2  ;;  %v481_v61 = vmul.f32 0.125, %v440_v47  ;;  %v489_v62 = vmul.f32 %v4205_v48, %v4205_v48  ;;  %v452_v0 = vadd.f32 %v451_v54, %v450_v44 }
  0xb5   :  { %v401_v1 = vrot.slane %v400_v56, 1  ;;  %v482_v2 = vmul.f32 0.125, %v446_v50  ;;  %v490_v3 = vmul.f32 %v4207_v51, %v4207_v51  ;;  %v455_v4 = vrot.slane %v454_v59, 2 }
  0xb6   :  { %v460_v5 = vadd.f32 %v459_v52, %v421_v35  ;;  %v483_v6 = vmul.f32 0.125, %v452_v0  ;;  %v491_v7 = vmul.f32 %v4209_v55, %v4209_v55  ;;  %v406_v9 = vadd.f32 %v405_v60, %v404_v46 }
  0xb7   :  { %v402_v8 = vadd.f32 %v401_v1, %v400_v56  ;;  %v496_v10 = vsub.f32 %v480_v57, %v488_v58  ;;  %v456_v11 = vadd.f32 %v455_v4, %v454_v59  ;;  %v428_v13 = vadd.f32 %v427_v53, %v426_v37 }
  0xb8   :  { %v4221_v14 = vmul.f32 0.125, %v372_v49  ;;  %v497_v16 = vsub.f32 %v481_v61, %v489_v62  ;;  %v498_v17 = vsub.f32 %v482_v2, %v490_v3  ;;  %v461_v21 = vrot.slane %v460_v5, 2 }
  0xb9   :  { %v457_v19 = vrot.slane %v456_v11, 1  ;;  %v4223_v20 = vmul.f32 0.125, %v402_v8  ;;  %v499_v22 = vsub.f32 %v483_v6, %v491_v7  ;;  %v407_v23 = vrot.slane %v406_v9, 1 }
  0xba   :  { %v409_v24 = vrot.slane %v4219_v12, 4  ;;  %v4226_v25 = vadd.f32 1e-05, %v496_v10  ;;  %v479_v28 = vmul.f32 0.125, %v428_v13  ;;  %v487_v29 = vmul.f32 %v4221_v14, %v4221_v14 }
  0xbb   :  { %v458_v26 = vadd.f32 %v457_v19, %v456_v11  ;;  %v492_v27 = vmul.f32 %v4223_v20, %v4223_v20  ;;  %v4232_v30 = vadd.f32 1e-05, %v497_v16  ;;  %v4234_v31 = vadd.f32 1e-05, %v498_v17 }
  0xbc   :  { %v408_v34 = vadd.f32 %v407_v23, %v406_v9  ;;  %v462_v35 = vadd.f32 %v461_v21, %v460_v5  ;;  %v4236_v37 = vadd.f32 1e-05, %v499_v22  ;;  %v410_v38 = vadd.f32 %v409_v24, %v4219_v12 }
  0xbd   :  { %v484_v32 = vmul.f32 0.125, %v458_v26  ;;  %v422_v42 = vmul.f32 %v4219_v12, %v4219_v12  ;;  %3755 = vrsqrt.f32 %v4226_v25  ;;  %v495_v46 = vsub.f32 %v479_v28, %v487_v29 }
  0xbe   :  { %v463_v44 = vrot.slane %v462_v35, 1  ;;  %v4242_v45 = vmul.f32 0.125, %v408_v34  ;;  %3757 = vrsqrt.f32 %v4232_v30  ;;  %v411_v47 = vrot.slane %v410_v38, 2 }
  0xbf   :  { %v500_v43 = vsub.f32 %v484_v32, %v492_v27  ;;  %v465_v49 = vrot.slane %v422_v42, 4  ;;  %3759 = vrsqrt.f32 %v4234_v31  ;;  %v4252_v57 = vadd.f32 1e-05, %v495_v46 }
  0xc0   :  { %v464_v52 = vadd.f32 %v463_v44, %v462_v35  ;;  %3761 = vrsqrt.f32 %v4236_v37  ;;  %v493_v53 = vmul.f32 %v4242_v45, %v4242_v45  ;;  %v412_v54 = vadd.f32 %v411_v47, %v410_v38 }
  0xc1   :  { %v4246_v50 = vadd.f32 1e-05, %v500_v43  ;;  %v466_v56 = vadd.f32 %v465_v49, %v422_v42  ;;  %vm527_vm2 = vweird.f32 %v4226_v25  ;;  %vm537_vm4 = vweird.f32 %v4232_v30 }
  0xc2   :  { %v485_v58 = vmul.f32 0.125, %v464_v52  ;;  %v413_v59 = vrot.slane %v412_v54, 1  ;;  %vm547_vm5 = vweird.f32 %v4234_v31  ;;  %vm557_vm10 = vweird.f32 %v4236_v37 }
  0xc3   :  { %3763 = vrsqrt.f32 %v4246_v50  ;;  %v467_v60 = vrot.slane %v466_v56, 2  ;;  %v4254_v61 = vpop.eup %3755  ;;  %vm567_vm15 = vweird.f32 %v4246_v50 }
  0xc4   :  { %v4256_v62 = vpop.eup %3757  ;;  %v501_v0 = vsub.f32 %v485_v58, %v493_v53  ;;  %v414_v1 = vadd.f32 %v413_v59, %v412_v54  ;;  %3765 = vrsqrt.f32 %v4252_v57  ;;  %v522_v11 = vmul.f32 %v4254_v61, %v4226_v25 }
  0xc5   :  { %v468_v2 = vadd.f32 %v467_v60, %v466_v56  ;;  %v4258_v3 = vpop.eup %3759  ;;  %v532_v9 = vmul.f32 %v4256_v62, %v4232_v30  ;;  %vm528_vm1 = vweird.f32 %v4254_v61  ;;  %vm538_vm3 = vweird.f32 %v4256_v62 }
  0xc6   :  { %v4260_v4 = vpop.eup %3761  ;;  %v4263_v5 = vadd.f32 1e-05, %v501_v0  ;;  %v4265_v7 = vmul.f32 0.125, %v414_v1  ;;  %v542_v10 = vmul.f32 %v4258_v3, %v4234_v31  ;;  %v523_v26 = vmul.f32 %v4254_v61, %v522_v11  ;;  %vm4306_vm7 = vmor %vm527_vm2, %vm528_vm1 }
  0xc7   :  { %v469_v6 = vrot.slane %v468_v2, 1  ;;  %v552_v13 = vmul.f32 %v4260_v4, %v4236_v37  ;;  %v533_v23 = vmul.f32 %v4256_v62, %v532_v9  ;;  %vm548_vm6 = vweird.f32 %v4258_v3  ;;  %vm4315_vm9 = vmor %vm537_vm4, %vm538_vm3 }
  0xc8   :  { %3767 = vrsqrt.f32 %v4263_v5  ;;  %v494_v17 = vmul.f32 %v4265_v7, %v4265_v7  ;;  %v543_v24 = vmul.f32 %v4258_v3, %v542_v10  ;;  %v524_v44 = vmul.f32 0.5, %v523_v26  ;;  %vm4322_vm12 = vmor %vm547_vm5, %vm548_vm6 }
  0xc9   :  { %v4267_v8 = vpop.eup %3763  ;;  %v470_v16 = vadd.f32 %v469_v6, %v468_v2  ;;  %v553_v27 = vmul.f32 %v4260_v4, %v552_v13  ;;  %v534_v42 = vmul.f32 0.5, %v533_v23  ;;  %vm558_vm8 = vweird.f32 %v4260_v4 }
  0xca   :  { %v562_v19 = vmul.f32 %v4267_v8, %v4246_v50  ;;  %v4282_v22 = vpop.eup %3765  ;;  %v544_v43 = vmul.f32 0.5, %v543_v24  ;;  %v525_v58 = vsub.f32 1.5, %v524_v44  ;;  %vm568_vm11 = vweird.f32 %v4267_v8  ;;  %vm4329_vm14 = vmor %vm557_vm10, %vm558_vm8 }
  0xcb   :  { %v486_v21 = vmul.f32 0.125, %v470_v16  ;;  %v512_v34 = vmul.f32 %v4282_v22, %v4252_v57  ;;  %v554_v46 = vmul.f32 0.5, %v553_v27  ;;  %v535_v54 = vsub.f32 1.5, %v534_v42  ;;  %vm4340_vm0 = vmor %vm567_vm15, %vm568_vm11 }
  0xcc   :  { %v563_v32 = vmul.f32 %v4267_v8, %v562_v19  ;;  %v545_v56 = vsub.f32 1.5, %v544_v43  ;;  %v526_v11 = vmul.f32 %v4254_v61, %v525_v58  ;;  %vm577_vm1 = vweird.f32 %v4263_v5 }
  0xcd   :  { %v502_v28 = vsub.f32 %v486_v21, %v494_v17  ;;  %v513_v52 = vmul.f32 %v4282_v22, %v512_v34  ;;  %v555_v59 = vsub.f32 1.5, %v554_v46  ;;  %v536_v9 = vmul.f32 %v4256_v62, %v535_v54 }
  0xce   :  { %v4288_v29 = vpop.eup %3767  ;;  %v564_v49 = vmul.f32 0.5, %v563_v32  ;;  %v546_v25 = vmul.f32 %v4258_v3, %v545_v56  ;;  %vm517_vm4 = vweird.f32 %v4252_v57  ;;  %vm518_vm5 = vweird.f32 %v4282_v22 }
  0xcf   :  { %v572_v35 = vmul.f32 %v4288_v29, %v4263_v5  ;;  %v4295_v38 = vadd.f32 1e-05, %v502_v28  ;;  %v514_v2 = vmul.f32 0.5, %v513_v52  ;;  %v556_v31 = vmul.f32 %v4260_v4, %v555_v59 }
  0xd0   :  { %v565_v60 = vsub.f32 1.5, %v564_v49  ;;  %vm578_vm13 = vweird.f32 %v4288_v29  ;;  %v540_v37 = vsel %vm4315_vm9, %v4256_v62, %v536_v9  ;;  %v550_v24 = vsel %vm4322_vm12, %v4258_v3, %v546_v25  ;;  %vm519_vm12 = vmor %vm517_vm4, %vm518_vm5  ;;  %v4371_v49 = vld [vmem:[#allocation10] sm:$0xff] }
  0xd1   :  { %v573_v47 = vmul.f32 %v4288_v29, %v572_v35  ;;  %3769 = vrsqrt.f32 %v4295_v38  ;;  %v515_v21 = vsub.f32 1.5, %v514_v2  ;;  %v530_v28 = vsel %vm4306_vm7, %v4254_v61, %v526_v11  ;;  %vm4351_vm2 = vmor %vm577_vm1, %vm578_vm13  ;;  %5617 = vst [vmem:[#allocation36_spill] sm:$0xff] %v4371_v49 }
  0xd2   :  { %v566_v16 = vmul.f32 %v4267_v8, %v565_v60  ;;  %v560_v50 = vsel %vm4329_vm14, %v4260_v4, %v556_v31  ;;  %v600_v61 = vrot.slane %v540_v37, 6  ;;  %v601_v4 = vrot.slane %v550_v24, 5 }
  0xd3   :  { %v574_v53 = vmul.f32 0.5, %v573_v47  ;;  %v516_v34 = vmul.f32 %v4282_v22, %v515_v21  ;;  %vm587_vm6 = vweird.f32 %v4295_v38  ;;  %vm608_vm7 = vcmask 1042434  }
  0xd4   :  { %v570_v3 = vsel %vm4340_vm0, %v4267_v8, %v566_v16  ;;  %v599_v42 = vrot.slane %v530_v28, 7  ;;  %v602_v8 = vrot.slane %v560_v50, 4  ;;  %vm606_vm9 = vcmask 1040384  }
  0xd5   :  { %v575_v0 = vsub.f32 1.5, %v574_v53  ;;  %v603_v43 = vrot.slane %v570_v3, 3  ;;  %vm612_vm10 = vcmask 1044484   ;;  %vm614_vm11 = vcmask 1046534  }
  0xd6   :  { %v609_v47 = vsel %vm608_vm7, %v600_v61, %v601_v4  ;;  %vm5604_vm13 = vcmask 1041408   ;;  %vm5603_vm14 = vcmask 1045508   ;;  %vm5602_vm15 = vcmask 1043456  }
  0xd7   :  { %v3770_v1 = vpop.eup %3769  ;;  %v576_v17 = vmul.f32 %v4288_v29, %v575_v0  ;;  %v613_v53 = vsel %vm612_vm10, %v602_v8, %v603_v43 }
  0xd8   :  { %v582_v10 = vmul.f32 %v3770_v1, %v4295_v38  ;;  %vm588_vm3 = vweird.f32 %v3770_v1  ;;  %v520_v38 = vsel %vm519_vm12, %v4282_v22, %v516_v34 }
  0xd9   :  { %v580_v5 = vsel %vm4351_vm2, %v4288_v29, %v576_v17  ;;  %vm589_vm8 = vmor %vm587_vm6, %vm588_vm3  ;;  %v607_v52 = vsel %vm606_vm9, %v520_v38, %v599_v42 }
  0xda   :  { %v583_v19 = vmul.f32 %v3770_v1, %v582_v10  ;;  %v604_v44 = vrot.slane %v580_v5, 2  ;;  %v611_v56 = vsel %vm5604_vm13, %v607_v52, %v609_v47 }
  0xdc   :  { %v584_v27 = vmul.f32 0.5, %v583_v19 }
  0xde   :  { %v585_v32 = vsub.f32 1.5, %v584_v27 }
  0xe0   :  { %v586_v35 = vmul.f32 %v3770_v1, %v585_v32 }
  0xe2   :  { %v590_v29 = vsel %vm589_vm8, %v3770_v1, %v586_v35 }
  0xe3   :  { %v605_v46 = vrot.slane %v590_v29, 1 }
  0xe5   :  { %v615_v54 = vsel %vm614_vm11, %v604_v44, %v605_v46 }
  0xe6   :  { %v617_v57 = vsel %vm5603_vm14, %v613_v53, %v615_v54 }
  0xe7   :  { %v619_v58 = vsel %vm5602_vm15, %v611_v56, %v617_v57 }
  0xe8   :  { %v621_v59 = vmul.f32 %v619_v58, %v4371_v49 }
  0xea   :  { %v623_v60 = vperm.slane %v621_v59, 0  ;;  %v624_v0 = vperm.slane %v621_v59, 1  ;;  %v625_v22 = vperm.slane %v621_v59, 2  ;;  %v626_v1 = vperm.slane %v621_v59, 3 }
  0xeb   :  { %v627_v2 = vperm.slane %v621_v59, 4  ;;  %v628_v6 = vperm.slane %v621_v59, 5  ;;  %v629_v9 = vperm.slane %v621_v59, 6  ;;  %v630_v25 = vperm.slane %v621_v59, 7 }
  0xec   :  { %v640_v10 = vmul.f32 %v624_v0, %v4202_v39  ;;  %v641_v11 = vmul.f32 %v625_v22, %v4205_v48  ;;  %v642_v30 = vmul.f32 %v626_v1, %v4207_v51  ;;  %v639_v19 = vmul.f32 %v623_v60, %v4221_v14 }
  0xed   :  { %v643_v31 = vmul.f32 %v627_v2, %v4209_v55  ;;  %v644_v13 = vmul.f32 %v628_v6, %v4223_v20  ;;  %v645_v16 = vmul.f32 %v629_v9, %v4242_v45  ;;  %v646_v17 = vmul.f32 %v630_v25, %v4265_v7  ;;  %v4390_v55 = vld [vmem:[#allocation11] sm:$0xff] }
  0xee   :  { %v655_v21 = vrot.slane %v640_v10, 7  ;;  %v656_v23 = vrot.slane %v641_v11, 6  ;;  %v657_v37 = vrot.slane %v642_v30, 5  ;;  %5618 = vst [vmem:[#allocation37_spill] sm:$0xff] %v4390_v55  ;;  %v671_v50 = vmul.f32 %v623_v60, %v4166_v36 }
  0xef   :  { %v658_v24 = vrot.slane %v643_v31, 4  ;;  %v659_v26 = vrot.slane %v644_v13, 3  ;;  %v660_v39 = vrot.slane %v645_v16, 2  ;;  %v661_v27 = vrot.slane %v646_v17, 1 }
  0xf0   :  { %v662_v48 = vsel %vm606_vm9, %v639_v19, %v655_v21  ;;  %v663_v51 = vsel %vm608_vm7, %v656_v23, %v657_v37  ;;  %v672_v3 = vmul.f32 %v624_v0, %v4161_v33  ;;  %v673_v5 = vmul.f32 %v625_v22, %v4170_v40 }
  0xf1   :  { %v664_v20 = vsel %vm5604_vm13, %v662_v48, %v663_v51  ;;  %v665_v45 = vsel %vm612_vm10, %v658_v24, %v659_v26  ;;  %v666_v7 = vsel %vm614_vm11, %v660_v39, %v661_v27  ;;  %v674_v32 = vmul.f32 %v626_v1, %v4172_v41 }
  0xf2   :  { %v667_v14 = vsel %vm5603_vm14, %v665_v45, %v666_v7  ;;  %v675_v61 = vmul.f32 %v627_v2, %v4185_v63  ;;  %v676_v4 = vmul.f32 %v628_v6, %v4191_v15  ;;  %v677_v34 = vmul.f32 %v629_v9, %v4193_v18 }
  0xf3   :  { %v668_v28 = vsel %vm5602_vm15, %v664_v20, %v667_v14  ;;  %v678_v35 = vmul.f32 %v630_v25, %v4219_v12 }
  0xf4   :  { %v670_v62 = vsub.f32 %v4390_v55, %v668_v28 }
  0xf6   :  { %v680_v42 = vperm.slane %v670_v62, 0  ;;  %v681_v8 = vperm.slane %v670_v62, 1  ;;  %v682_v43 = vperm.slane %v670_v62, 2  ;;  %v683_v36 = vperm.slane %v670_v62, 3 }
  0xf7   :  { %v684_v44 = vperm.slane %v670_v62, 4  ;;  %v685_v29 = vperm.slane %v670_v62, 5  ;;  %v686_v46 = vperm.slane %v670_v62, 6  ;;  %v687_v33 = vperm.slane %v670_v62, 7 }
  0xf8   :  { %v696_v47 = vadd.f32 %v680_v42, %v671_v50  ;;  %v697_v40 = vadd.f32 %v681_v8, %v672_v3  ;;  %v698_v38 = vadd.f32 %v682_v43, %v673_v5  ;;  %v699_v41 = vadd.f32 %v683_v36, %v674_v32 }
  0xf9   :  { %v700_v52 = vadd.f32 %v684_v44, %v675_v61  ;;  %v701_v63 = vadd.f32 %v685_v29, %v676_v4  ;;  %v702_v53 = vadd.f32 %v686_v46, %v677_v34  ;;  %v703_v15 = vadd.f32 %v687_v33, %v678_v35 }
  0xfa   :  { %v4406_v54 = vmax.f32 %v696_v47, 0.0  ;;  %v4408_v18 = vmax.f32 %v697_v40, 0.0  ;;  %v4410_v12 = vmax.f32 %v698_v38, 0.0  ;;  %v4412_v56 = vmax.f32 %v699_v41, 0.0 }
  0xfb   :  { %v4414_v57 = vmax.f32 %v700_v52, 0.0  ;;  %v4416_v58 = vmax.f32 %v701_v63, 0.0  ;;  %v4418_v59 = vmax.f32 %v702_v53, 0.0  ;;  %v4420_v60 = vmax.f32 %v703_v15, 0.0 }
  0xfc   :  { %5619 = vst [vmem:[#allocation38_spill] sm:$0xff] %v4406_v54 }
  0xfd   :  { %5620 = vst [vmem:[#allocation39_spill] sm:$0xff] %v4408_v18 }
  0xfe   :  { %5621 = vst [vmem:[#allocation40_spill] sm:$0xff] %v4414_v57 }
  0xff   :  { %5622 = vst [vmem:[#allocation41_spill] sm:$0xff] %v4416_v58 }
 0x100   :  { %5623 = vst [vmem:[#allocation42_spill] sm:$0xff] %v4418_v59 }
 0x101   :  { %5624 = vst [vmem:[#allocation43_spill] sm:$0xff] %v4420_v60 }
 0x102   :  { %4058 = dma.done.wait [#allocation4], 32768 }
 0x103   :  { %4059 = vsyncadd [#allocation4], 4294934528  ;;  %v4422_v0 = vld [vmem:[#allocation2] sm:$0xff]  ;;  %v4424_v22 = vld [vmem:[#allocation2 + $0x8] sm:$0xff] }
 0x104   :  { %5625 = vst [vmem:[#allocation44_spill] sm:$0xff] %v4422_v0  ;;  %v4426_v1 = vld [vmem:[#allocation2 + $0x10] sm:$0xff]  ;;  %v4428_v2 = vld [vmem:[#allocation2 + $0x18] sm:$0xff]  ;;  %v4430_v6 = vld [vmem:[#allocation2 + $0x20] sm:$0xff] }
 0x105   :  { %5626 = vst [vmem:[#allocation45_spill] sm:$0xff] %v4424_v22  ;;  %v4432_v9 = vld [vmem:[#allocation2 + $0x28] sm:$0xff]  ;;  %v4434_v25 = vld [vmem:[#allocation2 + $0x30] sm:$0xff]  ;;  %v4436_v10 = vld [vmem:[#allocation2 + $0x38] sm:$0xff] }
 0x106   :  { %5627 = vst [vmem:[#allocation46_spill] sm:$0xff] %v4426_v1  ;;  %v4438_v11 = vld [vmem:[#allocation2 + $0x40] sm:$0xff]  ;;  %v4440_v30 = vld [vmem:[#allocation2 + $0x48] sm:$0xff]  ;;  %v4442_v31 = vld [vmem:[#allocation2 + $0x50] sm:$0xff] }
 0x107   :  { %5628 = vst [vmem:[#allocation47_spill] sm:$0xff] %v4428_v2  ;;  %v4444_v13 = vld [vmem:[#allocation2 + $0x58] sm:$0xff]  ;;  %v4446_v16 = vld [vmem:[#allocation2 + $0x60] sm:$0xff]  ;;  %v4448_v17 = vld [vmem:[#allocation2 + $0x68] sm:$0xff] }
 0x108   :  { %5629 = vst [vmem:[#allocation48_spill] sm:$0xff] %v4430_v6  ;;  %v4450_v19 = vld [vmem:[#allocation2 + $0x70] sm:$0xff]  ;;  %v4452_v21 = vld [vmem:[#allocation2 + $0x78] sm:$0xff]  ;;  %v4454_v23 = vld [vmem:[#allocation2 + $0x80] sm:$0xff] }
 0x109   :  { %5630 = vst [vmem:[#allocation49_spill] sm:$0xff] %v4432_v9  ;;  %v4456_v37 = vld [vmem:[#allocation2 + $0x88] sm:$0xff]  ;;  %v4458_v24 = vld [vmem:[#allocation2 + $0x90] sm:$0xff]  ;;  %v4460_v26 = vld [vmem:[#allocation2 + $0x98] sm:$0xff] }
 0x10a   :  { %5631 = vst [vmem:[#allocation50_spill] sm:$0xff] %v4434_v25  ;;  %v4462_v39 = vld [vmem:[#allocation2 + $0xa0] sm:$0xff]  ;;  %v4464_v27 = vld [vmem:[#allocation2 + $0xa8] sm:$0xff]  ;;  %v4466_v48 = vld [vmem:[#allocation2 + $0xb0] sm:$0xff] }
 0x10b   :  { %5632 = vst [vmem:[#allocation51_spill] sm:$0xff] %v4436_v10  ;;  %v4468_v51 = vld [vmem:[#allocation2 + $0xb8] sm:$0xff]  ;;  %v4470_v20 = vld [vmem:[#allocation2 + $0xc0] sm:$0xff]  ;;  %v4472_v45 = vld [vmem:[#allocation2 + $0xc8] sm:$0xff] }
 0x10c   :  { %5633 = vst [vmem:[#allocation52_spill] sm:$0xff] %v4438_v11  ;;  %v4474_v7 = vld [vmem:[#allocation2 + $0xd0] sm:$0xff]  ;;  %v4476_v14 = vld [vmem:[#allocation2 + $0xd8] sm:$0xff]  ;;  %v4478_v28 = vld [vmem:[#allocation2 + $0xe0] sm:$0xff] }
 0x10d   :  { %5634 = vst [vmem:[#allocation53_spill] sm:$0xff] %v4440_v30  ;;  %v4480_v50 = vld [vmem:[#allocation2 + $0xe8] sm:$0xff]  ;;  %v4482_v62 = vld [vmem:[#allocation2 + $0xf0] sm:$0xff]  ;;  %v4484_v3 = vld [vmem:[#allocation2 + $0xf8] sm:$0xff] }
 0x10e   :  { %5635 = vst [vmem:[#allocation54_spill] sm:$0xff] %v4442_v31  ;;  %v4486_v5 = vld [vmem:[#allocation2 + $0x100] sm:$0xff]  ;;  %v4488_v32 = vld [vmem:[#allocation2 + $0x108] sm:$0xff]  ;;  %v4490_v61 = vld [vmem:[#allocation2 + $0x110] sm:$0xff] }
 0x10f   :  { %5636 = vst [vmem:[#allocation55_spill] sm:$0xff] %v4444_v13  ;;  %v4492_v4 = vld [vmem:[#allocation2 + $0x118] sm:$0xff]  ;;  %v4494_v34 = vld [vmem:[#allocation2 + $0x120] sm:$0xff]  ;;  %v4496_v35 = vld [vmem:[#allocation2 + $0x128] sm:$0xff] }
 0x110   :  { %5637 = vst [vmem:[#allocation56_spill] sm:$0xff] %v4446_v16  ;;  %v4498_v42 = vld [vmem:[#allocation2 + $0x130] sm:$0xff]  ;;  %v4500_v8 = vld [vmem:[#allocation2 + $0x138] sm:$0xff]  ;;  %v4502_v43 = vld [vmem:[#allocation2 + $0x140] sm:$0xff] }
 0x111   :  { %5638 = vst [vmem:[#allocation57_spill] sm:$0xff] %v4448_v17  ;;  %v4504_v36 = vld [vmem:[#allocation2 + $0x148] sm:$0xff]  ;;  %v4506_v44 = vld [vmem:[#allocation2 + $0x150] sm:$0xff]  ;;  %v4508_v29 = vld [vmem:[#allocation2 + $0x158] sm:$0xff] }
 0x112   :  { %5639 = vst [vmem:[#allocation58_spill] sm:$0xff] %v4450_v19  ;;  %v4510_v46 = vld [vmem:[#allocation2 + $0x160] sm:$0xff]  ;;  %v4512_v33 = vld [vmem:[#allocation2 + $0x168] sm:$0xff]  ;;  %v4514_v47 = vld [vmem:[#allocation2 + $0x170] sm:$0xff] }
 0x113   :  { %5640 = vst [vmem:[#allocation59_spill] sm:$0xff] %v4452_v21  ;;  %v4516_v40 = vld [vmem:[#allocation2 + $0x178] sm:$0xff]  ;;  %v4518_v38 = vld [vmem:[#allocation2 + $0x180] sm:$0xff]  ;;  %v4520_v41 = vld [vmem:[#allocation2 + $0x188] sm:$0xff] }
 0x114   :  { %5641 = vst [vmem:[#allocation60_spill] sm:$0xff] %v4454_v23  ;;  %v4522_v52 = vld [vmem:[#allocation2 + $0x190] sm:$0xff]  ;;  %v4524_v63 = vld [vmem:[#allocation2 + $0x198] sm:$0xff]  ;;  %v4526_v53 = vld [vmem:[#allocation2 + $0x1a0] sm:$0xff] }
 0x115   :  { %5642 = vst [vmem:[#allocation61_spill] sm:$0xff] %v4456_v37  ;;  %v4528_v15 = vld [vmem:[#allocation2 + $0x1a8] sm:$0xff]  ;;  %v4530_v55 = vld [vmem:[#allocation2 + $0x1b0] sm:$0xff]  ;;  %v4532_v49 = vld [vmem:[#allocation2 + $0x1b8] sm:$0xff] }
 0x116   :  { %5643 = vst [vmem:[#allocation62_spill] sm:$0xff] %v4458_v24  ;;  %v4534_v60 = vld [vmem:[#allocation2 + $0x1c0] sm:$0xff]  ;;  %v4536_v59 = vld [vmem:[#allocation2 + $0x1c8] sm:$0xff]  ;;  %v4538_v58 = vld [vmem:[#allocation2 + $0x1d0] sm:$0xff] }
 0x117   :  { %5644 = vst [vmem:[#allocation63_spill] sm:$0xff] %v4460_v26  ;;  %v4540_v57 = vld [vmem:[#allocation2 + $0x1d8] sm:$0xff]  ;;  %v4542_v10 = vld [vmem:[#allocation2 + $0x1e0] sm:$0xff]  ;;  %v4544_v25 = vld [vmem:[#allocation2 + $0x1e8] sm:$0xff] }
 0x118   :  { %5645 = vst [vmem:[#allocation64_spill] sm:$0xff] %v4462_v39  ;;  %v4546_v21 = vld [vmem:[#allocation2 + $0x1f0] sm:$0xff]  ;;  %v4548_v19 = vld [vmem:[#allocation2 + $0x1f8] sm:$0xff]  ;;  %v4574_v9 = vld [vmem:[#allocation2 + $0x260] sm:$0xff] }
 0x119   :  { %5646 = vst [vmem:[#allocation65_spill] sm:$0xff] %v4464_v27  ;;  %v4576_v6 = vld [vmem:[#allocation2 + $0x268] sm:$0xff]  ;;  %v4578_v17 = vld [vmem:[#allocation2 + $0x270] sm:$0xff]  ;;  %v4580_v16 = vld [vmem:[#allocation2 + $0x278] sm:$0xff] }
 0x11a   :  { %5647 = vst [vmem:[#allocation66_spill] sm:$0xff] %v4466_v48  ;;  %v4552_v48 = vld [vmem:[#allocation2 + $0x208] sm:$0xff]  ;;  %v4582_v27 = vld [vmem:[#allocation2 + $0x280] sm:$0xff]  ;;  %v4588_v39 = vld [vmem:[#allocation2 + $0x298] sm:$0xff] }
 0x11b   :  { %5648 = vst [vmem:[#allocation67_spill] sm:$0xff] %v4468_v51  ;;  %v4550_v51 = vld [vmem:[#allocation2 + $0x200] sm:$0xff]  ;;  %v4640_v1 = vld [vmem:[#allocation2 + $0x368] sm:$0xff]  ;;  %v4642_v13 = vld [vmem:[#allocation2 + $0x370] sm:$0xff] }
 0x11c   :  { %5649 = vst [vmem:[#allocation68_spill] sm:$0xff] %v4470_v20  ;;  %v4638_v2 = vld [vmem:[#allocation2 + $0x360] sm:$0xff]  ;;  %v4652_v31 = vld [vmem:[#allocation2 + $0x398] sm:$0xff]  ;;  %v4656_v24 = vld [vmem:[#allocation2 + $0x3a8] sm:$0xff] }
 0x11d   :  { %5650 = vst [vmem:[#allocation69_spill] sm:$0xff] %v4472_v45  ;;  %v4654_v26 = vld [vmem:[#allocation2 + $0x3a0] sm:$0xff]  ;;  %v4860_v54 = vld [vmem:[#allocation2 + $0x6d8] sm:$0xff] }
 0x11e   :  { %5651 = vst [vmem:[#allocation70_spill] sm:$0xff] %v4474_v7  ;;  %v4668_v7 = vld [vmem:[#allocation2 + $0x3d8] sm:$0xff]  ;;  %v4814_v18 = vld [vmem:[#allocation2 + $0x620] sm:$0xff] }
 0x11f   :  { %5652 = vst [vmem:[#allocation71_spill] sm:$0xff] %v4476_v14  ;;  %v4658_v14 = vld [vmem:[#allocation2 + $0x3b0] sm:$0xff]  ;;  %v4876_v22 = vld [vmem:[#allocation2 + $0x718] sm:$0xff] }
 0x120   :  { %5653 = vst [vmem:[#allocation72_spill] sm:$0xff] %v4478_v28  ;;  %v4592_v28 = vld [vmem:[#allocation2 + $0x2a8] sm:$0xff]  ;;  %v4892_v0 = vld [vmem:[#allocation2 + $0x758] sm:$0xff] }
 0x121   :  { %5654 = vst [vmem:[#allocation73_spill] sm:$0xff] %v4480_v50  ;;  %v4590_v50 = vld [vmem:[#allocation2 + $0x2a0] sm:$0xff]  ;;  %v4908_v30 = vld [vmem:[#allocation2 + $0x798] sm:$0xff] }
 0x122   :  { %5655 = vst [vmem:[#allocation74_spill] sm:$0xff] %v4482_v62  ;;  %v4556_v62 = vld [vmem:[#allocation2 + $0x218] sm:$0xff] }
 0x123   :  { %5656 = vst [vmem:[#allocation75_spill] sm:$0xff] %v4484_v3  ;;  %v4554_v3 = vld [vmem:[#allocation2 + $0x210] sm:$0xff]  ;;  %v4924_v11 = vld [vmem:[#allocation2 + $0x7d8] sm:$0xff] }
 0x124   :  { %5657 = vst [vmem:[#allocation76_spill] sm:$0xff] %v4490_v61  ;;  %v4672_v61 = vld [vmem:[#allocation2 + $0x3e8] sm:$0xff] }
 0x125   :  { %5658 = vst [vmem:[#allocation77_spill] sm:$0xff] %v4492_v4  ;;  %v4670_v4 = vld [vmem:[#allocation2 + $0x3e0] sm:$0xff] }
 0x126   :  { %5659 = vst [vmem:[#allocation78_spill] sm:$0xff] %v4494_v34  ;;  %v4596_v34 = vld [vmem:[#allocation2 + $0x2b8] sm:$0xff] }
 0x127   :  { %5660 = vst [vmem:[#allocation79_spill] sm:$0xff] %v4496_v35  ;;  %v4594_v35 = vld [vmem:[#allocation2 + $0x2b0] sm:$0xff] }
 0x128   :  { %5661 = vst [vmem:[#allocation80_spill] sm:$0xff] %v4498_v42  ;;  %v4560_v42 = vld [vmem:[#allocation2 + $0x228] sm:$0xff] }
 0x129   :  { %5662 = vst [vmem:[#allocation81_spill] sm:$0xff] %v4500_v8  ;;  %v4558_v8 = vld [vmem:[#allocation2 + $0x220] sm:$0xff] }
 0x12a   :  { %5663 = vst [vmem:[#allocation82_spill] sm:$0xff] %v4506_v44  ;;  %v4684_v44 = vld [vmem:[#allocation2 + $0x418] sm:$0xff] }
 0x12b   :  { %5664 = vst [vmem:[#allocation83_spill] sm:$0xff] %v4508_v29  ;;  %v4674_v29 = vld [vmem:[#allocation2 + $0x3f0] sm:$0xff] }
 0x12c   :  { %5665 = vst [vmem:[#allocation84_spill] sm:$0xff] %v4510_v46  ;;  %v4604_v46 = vld [vmem:[#allocation2 + $0x2d8] sm:$0xff] }
 0x12d   :  { %5666 = vst [vmem:[#allocation85_spill] sm:$0xff] %v4512_v33  ;;  %v4598_v33 = vld [vmem:[#allocation2 + $0x2c0] sm:$0xff] }
 0x12e   :  { %5667 = vst [vmem:[#allocation86_spill] sm:$0xff] %v4514_v47  ;;  %v4564_v47 = vld [vmem:[#allocation2 + $0x238] sm:$0xff] }
 0x12f   :  { %5668 = vst [vmem:[#allocation87_spill] sm:$0xff] %v4516_v40  ;;  %v4562_v40 = vld [vmem:[#allocation2 + $0x230] sm:$0xff] }
 0x130   :  { %5669 = vst [vmem:[#allocation88_spill] sm:$0xff] %v4522_v52  ;;  %v4688_v52 = vld [vmem:[#allocation2 + $0x428] sm:$0xff] }
 0x131   :  { %5670 = vst [vmem:[#allocation89_spill] sm:$0xff] %v4524_v63  ;;  %v4686_v63 = vld [vmem:[#allocation2 + $0x420] sm:$0xff] }
 0x132   :  { %5671 = vst [vmem:[#allocation90_spill] sm:$0xff] %v4526_v53  ;;  %v4608_v53 = vld [vmem:[#allocation2 + $0x2e8] sm:$0xff] }
 0x133   :  { %5672 = vst [vmem:[#allocation91_spill] sm:$0xff] %v4528_v15  ;;  %v4606_v15 = vld [vmem:[#allocation2 + $0x2e0] sm:$0xff] }
 0x134   :  { %5673 = vst [vmem:[#allocation92_spill] sm:$0xff] %v4530_v55  ;;  %v4568_v55 = vld [vmem:[#allocation2 + $0x248] sm:$0xff] }
 0x135   :  { %5674 = vst [vmem:[#allocation93_spill] sm:$0xff] %v4532_v49  ;;  %v4566_v49 = vld [vmem:[#allocation2 + $0x240] sm:$0xff] }
 0x136   :  { %5675 = vst [vmem:[#allocation94_spill] sm:$0xff] %v4538_v58  ;;  %v4700_v58 = vld [vmem:[#allocation2 + $0x458] sm:$0xff] }
 0x137   :  { %5676 = vst [vmem:[#allocation95_spill] sm:$0xff] %v4540_v57  ;;  %v4690_v57 = vld [vmem:[#allocation2 + $0x430] sm:$0xff] }
 0x138   :  { %5677 = vst [vmem:[#allocation96_spill] sm:$0xff] %v4542_v10  ;;  %v4612_v10 = vld [vmem:[#allocation2 + $0x2f8] sm:$0xff] }
 0x139   :  { %5678 = vst [vmem:[#allocation97_spill] sm:$0xff] %v4544_v25  ;;  %v4610_v25 = vld [vmem:[#allocation2 + $0x2f0] sm:$0xff] }
 0x13a   :  { %5679 = vst [vmem:[#allocation98_spill] sm:$0xff] %v4546_v21  ;;  %v4572_v21 = vld [vmem:[#allocation2 + $0x258] sm:$0xff] }
 0x13b   :  { %5680 = vst [vmem:[#allocation99_spill] sm:$0xff] %v4548_v19  ;;  %v4570_v19 = vld [vmem:[#allocation2 + $0x250] sm:$0xff] }
 0x13c   :  { %5681 = vst [vmem:[#allocation100_spill] sm:$0xff] %v4554_v3  ;;  %v4716_v3 = vld [vmem:[#allocation2 + $0x498] sm:$0xff] }
 0x13d   :  { %5682 = vst [vmem:[#allocation101_spill] sm:$0xff] %v4556_v62  ;;  %v4702_v62 = vld [vmem:[#allocation2 + $0x460] sm:$0xff] }
 0x13e   :  { %5683 = vst [vmem:[#allocation102_spill] sm:$0xff] %v4558_v8  ;;  %v4620_v8 = vld [vmem:[#allocation2 + $0x318] sm:$0xff] }
 0x13f   :  { %5684 = vst [vmem:[#allocation103_spill] sm:$0xff] %v4560_v42  ;;  %v4614_v42 = vld [vmem:[#allocation2 + $0x300] sm:$0xff] }
 0x140   :  { %5685 = vst [vmem:[#allocation104_spill] sm:$0xff] %v4562_v40  ;;  %v4584_v40 = vld [vmem:[#allocation2 + $0x288] sm:$0xff] }
 0x141   :  { %5686 = vst [vmem:[#allocation105_spill] sm:$0xff] %v4564_v47  ;;  %v4586_v47 = vld [vmem:[#allocation2 + $0x290] sm:$0xff] }
 0x142   :  { %5687 = vst [vmem:[#allocation106_spill] sm:$0xff] %v4570_v19  ;;  %v4732_v19 = vld [vmem:[#allocation2 + $0x4d8] sm:$0xff] }
 0x143   :  { %5688 = vst [vmem:[#allocation107_spill] sm:$0xff] %v4572_v21  ;;  %v4718_v21 = vld [vmem:[#allocation2 + $0x4a0] sm:$0xff] }
 0x144   :  { %5689 = vst [vmem:[#allocation108_spill] sm:$0xff] %v4574_v9  ;;  %v4624_v9 = vld [vmem:[#allocation2 + $0x328] sm:$0xff] }
 0x145   :  { %5690 = vst [vmem:[#allocation109_spill] sm:$0xff] %v4576_v6  ;;  %v4622_v6 = vld [vmem:[#allocation2 + $0x320] sm:$0xff] }
 0x146   :  { %5691 = vst [vmem:[#allocation110_spill] sm:$0xff] %v4578_v17  ;;  %v4600_v17 = vld [vmem:[#allocation2 + $0x2c8] sm:$0xff] }
 0x147   :  { %5692 = vst [vmem:[#allocation111_spill] sm:$0xff] %v4580_v16  ;;  %v4602_v16 = vld [vmem:[#allocation2 + $0x2d0] sm:$0xff] }
 0x148   :  { %5693 = vst [vmem:[#allocation112_spill] sm:$0xff] %v4586_v47  ;;  %v4748_v47 = vld [vmem:[#allocation2 + $0x518] sm:$0xff] }
 0x149   :  { %5694 = vst [vmem:[#allocation113_spill] sm:$0xff] %v4588_v39  ;;  %v4734_v39 = vld [vmem:[#allocation2 + $0x4e0] sm:$0xff] }
 0x14a   :  { %5695 = vst [vmem:[#allocation114_spill] sm:$0xff] %v4590_v50  ;;  %v4628_v50 = vld [vmem:[#allocation2 + $0x338] sm:$0xff] }
 0x14b   :  { %5696 = vst [vmem:[#allocation115_spill] sm:$0xff] %v4592_v28  ;;  %v4626_v28 = vld [vmem:[#allocation2 + $0x330] sm:$0xff] }
 0x14c   :  { %5697 = vst [vmem:[#allocation116_spill] sm:$0xff] %v4594_v35  ;;  %v4616_v35 = vld [vmem:[#allocation2 + $0x308] sm:$0xff] }
 0x14d   :  { %5698 = vst [vmem:[#allocation117_spill] sm:$0xff] %v4596_v34  ;;  %v4618_v34 = vld [vmem:[#allocation2 + $0x310] sm:$0xff] }
 0x14e   :  { %5699 = vst [vmem:[#allocation118_spill] sm:$0xff] %v4602_v16  ;;  %v4764_v16 = vld [vmem:[#allocation2 + $0x558] sm:$0xff] }
 0x14f   :  { %5700 = vst [vmem:[#allocation119_spill] sm:$0xff] %v4604_v46  ;;  %v4750_v46 = vld [vmem:[#allocation2 + $0x520] sm:$0xff] }
 0x150   :  { %5701 = vst [vmem:[#allocation120_spill] sm:$0xff] %v4606_v15  ;;  %v4636_v15 = vld [vmem:[#allocation2 + $0x358] sm:$0xff] }
 0x151   :  { %5702 = vst [vmem:[#allocation121_spill] sm:$0xff] %v4608_v53  ;;  %v4630_v53 = vld [vmem:[#allocation2 + $0x340] sm:$0xff] }
 0x152   :  { %5703 = vst [vmem:[#allocation122_spill] sm:$0xff] %v4610_v25  ;;  %v4632_v25 = vld [vmem:[#allocation2 + $0x348] sm:$0xff] }
 0x153   :  { %5704 = vst [vmem:[#allocation123_spill] sm:$0xff] %v4612_v10  ;;  %v4634_v10 = vld [vmem:[#allocation2 + $0x350] sm:$0xff] }
 0x154   :  { %5705 = vst [vmem:[#allocation124_spill] sm:$0xff] %v4618_v34  ;;  %v4780_v34 = vld [vmem:[#allocation2 + $0x598] sm:$0xff] }
 0x155   :  { %5706 = vst [vmem:[#allocation125_spill] sm:$0xff] %v4620_v8  ;;  %v4766_v8 = vld [vmem:[#allocation2 + $0x560] sm:$0xff] }
 0x156   :  { %5707 = vst [vmem:[#allocation126_spill] sm:$0xff] %v4622_v6  ;;  %v4644_v6 = vld [vmem:[#allocation2 + $0x378] sm:$0xff] }
 0x157   :  { %5708 = vst [vmem:[#allocation127_spill] sm:$0xff] %v4624_v9  ;;  %v4646_v9 = vld [vmem:[#allocation2 + $0x380] sm:$0xff] }
 0x158   :  { %5709 = vst [vmem:[#allocation128_spill] sm:$0xff] %v4626_v28  ;;  %v4648_v28 = vld [vmem:[#allocation2 + $0x388] sm:$0xff] }
 0x159   :  { %5710 = vst [vmem:[#allocation129_spill] sm:$0xff] %v4628_v50  ;;  %v4650_v50 = vld [vmem:[#allocation2 + $0x390] sm:$0xff] }
 0x15a   :  { %5711 = vst [vmem:[#allocation130_spill] sm:$0xff] %v4634_v10  ;;  %v4796_v10 = vld [vmem:[#allocation2 + $0x5d8] sm:$0xff] }
 0x15b   :  { %5712 = vst [vmem:[#allocation131_spill] sm:$0xff] %v4636_v15  ;;  %v4782_v15 = vld [vmem:[#allocation2 + $0x5a0] sm:$0xff] }
 0x15c   :  { %5713 = vst [vmem:[#allocation132_spill] sm:$0xff] %v4638_v2  ;;  %v4660_v2 = vld [vmem:[#allocation2 + $0x3b8] sm:$0xff] }
 0x15d   :  { %5714 = vst [vmem:[#allocation133_spill] sm:$0xff] %v4640_v1  ;;  %v4662_v1 = vld [vmem:[#allocation2 + $0x3c0] sm:$0xff] }
 0x15e   :  { %5715 = vst [vmem:[#allocation134_spill] sm:$0xff] %v4642_v13  ;;  %v4664_v13 = vld [vmem:[#allocation2 + $0x3c8] sm:$0xff] }
 0x15f   :  { %5716 = vst [vmem:[#allocation135_spill] sm:$0xff] %v4644_v6  ;;  %v4666_v6 = vld [vmem:[#allocation2 + $0x3d0] sm:$0xff] }
 0x160   :  { %5717 = vst [vmem:[#allocation136_spill] sm:$0xff] %v4650_v50  ;;  %v4812_v50 = vld [vmem:[#allocation2 + $0x618] sm:$0xff] }
 0x161   :  { %5718 = vst [vmem:[#allocation137_spill] sm:$0xff] %v4652_v31  ;;  %v4798_v31 = vld [vmem:[#allocation2 + $0x5e0] sm:$0xff] }
 0x162   :  { %5719 = vst [vmem:[#allocation138_spill] sm:$0xff] %v4654_v26  ;;  %v4676_v26 = vld [vmem:[#allocation2 + $0x3f8] sm:$0xff] }
 0x163   :  { %5720 = vst [vmem:[#allocation139_spill] sm:$0xff] %v4656_v24  ;;  %v4678_v24 = vld [vmem:[#allocation2 + $0x400] sm:$0xff] }
 0x164   :  { %5721 = vst [vmem:[#allocation140_spill] sm:$0xff] %v4658_v14  ;;  %v4680_v14 = vld [vmem:[#allocation2 + $0x408] sm:$0xff] }
 0x165   :  { %5722 = vst [vmem:[#allocation141_spill] sm:$0xff] %v4660_v2  ;;  %v4682_v2 = vld [vmem:[#allocation2 + $0x410] sm:$0xff] }
 0x166   :  { %5723 = vst [vmem:[#allocation142_spill] sm:$0xff] %v4666_v6  ;;  %v4846_v6 = vld [vmem:[#allocation2 + $0x6a0] sm:$0xff] }
 0x167   :  { %5724 = vst [vmem:[#allocation143_spill] sm:$0xff] %v4668_v7  ;;  %v4844_v7 = vld [vmem:[#allocation2 + $0x698] sm:$0xff] }
 0x168   :  { %5725 = vst [vmem:[#allocation144_spill] sm:$0xff] %v4670_v4  ;;  %v4692_v4 = vld [vmem:[#allocation2 + $0x438] sm:$0xff] }
 0x169   :  { %5726 = vst [vmem:[#allocation145_spill] sm:$0xff] %v4672_v61  ;;  %v4694_v61 = vld [vmem:[#allocation2 + $0x440] sm:$0xff] }
 0x16a   :  { %5727 = vst [vmem:[#allocation146_spill] sm:$0xff] %v4674_v29  ;;  %v4696_v29 = vld [vmem:[#allocation2 + $0x448] sm:$0xff] }
 0x16b   :  { %5728 = vst [vmem:[#allocation147_spill] sm:$0xff] %v4676_v26  ;;  %v4698_v26 = vld [vmem:[#allocation2 + $0x450] sm:$0xff] }
 0x16c   :  { %5729 = vst [vmem:[#allocation148_spill] sm:$0xff] %v4678_v24  ;;  %v4830_v24 = vld [vmem:[#allocation2 + $0x660] sm:$0xff] }
 0x16d   :  { %5730 = vst [vmem:[#allocation149_spill] sm:$0xff] %v4680_v14  ;;  %v4828_v14 = vld [vmem:[#allocation2 + $0x658] sm:$0xff] }
 0x16e   :  { %5731 = vst [vmem:[#allocation150_spill] sm:$0xff] %v4682_v2  ;;  %v4704_v2 = vld [vmem:[#allocation2 + $0x468] sm:$0xff] }
 0x16f   :  { %5732 = vst [vmem:[#allocation151_spill] sm:$0xff] %v4684_v44  ;;  %v4706_v44 = vld [vmem:[#allocation2 + $0x470] sm:$0xff] }
 0x170   :  { %5733 = vst [vmem:[#allocation152_spill] sm:$0xff] %v4686_v63  ;;  %v4708_v63 = vld [vmem:[#allocation2 + $0x478] sm:$0xff] }
 0x171   :  { %5734 = vst [vmem:[#allocation153_spill] sm:$0xff] %v4688_v52  ;;  %v4710_v52 = vld [vmem:[#allocation2 + $0x480] sm:$0xff] }
 0x172   :  { %5735 = vst [vmem:[#allocation154_spill] sm:$0xff] %v4690_v57  ;;  %v4712_v57 = vld [vmem:[#allocation2 + $0x488] sm:$0xff] }
 0x173   :  { %5736 = vst [vmem:[#allocation155_spill] sm:$0xff] %v4692_v4  ;;  %v4714_v4 = vld [vmem:[#allocation2 + $0x490] sm:$0xff] }
 0x174   :  { %5737 = vst [vmem:[#allocation156_spill] sm:$0xff] %v4694_v61  ;;  %v4878_v61 = vld [vmem:[#allocation2 + $0x720] sm:$0xff] }
 0x175   :  { %5738 = vst [vmem:[#allocation157_spill] sm:$0xff] %v4696_v29  ;;  %v4862_v29 = vld [vmem:[#allocation2 + $0x6e0] sm:$0xff] }
 0x176   :  { %5739 = vst [vmem:[#allocation158_spill] sm:$0xff] %v4698_v26  ;;  %v4720_v26 = vld [vmem:[#allocation2 + $0x4a8] sm:$0xff] }
 0x177   :  { %5740 = vst [vmem:[#allocation159_spill] sm:$0xff] %v4700_v58  ;;  %v4722_v58 = vld [vmem:[#allocation2 + $0x4b0] sm:$0xff] }
 0x178   :  { %5741 = vst [vmem:[#allocation160_spill] sm:$0xff] %v4702_v62  ;;  %v4724_v62 = vld [vmem:[#allocation2 + $0x4b8] sm:$0xff] }
 0x179   :  { %5742 = vst [vmem:[#allocation161_spill] sm:$0xff] %v4704_v2  ;;  %v4726_v2 = vld [vmem:[#allocation2 + $0x4c0] sm:$0xff] }
 0x17a   :  { %5743 = vst [vmem:[#allocation162_spill] sm:$0xff] %v4706_v44  ;;  %v4728_v44 = vld [vmem:[#allocation2 + $0x4c8] sm:$0xff] }
 0x17b   :  { %5744 = vst [vmem:[#allocation163_spill] sm:$0xff] %v4708_v63  ;;  %v4730_v63 = vld [vmem:[#allocation2 + $0x4d0] sm:$0xff] }
 0x17c   :  { %5745 = vst [vmem:[#allocation164_spill] sm:$0xff] %v4710_v52  ;;  %v4910_v52 = vld [vmem:[#allocation2 + $0x7a0] sm:$0xff] }
 0x17d   :  { %5746 = vst [vmem:[#allocation165_spill] sm:$0xff] %v4712_v57  ;;  %v4894_v57 = vld [vmem:[#allocation2 + $0x760] sm:$0xff] }
 0x17e   :  { %5747 = vst [vmem:[#allocation166_spill] sm:$0xff] %v4714_v4  ;;  %v4736_v4 = vld [vmem:[#allocation2 + $0x4e8] sm:$0xff] }
 0x17f   :  { %5748 = vst [vmem:[#allocation167_spill] sm:$0xff] %v4716_v3  ;;  %v4738_v3 = vld [vmem:[#allocation2 + $0x4f0] sm:$0xff] }
 0x180   :  { %5749 = vst [vmem:[#allocation168_spill] sm:$0xff] %v4718_v21  ;;  %v4740_v21 = vld [vmem:[#allocation2 + $0x4f8] sm:$0xff] }
 0x181   :  { %5750 = vst [vmem:[#allocation169_spill] sm:$0xff] %v4720_v26  ;;  %v4742_v26 = vld [vmem:[#allocation2 + $0x500] sm:$0xff] }
 0x182   :  { %5751 = vst [vmem:[#allocation170_spill] sm:$0xff] %v4722_v58  ;;  %v4744_v58 = vld [vmem:[#allocation2 + $0x508] sm:$0xff] }
 0x183   :  { %5752 = vst [vmem:[#allocation171_spill] sm:$0xff] %v4724_v62  ;;  %v4746_v62 = vld [vmem:[#allocation2 + $0x510] sm:$0xff] }
 0x184   :  { %5753 = vst [vmem:[#allocation172_spill] sm:$0xff] %v4726_v2 }
 0x185   :  { %5754 = vst [vmem:[#allocation173_spill] sm:$0xff] %v4728_v44  ;;  %v4926_v44 = vld [vmem:[#allocation2 + $0x7e0] sm:$0xff] }
 0x186   :  { %5755 = vst [vmem:[#allocation174_spill] sm:$0xff] %v4730_v63  ;;  %v4752_v63 = vld [vmem:[#allocation2 + $0x528] sm:$0xff] }
 0x187   :  { %5756 = vst [vmem:[#allocation175_spill] sm:$0xff] %v4732_v19  ;;  %v4754_v19 = vld [vmem:[#allocation2 + $0x530] sm:$0xff] }
 0x188   :  { %5757 = vst [vmem:[#allocation176_spill] sm:$0xff] %v4734_v39  ;;  %v4756_v39 = vld [vmem:[#allocation2 + $0x538] sm:$0xff] }
 0x189   :  { %5758 = vst [vmem:[#allocation177_spill] sm:$0xff] %v4736_v4  ;;  %v4758_v4 = vld [vmem:[#allocation2 + $0x540] sm:$0xff] }
 0x18a   :  { %5759 = vst [vmem:[#allocation178_spill] sm:$0xff] %v4738_v3  ;;  %v4760_v3 = vld [vmem:[#allocation2 + $0x548] sm:$0xff] }
 0x18b   :  { %5760 = vst [vmem:[#allocation179_spill] sm:$0xff] %v4740_v21  ;;  %v4762_v21 = vld [vmem:[#allocation2 + $0x550] sm:$0xff] }
 0x18c   :  { %5761 = vst [vmem:[#allocation180_spill] sm:$0xff] %v4742_v26 }
 0x18d   :  { %5762 = vst [vmem:[#allocation181_spill] sm:$0xff] %v4744_v58 }
 0x18e   :  { %5763 = vst [vmem:[#allocation182_spill] sm:$0xff] %v4746_v62  ;;  %v4768_v62 = vld [vmem:[#allocation2 + $0x568] sm:$0xff] }
 0x18f   :  { %5764 = vst [vmem:[#allocation183_spill] sm:$0xff] %v4748_v47  ;;  %v4770_v47 = vld [vmem:[#allocation2 + $0x570] sm:$0xff] }
 0x190   :  { %5765 = vst [vmem:[#allocation184_spill] sm:$0xff] %v4750_v46  ;;  %v4772_v46 = vld [vmem:[#allocation2 + $0x578] sm:$0xff] }
 0x191   :  { %5766 = vst [vmem:[#allocation185_spill] sm:$0xff] %v4752_v63  ;;  %v4774_v63 = vld [vmem:[#allocation2 + $0x580] sm:$0xff] }
 0x192   :  { %5767 = vst [vmem:[#allocation186_spill] sm:$0xff] %v4754_v19  ;;  %v4776_v19 = vld [vmem:[#allocation2 + $0x588] sm:$0xff] }
 0x193   :  { %5768 = vst [vmem:[#allocation187_spill] sm:$0xff] %v4756_v39  ;;  %v4778_v39 = vld [vmem:[#allocation2 + $0x590] sm:$0xff] }
 0x194   :  { %5769 = vst [vmem:[#allocation188_spill] sm:$0xff] %v4762_v21  ;;  %v4784_v21 = vld [vmem:[#allocation2 + $0x5a8] sm:$0xff] }
 0x195   :  { %5770 = vst [vmem:[#allocation189_spill] sm:$0xff] %v4764_v16  ;;  %v4786_v16 = vld [vmem:[#allocation2 + $0x5b0] sm:$0xff] }
 0x196   :  { %5771 = vst [vmem:[#allocation190_spill] sm:$0xff] %v4766_v8  ;;  %v4788_v8 = vld [vmem:[#allocation2 + $0x5b8] sm:$0xff] }
 0x197   :  { %5772 = vst [vmem:[#allocation191_spill] sm:$0xff] %v4768_v62  ;;  %v4790_v62 = vld [vmem:[#allocation2 + $0x5c0] sm:$0xff] }
 0x198   :  { %5773 = vst [vmem:[#allocation192_spill] sm:$0xff] %v4770_v47  ;;  %v4792_v47 = vld [vmem:[#allocation2 + $0x5c8] sm:$0xff] }
 0x199   :  { %5774 = vst [vmem:[#allocation193_spill] sm:$0xff] %v4772_v46  ;;  %v4794_v46 = vld [vmem:[#allocation2 + $0x5d0] sm:$0xff] }
 0x19a   :  { %5775 = vst [vmem:[#allocation194_spill] sm:$0xff] %v4778_v39  ;;  %v4800_v39 = vld [vmem:[#allocation2 + $0x5e8] sm:$0xff] }
 0x19b   :  { %5776 = vst [vmem:[#allocation195_spill] sm:$0xff] %v4780_v34  ;;  %v4802_v34 = vld [vmem:[#allocation2 + $0x5f0] sm:$0xff] }
 0x19c   :  { %5777 = vst [vmem:[#allocation196_spill] sm:$0xff] %v4782_v15  ;;  %v4804_v15 = vld [vmem:[#allocation2 + $0x5f8] sm:$0xff] }
 0x19d   :  { %5778 = vst [vmem:[#allocation197_spill] sm:$0xff] %v4784_v21  ;;  %v4806_v21 = vld [vmem:[#allocation2 + $0x600] sm:$0xff] }
 0x19e   :  { %5779 = vst [vmem:[#allocation198_spill] sm:$0xff] %v4786_v16  ;;  %v4808_v16 = vld [vmem:[#allocation2 + $0x608] sm:$0xff] }
 0x19f   :  { %5780 = vst [vmem:[#allocation199_spill] sm:$0xff] %v4788_v8  ;;  %v4810_v8 = vld [vmem:[#allocation2 + $0x610] sm:$0xff] }
 0x1a0   :  { %5781 = vst [vmem:[#allocation200_spill] sm:$0xff] %v4794_v46  ;;  %v4816_v46 = vld [vmem:[#allocation2 + $0x628] sm:$0xff] }
 0x1a1   :  { %5782 = vst [vmem:[#allocation201_spill] sm:$0xff] %v4796_v10  ;;  %v4818_v10 = vld [vmem:[#allocation2 + $0x630] sm:$0xff] }
 0x1a2   :  { %5783 = vst [vmem:[#allocation202_spill] sm:$0xff] %v4798_v31  ;;  %v4820_v31 = vld [vmem:[#allocation2 + $0x638] sm:$0xff] }
 0x1a3   :  { %5784 = vst [vmem:[#allocation203_spill] sm:$0xff] %v4800_v39  ;;  %v4822_v39 = vld [vmem:[#allocation2 + $0x640] sm:$0xff] }
 0x1a4   :  { %5785 = vst [vmem:[#allocation204_spill] sm:$0xff] %v4802_v34  ;;  %v4824_v34 = vld [vmem:[#allocation2 + $0x648] sm:$0xff] }
 0x1a5   :  { %5786 = vst [vmem:[#allocation205_spill] sm:$0xff] %v4804_v15  ;;  %v4826_v15 = vld [vmem:[#allocation2 + $0x650] sm:$0xff] }
 0x1a6   :  { %5787 = vst [vmem:[#allocation206_spill] sm:$0xff] %v4810_v8  ;;  %v4832_v8 = vld [vmem:[#allocation2 + $0x668] sm:$0xff] }
 0x1a7   :  { %5788 = vst [vmem:[#allocation207_spill] sm:$0xff] %v4812_v50  ;;  %v4834_v50 = vld [vmem:[#allocation2 + $0x670] sm:$0xff] }
 0x1a8   :  { %5789 = vst [vmem:[#allocation208_spill] sm:$0xff] %v4814_v18  ;;  %v4836_v18 = vld [vmem:[#allocation2 + $0x678] sm:$0xff] }
 0x1a9   :  { %5790 = vst [vmem:[#allocation209_spill] sm:$0xff] %v4816_v46  ;;  %v4838_v46 = vld [vmem:[#allocation2 + $0x680] sm:$0xff] }
 0x1aa   :  { %5791 = vst [vmem:[#allocation210_spill] sm:$0xff] %v4818_v10  ;;  %v4840_v10 = vld [vmem:[#allocation2 + $0x688] sm:$0xff] }
 0x1ab   :  { %5792 = vst [vmem:[#allocation211_spill] sm:$0xff] %v4820_v31  ;;  %v4842_v31 = vld [vmem:[#allocation2 + $0x690] sm:$0xff] }
 0x1ac   :  { %5793 = vst [vmem:[#allocation212_spill] sm:$0xff] %v4826_v15  ;;  %v4848_v15 = vld [vmem:[#allocation2 + $0x6a8] sm:$0xff] }
 0x1ad   :  { %5794 = vst [vmem:[#allocation213_spill] sm:$0xff] %v4828_v14  ;;  %v4850_v14 = vld [vmem:[#allocation2 + $0x6b0] sm:$0xff] }
 0x1ae   :  { %5795 = vst [vmem:[#allocation214_spill] sm:$0xff] %v4830_v24  ;;  %v4852_v24 = vld [vmem:[#allocation2 + $0x6b8] sm:$0xff] }
 0x1af   :  { %5796 = vst [vmem:[#allocation215_spill] sm:$0xff] %v4832_v8  ;;  %v4854_v8 = vld [vmem:[#allocation2 + $0x6c0] sm:$0xff] }
 0x1b0   :  { %5797 = vst [vmem:[#allocation216_spill] sm:$0xff] %v4834_v50  ;;  %v4856_v50 = vld [vmem:[#allocation2 + $0x6c8] sm:$0xff] }
 0x1b1   :  { %5798 = vst [vmem:[#allocation217_spill] sm:$0xff] %v4836_v18  ;;  %v4858_v18 = vld [vmem:[#allocation2 + $0x6d0] sm:$0xff] }
 0x1b2   :  { %5799 = vst [vmem:[#allocation218_spill] sm:$0xff] %v4842_v31  ;;  %v4864_v31 = vld [vmem:[#allocation2 + $0x6e8] sm:$0xff] }
 0x1b3   :  { %5800 = vst [vmem:[#allocation219_spill] sm:$0xff] %v4844_v7  ;;  %v4866_v7 = vld [vmem:[#allocation2 + $0x6f0] sm:$0xff] }
 0x1b4   :  { %5801 = vst [vmem:[#allocation220_spill] sm:$0xff] %v4846_v6  ;;  %v4868_v6 = vld [vmem:[#allocation2 + $0x6f8] sm:$0xff] }
 0x1b5   :  { %5802 = vst [vmem:[#allocation221_spill] sm:$0xff] %v4848_v15  ;;  %v4870_v15 = vld [vmem:[#allocation2 + $0x700] sm:$0xff] }
 0x1b6   :  { %5803 = vst [vmem:[#allocation222_spill] sm:$0xff] %v4850_v14  ;;  %v4872_v14 = vld [vmem:[#allocation2 + $0x708] sm:$0xff] }
 0x1b7   :  { %5804 = vst [vmem:[#allocation223_spill] sm:$0xff] %v4852_v24  ;;  %v4874_v24 = vld [vmem:[#allocation2 + $0x710] sm:$0xff] }
 0x1b8   :  { %5805 = vst [vmem:[#allocation224_spill] sm:$0xff] %v4858_v18  ;;  %v4880_v18 = vld [vmem:[#allocation2 + $0x728] sm:$0xff] }
 0x1b9   :  { %5806 = vst [vmem:[#allocation225_spill] sm:$0xff] %v4860_v54  ;;  %v4882_v54 = vld [vmem:[#allocation2 + $0x730] sm:$0xff] }
 0x1ba   :  { %5807 = vst [vmem:[#allocation226_spill] sm:$0xff] %v4862_v29  ;;  %v4884_v29 = vld [vmem:[#allocation2 + $0x738] sm:$0xff] }
 0x1bb   :  { %5808 = vst [vmem:[#allocation227_spill] sm:$0xff] %v4864_v31  ;;  %v4886_v31 = vld [vmem:[#allocation2 + $0x740] sm:$0xff] }
 0x1bc   :  { %5809 = vst [vmem:[#allocation228_spill] sm:$0xff] %v4866_v7  ;;  %v4888_v7 = vld [vmem:[#allocation2 + $0x748] sm:$0xff] }
 0x1bd   :  { %5810 = vst [vmem:[#allocation229_spill] sm:$0xff] %v4868_v6  ;;  %v4890_v6 = vld [vmem:[#allocation2 + $0x750] sm:$0xff] }
 0x1be   :  { %5811 = vst [vmem:[#allocation230_spill] sm:$0xff] %v4874_v24  ;;  %v4896_v24 = vld [vmem:[#allocation2 + $0x768] sm:$0xff] }
 0x1bf   :  { %5812 = vst [vmem:[#allocation231_spill] sm:$0xff] %v4876_v22  ;;  %v4898_v22 = vld [vmem:[#allocation2 + $0x770] sm:$0xff] }
 0x1c0   :  { %5813 = vst [vmem:[#allocation232_spill] sm:$0xff] %v4878_v61  ;;  %v4900_v61 = vld [vmem:[#allocation2 + $0x778] sm:$0xff] }
 0x1c1   :  { %5814 = vst [vmem:[#allocation233_spill] sm:$0xff] %v4880_v18  ;;  %v4902_v18 = vld [vmem:[#allocation2 + $0x780] sm:$0xff] }
 0x1c2   :  { %5815 = vst [vmem:[#allocation234_spill] sm:$0xff] %v4882_v54  ;;  %v4904_v54 = vld [vmem:[#allocation2 + $0x788] sm:$0xff] }
 0x1c3   :  { %5816 = vst [vmem:[#allocation235_spill] sm:$0xff] %v4884_v29  ;;  %v4906_v29 = vld [vmem:[#allocation2 + $0x790] sm:$0xff] }
 0x1c4   :  { %5817 = vst [vmem:[#allocation236_spill] sm:$0xff] %v4890_v6  ;;  %v4912_v6 = vld [vmem:[#allocation2 + $0x7a8] sm:$0xff] }
 0x1c5   :  { %5818 = vst [vmem:[#allocation237_spill] sm:$0xff] %v4892_v0  ;;  %v4914_v0 = vld [vmem:[#allocation2 + $0x7b0] sm:$0xff] }
 0x1c6   :  { %5819 = vst [vmem:[#allocation238_spill] sm:$0xff] %v4894_v57  ;;  %v4916_v57 = vld [vmem:[#allocation2 + $0x7b8] sm:$0xff] }
 0x1c7   :  { %5820 = vst [vmem:[#allocation239_spill] sm:$0xff] %v4896_v24  ;;  %v4918_v24 = vld [vmem:[#allocation2 + $0x7c0] sm:$0xff] }
 0x1c8   :  { %5821 = vst [vmem:[#allocation240_spill] sm:$0xff] %v4898_v22  ;;  %v4920_v22 = vld [vmem:[#allocation2 + $0x7c8] sm:$0xff] }
 0x1c9   :  { %5822 = vst [vmem:[#allocation241_spill] sm:$0xff] %v4900_v61  ;;  %v4922_v61 = vld [vmem:[#allocation2 + $0x7d0] sm:$0xff] }
 0x1ca   :  { %5823 = vst [vmem:[#allocation242_spill] sm:$0xff] %v4906_v29  ;;  %v4928_v29 = vld [vmem:[#allocation2 + $0x7e8] sm:$0xff] }
 0x1cb   :  { %5824 = vst [vmem:[#allocation243_spill] sm:$0xff] %v4908_v30  ;;  %v4930_v30 = vld [vmem:[#allocation2 + $0x7f0] sm:$0xff] }
 0x1cc   :  { %5825 = vst [vmem:[#allocation244_spill] sm:$0xff] %v4910_v52  ;;  %v4932_v52 = vld [vmem:[#allocation2 + $0x7f8] sm:$0xff] }
 0x1cd   :  { %5826 = vst [vmem:[#allocation245_spill] sm:$0xff] %v4912_v6 }
 0x1ce   :  { %5827 = vst [vmem:[#allocation246_spill] sm:$0xff] %v4914_v0 }
 0x1cf   :  { %5828 = vst [vmem:[#allocation247_spill] sm:$0xff] %v4916_v57 }
 0x1d0   :  { %5829 = vst [vmem:[#allocation248_spill] sm:$0xff] %v4922_v61 }
 0x1d1   :  { %5830 = vst [vmem:[#allocation249_spill] sm:$0xff] %v4924_v11 }
 0x1d2   :  { %5831 = vst [vmem:[#allocation250_spill] sm:$0xff] %v4926_v44 }
 0x1d3   :  { %5832 = vst [vmem:[#allocation251_spill] sm:$0xff] %v4928_v29 }
 0x1d4   :  { %5833 = vst [vmem:[#allocation252_spill] sm:$0xff] %v4930_v30 }
 0x1d5   :  { %5834 = vst [vmem:[#allocation253_spill] sm:$0xff] %v4932_v52 }
 0x1d6   :  { %4060 = dma.done.wait [#allocation4 + $0x1], 32768 }
 0x1d7   :  { %4061 = vsyncadd [#allocation4 + $0x1], 4294934528  ;;  %v1094_v0 = vld [vmem:[#allocation2 + $0xbc0] sm:$0xff]  ;;  %v1095_v57 = vld [vmem:[#allocation2 + $0xbc8] sm:$0xff] }
 0x1d8   :  { %v1086_v6 = vld [vmem:[#allocation2 + $0xb80] sm:$0xff]  ;;  %1230 = vmatpush.msra.mxu0 %v1094_v0  ;;  %1270 = vmatpush.msra.mxu2 %v1095_v57  ;;  %v1087_v2 = vld [vmem:[#allocation2 + $0xb88] sm:$0xff] }
 0x1d9   :  { %v1222_v37 = vld [vmem:[#allocation2 + $0xfc0] sm:$0xff]  ;;  %v1223_v61 = vld [vmem:[#allocation2 + $0xfc8] sm:$0xff] }
 0x1da   :  { %1250 = vmatpush.msra.mxu1 %v1222_v37  ;;  %1290 = vmatpush.msra.mxu3 %v1223_v61  ;;  %v1078_v11 = vld [vmem:[#allocation2 + $0xb40] sm:$0xff]  ;;  %v1079_v23 = vld [vmem:[#allocation2 + $0xb48] sm:$0xff] }
 0x1db   :  { %v1214_v44 = vld [vmem:[#allocation2 + $0xf80] sm:$0xff]  ;;  %1231 = vmatpush.msra.mxu0 %v1086_v6  ;;  %1271 = vmatpush.msra.mxu2 %v1087_v2  ;;  %v1215_v30 = vld [vmem:[#allocation2 + $0xf88] sm:$0xff] }
 0x1dc   :  { %v1206_v29 = vld [vmem:[#allocation2 + $0xf40] sm:$0xff]  ;;  %1251 = vmatpush.msra.mxu1 %v1214_v44  ;;  %1291 = vmatpush.msra.mxu3 %v1215_v30  ;;  %v1071_v58 = vld [vmem:[#allocation2 + $0xb08] sm:$0xff] }
 0x1dd   :  { %v1070_v52 = vld [vmem:[#allocation2 + $0xb00] sm:$0xff]  ;;  %v1207_v45 = vld [vmem:[#allocation2 + $0xf48] sm:$0xff]  ;;  %1232 = vmatpush.msra.mxu0 %v1078_v11  ;;  %1272 = vmatpush.msra.mxu2 %v1079_v23 }
 0x1de   :  { %v1198_v57 = vld [vmem:[#allocation2 + $0xf00] sm:$0xff]  ;;  %v1199_v0 = vld [vmem:[#allocation2 + $0xf08] sm:$0xff]  ;;  %1252 = vmatpush.msra.mxu1 %v1206_v29  ;;  %1292 = vmatpush.msra.mxu3 %v1207_v45 }
 0x1df   :  { %v1062_v37 = vld [vmem:[#allocation2 + $0xac0] sm:$0xff]  ;;  %v1063_v61 = vld [vmem:[#allocation2 + $0xac8] sm:$0xff]  ;;  %1233 = vmatpush.msra.mxu0 %v1070_v52  ;;  %1273 = vmatpush.msra.mxu2 %v1071_v58 }
 0x1e0   :  { %v1190_v26 = vld [vmem:[#allocation2 + $0xec0] sm:$0xff]  ;;  %v1191_v6 = vld [vmem:[#allocation2 + $0xec8] sm:$0xff]  ;;  %1253 = vmatpush.msra.mxu1 %v1198_v57  ;;  %1293 = vmatpush.msra.mxu3 %v1199_v0 }
 0x1e1   :  { %v1054_v2 = vld [vmem:[#allocation2 + $0xa80] sm:$0xff]  ;;  %v1055_v44 = vld [vmem:[#allocation2 + $0xa88] sm:$0xff]  ;;  %1234 = vmatpush.msra.mxu0 %v1062_v37  ;;  %1274 = vmatpush.msra.mxu2 %v1063_v61 }
 0x1e2   :  { %v1182_v30 = vld [vmem:[#allocation2 + $0xe80] sm:$0xff]  ;;  %v1183_v20 = vld [vmem:[#allocation2 + $0xe88] sm:$0xff]  ;;  %1254 = vmatpush.msra.mxu1 %v1190_v26  ;;  %1294 = vmatpush.msra.mxu3 %v1191_v6 }
 0x1e3   :  { %v1046_v11 = vld [vmem:[#allocation2 + $0xa40] sm:$0xff]  ;;  %v1047_v23 = vld [vmem:[#allocation2 + $0xa48] sm:$0xff]  ;;  %1235 = vmatpush.msra.mxu0 %v1054_v2  ;;  %1275 = vmatpush.msra.mxu2 %v1055_v44 }
 0x1e4   :  { %v1174_v45 = vld [vmem:[#allocation2 + $0xe40] sm:$0xff]  ;;  %v1175_v29 = vld [vmem:[#allocation2 + $0xe48] sm:$0xff]  ;;  %1255 = vmatpush.msra.mxu1 %v1182_v30  ;;  %1295 = vmatpush.msra.mxu3 %v1183_v20 }
 0x1e5   :  { %v1038_v58 = vld [vmem:[#allocation2 + $0xa00] sm:$0xff]  ;;  %v1039_v52 = vld [vmem:[#allocation2 + $0xa08] sm:$0xff]  ;;  %1236 = vmatpush.msra.mxu0 %v1046_v11  ;;  %1276 = vmatpush.msra.mxu2 %v1047_v23 }
 0x1e6   :  { %v1166_v57 = vld [vmem:[#allocation2 + $0xe00] sm:$0xff]  ;;  %v1167_v0 = vld [vmem:[#allocation2 + $0xe08] sm:$0xff]  ;;  %1256 = vmatpush.msra.mxu1 %v1174_v45  ;;  %1296 = vmatpush.msra.mxu3 %v1175_v29 }
 0x1e7   :  { %v1030_v37 = vld [vmem:[#allocation2 + $0x9c0] sm:$0xff]  ;;  %v1031_v61 = vld [vmem:[#allocation2 + $0x9c8] sm:$0xff]  ;;  %1237 = vmatpush.msra.mxu0 %v1038_v58  ;;  %1277 = vmatpush.msra.mxu2 %v1039_v52 }
 0x1e8   :  { %v1158_v26 = vld [vmem:[#allocation2 + $0xdc0] sm:$0xff]  ;;  %v1159_v6 = vld [vmem:[#allocation2 + $0xdc8] sm:$0xff]  ;;  %1257 = vmatpush.msra.mxu1 %v1166_v57  ;;  %1297 = vmatpush.msra.mxu3 %v1167_v0 }
 0x1e9   :  { %v1022_v2 = vld [vmem:[#allocation2 + $0x980] sm:$0xff]  ;;  %v1023_v44 = vld [vmem:[#allocation2 + $0x988] sm:$0xff]  ;;  %1238 = vmatpush.msra.mxu0 %v1030_v37  ;;  %1278 = vmatpush.msra.mxu2 %v1031_v61 }
 0x1ea   :  { %v1150_v20 = vld [vmem:[#allocation2 + $0xd80] sm:$0xff]  ;;  %v1151_v30 = vld [vmem:[#allocation2 + $0xd88] sm:$0xff]  ;;  %1258 = vmatpush.msra.mxu1 %v1158_v26  ;;  %1298 = vmatpush.msra.mxu3 %v1159_v6 }
 0x1eb   :  { %v1014_v11 = vld [vmem:[#allocation2 + $0x940] sm:$0xff]  ;;  %v1015_v23 = vld [vmem:[#allocation2 + $0x948] sm:$0xff]  ;;  %1239 = vmatpush.msra.mxu0 %v1022_v2  ;;  %1279 = vmatpush.msra.mxu2 %v1023_v44 }
 0x1ec   :  { %v1142_v45 = vld [vmem:[#allocation2 + $0xd40] sm:$0xff]  ;;  %v1143_v29 = vld [vmem:[#allocation2 + $0xd48] sm:$0xff]  ;;  %1259 = vmatpush.msra.mxu1 %v1150_v20  ;;  %1299 = vmatpush.msra.mxu3 %v1151_v30 }
 0x1ed   :  { %v1006_v58 = vld [vmem:[#allocation2 + $0x900] sm:$0xff]  ;;  %v1007_v52 = vld [vmem:[#allocation2 + $0x908] sm:$0xff]  ;;  %1240 = vmatpush.msra.mxu0 %v1014_v11  ;;  %1280 = vmatpush.msra.mxu2 %v1015_v23 }
 0x1ee   :  { %v1134_v57 = vld [vmem:[#allocation2 + $0xd00] sm:$0xff]  ;;  %v1135_v0 = vld [vmem:[#allocation2 + $0xd08] sm:$0xff]  ;;  %1260 = vmatpush.msra.mxu1 %v1142_v45  ;;  %1300 = vmatpush.msra.mxu3 %v1143_v29 }
 0x1ef   :  { %v998_v37 = vld [vmem:[#allocation2 + $0x8c0] sm:$0xff]  ;;  %v999_v61 = vld [vmem:[#allocation2 + $0x8c8] sm:$0xff]  ;;  %1241 = vmatpush.msra.mxu0 %v1006_v58  ;;  %1281 = vmatpush.msra.mxu2 %v1007_v52 }
 0x1f0   :  { %v1126_v26 = vld [vmem:[#allocation2 + $0xcc0] sm:$0xff]  ;;  %v1127_v6 = vld [vmem:[#allocation2 + $0xcc8] sm:$0xff]  ;;  %1261 = vmatpush.msra.mxu1 %v1134_v57  ;;  %1301 = vmatpush.msra.mxu3 %v1135_v0  ;;  %v1096_v57 = vld [vmem:[#allocation2 + $0xbd0] sm:$0xff] }
 0x1f1   :  { %v990_v2 = vld [vmem:[#allocation2 + $0x880] sm:$0xff]  ;;  %v991_v44 = vld [vmem:[#allocation2 + $0x888] sm:$0xff]  ;;  %1242 = vmatpush.msra.mxu0 %v998_v37  ;;  %1282 = vmatpush.msra.mxu2 %v999_v61  ;;  %v1097_v0 = vld [vmem:[#allocation2 + $0xbd8] sm:$0xff] }
 0x1f2   :  { %v1118_v20 = vld [vmem:[#allocation2 + $0xc80] sm:$0xff]  ;;  %v1119_v30 = vld [vmem:[#allocation2 + $0xc88] sm:$0xff]  ;;  %1262 = vmatpush.msra.mxu1 %v1126_v26  ;;  %1302 = vmatpush.msra.mxu3 %v1127_v6  ;;  %v1088_v26 = vld [vmem:[#allocation2 + $0xb90] sm:$0xff] }
 0x1f3   :  { %v982_v11 = vld [vmem:[#allocation2 + $0x840] sm:$0xff]  ;;  %v983_v23 = vld [vmem:[#allocation2 + $0x848] sm:$0xff]  ;;  %1243 = vmatpush.msra.mxu0 %v990_v2  ;;  %1283 = vmatpush.msra.mxu2 %v991_v44  ;;  %v1224_v6 = vld [vmem:[#allocation2 + $0xfd0] sm:$0xff] }
 0x1f4   :  { %v1110_v45 = vld [vmem:[#allocation2 + $0xc40] sm:$0xff]  ;;  %v1111_v29 = vld [vmem:[#allocation2 + $0xc48] sm:$0xff]  ;;  %1263 = vmatpush.msra.mxu1 %v1118_v20  ;;  %1303 = vmatpush.msra.mxu3 %v1119_v30  ;;  %v1089_v2 = vld [vmem:[#allocation2 + $0xb98] sm:$0xff] }
 0x1f5   :  { %v974_v58 = vld [vmem:[#allocation2 + $0x800] sm:$0xff]  ;;  %v975_v52 = vld [vmem:[#allocation2 + $0x808] sm:$0xff]  ;;  %1244 = vmatpush.msra.mxu0 %v982_v11  ;;  %1284 = vmatpush.msra.mxu2 %v983_v23  ;;  %v1225_v44 = vld [vmem:[#allocation2 + $0xfd8] sm:$0xff] }
 0x1f6   :  { %1264 = vmatpush.msra.mxu1 %v1110_v45  ;;  %1304 = vmatpush.msra.mxu3 %v1111_v29  ;;  %v1102_v37 = vld [vmem:[#allocation2 + $0xc00] sm:$0xff]  ;;  %v1103_v61 = vld [vmem:[#allocation2 + $0xc08] sm:$0xff]  ;;  %v1080_v20 = vld [vmem:[#allocation2 + $0xb50] sm:$0xff] }
 0x1f7   :  { %1245 = vmatpush.msra.mxu0 %v974_v58  ;;  %1285 = vmatpush.msra.mxu2 %v975_v52  ;;  %v1216_v30 = vld [vmem:[#allocation2 + $0xf90] sm:$0xff]  ;;  %v1081_v11 = vld [vmem:[#allocation2 + $0xb58] sm:$0xff] }
 0x1f8   :  { %1265 = vmatpush.msra.mxu1 %v1102_v37  ;;  %1305 = vmatpush.msra.mxu3 %v1103_v61  ;;  %v1217_v23 = vld [vmem:[#allocation2 + $0xf98] sm:$0xff]  ;;  %v1072_v45 = vld [vmem:[#allocation2 + $0xb10] sm:$0xff] }
 0x1f9   :  { %1310 = vmatpush.msrb.mxu0 %v1096_v57  ;;  %1350 = vmatpush.msrb.mxu2 %v1097_v0  ;;  %v1208_v29 = vld [vmem:[#allocation2 + $0xf50] sm:$0xff]  ;;  %v1073_v58 = vld [vmem:[#allocation2 + $0xb18] sm:$0xff] }
 0x1fa   :  { %1330 = vmatpush.msrb.mxu1 %v1224_v6  ;;  %1370 = vmatpush.msrb.mxu3 %v1225_v44  ;;  %v1209_v52 = vld [vmem:[#allocation2 + $0xf58] sm:$0xff]  ;;  %v1064_v57 = vld [vmem:[#allocation2 + $0xad0] sm:$0xff] }
 0x1fb   :  { %1311 = vmatpush.msrb.mxu0 %v1088_v26  ;;  %1351 = vmatpush.msrb.mxu2 %v1089_v2  ;;  %v1200_v0 = vld [vmem:[#allocation2 + $0xf10] sm:$0xff]  ;;  %v1065_v37 = vld [vmem:[#allocation2 + $0xad8] sm:$0xff] }
 0x1fc   :  { %1331 = vmatpush.msrb.mxu1 %v1216_v30  ;;  %1371 = vmatpush.msrb.mxu3 %v1217_v23  ;;  %v1201_v61 = vld [vmem:[#allocation2 + $0xf18] sm:$0xff]  ;;  %v1056_v26 = vld [vmem:[#allocation2 + $0xa90] sm:$0xff] }
 0x1fd   :  { %1312 = vmatpush.msrb.mxu0 %v1080_v20  ;;  %1352 = vmatpush.msrb.mxu2 %v1081_v11  ;;  %v1192_v6 = vld [vmem:[#allocation2 + $0xed0] sm:$0xff]  ;;  %v1057_v2 = vld [vmem:[#allocation2 + $0xa98] sm:$0xff] }
 0x1fe   :  { %1332 = vmatpush.msrb.mxu1 %v1208_v29  ;;  %1372 = vmatpush.msrb.mxu3 %v1209_v52  ;;  %v1193_v44 = vld [vmem:[#allocation2 + $0xed8] sm:$0xff]  ;;  %v1048_v20 = vld [vmem:[#allocation2 + $0xa50] sm:$0xff] }
 0x1ff   :  { %1313 = vmatpush.msrb.mxu0 %v1072_v45  ;;  %1353 = vmatpush.msrb.mxu2 %v1073_v58  ;;  %v1184_v30 = vld [vmem:[#allocation2 + $0xe90] sm:$0xff]  ;;  %v1049_v11 = vld [vmem:[#allocation2 + $0xa58] sm:$0xff] }
 0x200   :  { %1333 = vmatpush.msrb.mxu1 %v1200_v0  ;;  %1373 = vmatpush.msrb.mxu3 %v1201_v61  ;;  %v1185_v23 = vld [vmem:[#allocation2 + $0xe98] sm:$0xff]  ;;  %v1040_v45 = vld [vmem:[#allocation2 + $0xa10] sm:$0xff] }
 0x201   :  { %1314 = vmatpush.msrb.mxu0 %v1064_v57  ;;  %1354 = vmatpush.msrb.mxu2 %v1065_v37  ;;  %v1176_v29 = vld [vmem:[#allocation2 + $0xe50] sm:$0xff]  ;;  %v1041_v58 = vld [vmem:[#allocation2 + $0xa18] sm:$0xff] }
 0x202   :  { %1334 = vmatpush.msrb.mxu1 %v1192_v6  ;;  %1374 = vmatpush.msrb.mxu3 %v1193_v44  ;;  %v1177_v52 = vld [vmem:[#allocation2 + $0xe58] sm:$0xff]  ;;  %v1032_v57 = vld [vmem:[#allocation2 + $0x9d0] sm:$0xff] }
 0x203   :  { %1315 = vmatpush.msrb.mxu0 %v1056_v26  ;;  %1355 = vmatpush.msrb.mxu2 %v1057_v2  ;;  %v1168_v0 = vld [vmem:[#allocation2 + $0xe10] sm:$0xff]  ;;  %v1033_v37 = vld [vmem:[#allocation2 + $0x9d8] sm:$0xff] }
 0x204   :  { %1335 = vmatpush.msrb.mxu1 %v1184_v30  ;;  %1375 = vmatpush.msrb.mxu3 %v1185_v23  ;;  %v1169_v61 = vld [vmem:[#allocation2 + $0xe18] sm:$0xff]  ;;  %v1024_v26 = vld [vmem:[#allocation2 + $0x990] sm:$0xff] }
 0x205   :  { %1316 = vmatpush.msrb.mxu0 %v1048_v20  ;;  %1356 = vmatpush.msrb.mxu2 %v1049_v11  ;;  %v1160_v6 = vld [vmem:[#allocation2 + $0xdd0] sm:$0xff]  ;;  %v1025_v2 = vld [vmem:[#allocation2 + $0x998] sm:$0xff] }
 0x206   :  { %1336 = vmatpush.msrb.mxu1 %v1176_v29  ;;  %1376 = vmatpush.msrb.mxu3 %v1177_v52  ;;  %v1161_v44 = vld [vmem:[#allocation2 + $0xdd8] sm:$0xff]  ;;  %v1016_v20 = vld [vmem:[#allocation2 + $0x950] sm:$0xff] }
 0x207   :  { %1317 = vmatpush.msrb.mxu0 %v1040_v45  ;;  %1357 = vmatpush.msrb.mxu2 %v1041_v58  ;;  %v1152_v30 = vld [vmem:[#allocation2 + $0xd90] sm:$0xff]  ;;  %v1017_v11 = vld [vmem:[#allocation2 + $0x958] sm:$0xff] }
 0x208   :  { %1337 = vmatpush.msrb.mxu1 %v1168_v0  ;;  %1377 = vmatpush.msrb.mxu3 %v1169_v61  ;;  %v1153_v23 = vld [vmem:[#allocation2 + $0xd98] sm:$0xff]  ;;  %v1008_v45 = vld [vmem:[#allocation2 + $0x910] sm:$0xff] }
 0x209   :  { %1318 = vmatpush.msrb.mxu0 %v1032_v57  ;;  %1358 = vmatpush.msrb.mxu2 %v1033_v37  ;;  %v1144_v29 = vld [vmem:[#allocation2 + $0xd50] sm:$0xff]  ;;  %v1009_v58 = vld [vmem:[#allocation2 + $0x918] sm:$0xff] }
 0x20a   :  { %1338 = vmatpush.msrb.mxu1 %v1160_v6  ;;  %1378 = vmatpush.msrb.mxu3 %v1161_v44  ;;  %v1145_v52 = vld [vmem:[#allocation2 + $0xd58] sm:$0xff]  ;;  %v1000_v57 = vld [vmem:[#allocation2 + $0x8d0] sm:$0xff] }
 0x20b   :  { %1319 = vmatpush.msrb.mxu0 %v1024_v26  ;;  %1359 = vmatpush.msrb.mxu2 %v1025_v2  ;;  %v1136_v0 = vld [vmem:[#allocation2 + $0xd10] sm:$0xff]  ;;  %v1001_v37 = vld [vmem:[#allocation2 + $0x8d8] sm:$0xff] }
 0x20c   :  { %1339 = vmatpush.msrb.mxu1 %v1152_v30  ;;  %1379 = vmatpush.msrb.mxu3 %v1153_v23  ;;  %v1137_v61 = vld [vmem:[#allocation2 + $0xd18] sm:$0xff]  ;;  %v992_v26 = vld [vmem:[#allocation2 + $0x890] sm:$0xff] }
 0x20d   :  { %1320 = vmatpush.msrb.mxu0 %v1016_v20  ;;  %1360 = vmatpush.msrb.mxu2 %v1017_v11  ;;  %v1128_v6 = vld [vmem:[#allocation2 + $0xcd0] sm:$0xff]  ;;  %v993_v2 = vld [vmem:[#allocation2 + $0x898] sm:$0xff] }
 0x20e   :  { %1340 = vmatpush.msrb.mxu1 %v1144_v29  ;;  %1380 = vmatpush.msrb.mxu3 %v1145_v52  ;;  %v1129_v44 = vld [vmem:[#allocation2 + $0xcd8] sm:$0xff]  ;;  %v984_v20 = vld [vmem:[#allocation2 + $0x850] sm:$0xff] }
 0x20f   :  { %1321 = vmatpush.msrb.mxu0 %v1008_v45  ;;  %1361 = vmatpush.msrb.mxu2 %v1009_v58  ;;  %v1120_v30 = vld [vmem:[#allocation2 + $0xc90] sm:$0xff]  ;;  %v985_v11 = vld [vmem:[#allocation2 + $0x858] sm:$0xff] }
 0x210   :  { %1341 = vmatpush.msrb.mxu1 %v1136_v0  ;;  %1381 = vmatpush.msrb.mxu3 %v1137_v61  ;;  %v1121_v23 = vld [vmem:[#allocation2 + $0xc98] sm:$0xff]  ;;  %v976_v45 = vld [vmem:[#allocation2 + $0x810] sm:$0xff]  ;;  %v1099_v0 = vld [vmem:[#allocation2 + $0xbe8] sm:$0xff] }
 0x211   :  { %1322 = vmatpush.msrb.mxu0 %v1000_v57  ;;  %1362 = vmatpush.msrb.mxu2 %v1001_v37  ;;  %v1112_v29 = vld [vmem:[#allocation2 + $0xc50] sm:$0xff]  ;;  %v977_v58 = vld [vmem:[#allocation2 + $0x818] sm:$0xff]  ;;  %v1098_v57 = vld [vmem:[#allocation2 + $0xbe0] sm:$0xff] }
 0x212   :  { %1342 = vmatpush.msrb.mxu1 %v1128_v6  ;;  %1382 = vmatpush.msrb.mxu3 %v1129_v44  ;;  %v1113_v52 = vld [vmem:[#allocation2 + $0xc58] sm:$0xff]  ;;  %v1104_v37 = vld [vmem:[#allocation2 + $0xc10] sm:$0xff]  ;;  %v1226_v6 = vld [vmem:[#allocation2 + $0xfe0] sm:$0xff] }
 0x213   :  { %1323 = vmatpush.msrb.mxu0 %v992_v26  ;;  %1363 = vmatpush.msrb.mxu2 %v993_v2  ;;  %v1105_v61 = vld [vmem:[#allocation2 + $0xc18] sm:$0xff]  ;;  %v1090_v26 = vld [vmem:[#allocation2 + $0xba0] sm:$0xff]  ;;  %v1091_v2 = vld [vmem:[#allocation2 + $0xba8] sm:$0xff] }
 0x214   :  { %1343 = vmatpush.msrb.mxu1 %v1120_v30  ;;  %1383 = vmatpush.msrb.mxu3 %v1121_v23  ;;  %v1227_v44 = vld [vmem:[#allocation2 + $0xfe8] sm:$0xff]  ;;  %v1218_v30 = vld [vmem:[#allocation2 + $0xfa0] sm:$0xff] }
 0x215   :  { %1324 = vmatpush.msrb.mxu0 %v984_v20  ;;  %1364 = vmatpush.msrb.mxu2 %v985_v11  ;;  %v1082_v20 = vld [vmem:[#allocation2 + $0xb60] sm:$0xff]  ;;  %v1083_v11 = vld [vmem:[#allocation2 + $0xb68] sm:$0xff] }
 0x216   :  { %1344 = vmatpush.msrb.mxu1 %v1112_v29  ;;  %1384 = vmatpush.msrb.mxu3 %v1113_v52  ;;  %v1219_v23 = vld [vmem:[#allocation2 + $0xfa8] sm:$0xff]  ;;  %v1210_v29 = vld [vmem:[#allocation2 + $0xf60] sm:$0xff] }
 0x217   :  { %1325 = vmatpush.msrb.mxu0 %v976_v45  ;;  %1365 = vmatpush.msrb.mxu2 %v977_v58  ;;  %v1074_v45 = vld [vmem:[#allocation2 + $0xb20] sm:$0xff]  ;;  %v1075_v58 = vld [vmem:[#allocation2 + $0xb28] sm:$0xff] }
 0x218   :  { %1246 = vmatmul.f32.vlgmr.msra.gmra.mxu0 %v4410_v12  ;;  %1286 = vmatmul.f32.vlgmr.msra.gmra.mxu2 %v4410_v12  ;;  %v1211_v52 = vld [vmem:[#allocation2 + $0xf68] sm:$0xff] }
 0x219   :  { %1306 = vmatmul.f32.vlgmr.msra.gmra.mxu3 %v4412_v56  ;;  %1390 = vmatpush.msra.mxu0 %v1098_v57  ;;  %v1066_v57 = vld [vmem:[#allocation2 + $0xae0] sm:$0xff] }
 0x21a   :  { %1430 = vmatpush.msra.mxu2 %v1099_v0  ;;  %1345 = vmatpush.msrb.mxu1 %v1104_v37  ;;  %v1202_v0 = vld [vmem:[#allocation2 + $0xf20] sm:$0xff]  ;;  %v1067_v37 = vld [vmem:[#allocation2 + $0xae8] sm:$0xff] }
 0x21b   :  { %1385 = vmatpush.msrb.mxu3 %v1105_v61  ;;  %1266 = vmatmul.f32.vlgmr.msra.gmra.mxu1 %v4412_v56  ;;  %v1203_v61 = vld [vmem:[#allocation2 + $0xf28] sm:$0xff] }
 0x21c   :  { %1391 = vmatpush.msra.mxu0 %v1090_v26  ;;  %1410 = vmatpush.msra.mxu1 %v1226_v6  ;;  %v1058_v26 = vld [vmem:[#allocation2 + $0xaa0] sm:$0xff] }
 0x21d   :  { %1431 = vmatpush.msra.mxu2 %v1091_v2  ;;  %1450 = vmatpush.msra.mxu3 %v1227_v44  ;;  %v1194_v6 = vld [vmem:[#allocation2 + $0xee0] sm:$0xff]  ;;  %v1059_v2 = vld [vmem:[#allocation2 + $0xaa8] sm:$0xff] }
 0x21e   :  { %1392 = vmatpush.msra.mxu0 %v1082_v20  ;;  %1411 = vmatpush.msra.mxu1 %v1218_v30  ;;  %v1195_v44 = vld [vmem:[#allocation2 + $0xee8] sm:$0xff]  ;;  %v1050_v20 = vld [vmem:[#allocation2 + $0xa60] sm:$0xff] }
 0x21f   :  { %1432 = vmatpush.msra.mxu2 %v1083_v11  ;;  %1451 = vmatpush.msra.mxu3 %v1219_v23  ;;  %v1186_v30 = vld [vmem:[#allocation2 + $0xea0] sm:$0xff]  ;;  %v1051_v11 = vld [vmem:[#allocation2 + $0xa68] sm:$0xff] }
 0x220   :  { %1393 = vmatpush.msra.mxu0 %v1074_v45  ;;  %1412 = vmatpush.msra.mxu1 %v1210_v29  ;;  %v1187_v23 = vld [vmem:[#allocation2 + $0xea8] sm:$0xff]  ;;  %v1042_v45 = vld [vmem:[#allocation2 + $0xa20] sm:$0xff] }
 0x221   :  { %1433 = vmatpush.msra.mxu2 %v1075_v58  ;;  %1452 = vmatpush.msra.mxu3 %v1211_v52  ;;  %v1178_v29 = vld [vmem:[#allocation2 + $0xe60] sm:$0xff]  ;;  %v1043_v58 = vld [vmem:[#allocation2 + $0xa28] sm:$0xff] }
 0x222   :  { %1394 = vmatpush.msra.mxu0 %v1066_v57  ;;  %1413 = vmatpush.msra.mxu1 %v1202_v0  ;;  %v1179_v52 = vld [vmem:[#allocation2 + $0xe68] sm:$0xff]  ;;  %v1034_v57 = vld [vmem:[#allocation2 + $0x9e0] sm:$0xff] }
 0x223   :  { %1434 = vmatpush.msra.mxu2 %v1067_v37  ;;  %1453 = vmatpush.msra.mxu3 %v1203_v61  ;;  %v1170_v0 = vld [vmem:[#allocation2 + $0xe20] sm:$0xff]  ;;  %v1035_v37 = vld [vmem:[#allocation2 + $0x9e8] sm:$0xff] }
 0x224   :  { %1395 = vmatpush.msra.mxu0 %v1058_v26  ;;  %1414 = vmatpush.msra.mxu1 %v1194_v6  ;;  %v1171_v61 = vld [vmem:[#allocation2 + $0xe28] sm:$0xff]  ;;  %v1026_v26 = vld [vmem:[#allocation2 + $0x9a0] sm:$0xff] }
 0x225   :  { %1435 = vmatpush.msra.mxu2 %v1059_v2  ;;  %1454 = vmatpush.msra.mxu3 %v1195_v44  ;;  %v1162_v6 = vld [vmem:[#allocation2 + $0xde0] sm:$0xff]  ;;  %v1027_v2 = vld [vmem:[#allocation2 + $0x9a8] sm:$0xff] }
 0x226   :  { %1396 = vmatpush.msra.mxu0 %v1050_v20  ;;  %1415 = vmatpush.msra.mxu1 %v1186_v30  ;;  %v1163_v44 = vld [vmem:[#allocation2 + $0xde8] sm:$0xff]  ;;  %v1018_v20 = vld [vmem:[#allocation2 + $0x960] sm:$0xff] }
 0x227   :  { %1436 = vmatpush.msra.mxu2 %v1051_v11  ;;  %1455 = vmatpush.msra.mxu3 %v1187_v23  ;;  %v1154_v30 = vld [vmem:[#allocation2 + $0xda0] sm:$0xff]  ;;  %v1019_v11 = vld [vmem:[#allocation2 + $0x968] sm:$0xff] }
 0x228   :  { %1397 = vmatpush.msra.mxu0 %v1042_v45  ;;  %1416 = vmatpush.msra.mxu1 %v1178_v29  ;;  %v1155_v23 = vld [vmem:[#allocation2 + $0xda8] sm:$0xff]  ;;  %v1010_v45 = vld [vmem:[#allocation2 + $0x920] sm:$0xff] }
 0x229   :  { %1437 = vmatpush.msra.mxu2 %v1043_v58  ;;  %1456 = vmatpush.msra.mxu3 %v1179_v52  ;;  %v1146_v29 = vld [vmem:[#allocation2 + $0xd60] sm:$0xff]  ;;  %v1011_v58 = vld [vmem:[#allocation2 + $0x928] sm:$0xff] }
 0x22a   :  { %1398 = vmatpush.msra.mxu0 %v1034_v57  ;;  %1417 = vmatpush.msra.mxu1 %v1170_v0  ;;  %v1147_v52 = vld [vmem:[#allocation2 + $0xd68] sm:$0xff]  ;;  %v1002_v57 = vld [vmem:[#allocation2 + $0x8e0] sm:$0xff] }
 0x22b   :  { %1438 = vmatpush.msra.mxu2 %v1035_v37  ;;  %1457 = vmatpush.msra.mxu3 %v1171_v61  ;;  %v1138_v0 = vld [vmem:[#allocation2 + $0xd20] sm:$0xff]  ;;  %v1003_v37 = vld [vmem:[#allocation2 + $0x8e8] sm:$0xff] }
 0x22c   :  { %1399 = vmatpush.msra.mxu0 %v1026_v26  ;;  %1418 = vmatpush.msra.mxu1 %v1162_v6  ;;  %v1139_v61 = vld [vmem:[#allocation2 + $0xd28] sm:$0xff]  ;;  %v994_v26 = vld [vmem:[#allocation2 + $0x8a0] sm:$0xff] }
 0x22d   :  { %1439 = vmatpush.msra.mxu2 %v1027_v2  ;;  %1458 = vmatpush.msra.mxu3 %v1163_v44  ;;  %v1130_v6 = vld [vmem:[#allocation2 + $0xce0] sm:$0xff]  ;;  %v995_v2 = vld [vmem:[#allocation2 + $0x8a8] sm:$0xff] }
 0x22e   :  { %1400 = vmatpush.msra.mxu0 %v1018_v20  ;;  %1419 = vmatpush.msra.mxu1 %v1154_v30  ;;  %v1131_v44 = vld [vmem:[#allocation2 + $0xce8] sm:$0xff]  ;;  %v986_v20 = vld [vmem:[#allocation2 + $0x860] sm:$0xff] }
 0x22f   :  { %1440 = vmatpush.msra.mxu2 %v1019_v11  ;;  %1459 = vmatpush.msra.mxu3 %v1155_v23  ;;  %v1122_v30 = vld [vmem:[#allocation2 + $0xca0] sm:$0xff]  ;;  %v987_v11 = vld [vmem:[#allocation2 + $0x868] sm:$0xff] }
 0x230   :  { %1401 = vmatpush.msra.mxu0 %v1010_v45  ;;  %1420 = vmatpush.msra.mxu1 %v1146_v29  ;;  %v1123_v23 = vld [vmem:[#allocation2 + $0xca8] sm:$0xff]  ;;  %v978_v45 = vld [vmem:[#allocation2 + $0x820] sm:$0xff] }
 0x231   :  { %1441 = vmatpush.msra.mxu2 %v1011_v58  ;;  %1460 = vmatpush.msra.mxu3 %v1147_v52  ;;  %v1114_v29 = vld [vmem:[#allocation2 + $0xc60] sm:$0xff]  ;;  %v979_v58 = vld [vmem:[#allocation2 + $0x828] sm:$0xff] }
 0x232   :  { %1402 = vmatpush.msra.mxu0 %v1002_v57  ;;  %1421 = vmatpush.msra.mxu1 %v1138_v0  ;;  %v1115_v52 = vld [vmem:[#allocation2 + $0xc68] sm:$0xff]  ;;  %v1100_v57 = vld [vmem:[#allocation2 + $0xbf0] sm:$0xff]  ;;  %v1101_v0 = vld [vmem:[#allocation2 + $0xbf8] sm:$0xff] }
 0x233   :  { %1442 = vmatpush.msra.mxu2 %v1003_v37  ;;  %1461 = vmatpush.msra.mxu3 %v1139_v61  ;;  %v1106_v37 = vld [vmem:[#allocation2 + $0xc20] sm:$0xff]  ;;  %v1107_v61 = vld [vmem:[#allocation2 + $0xc28] sm:$0xff] }
 0x234   :  { %1403 = vmatpush.msra.mxu0 %v994_v26  ;;  %1422 = vmatpush.msra.mxu1 %v1130_v6  ;;  %v1092_v26 = vld [vmem:[#allocation2 + $0xbb0] sm:$0xff] }
 0x235   :  { %1443 = vmatpush.msra.mxu2 %v995_v2  ;;  %1462 = vmatpush.msra.mxu3 %v1131_v44  ;;  %v1228_v6 = vld [vmem:[#allocation2 + $0xff0] sm:$0xff]  ;;  %v1093_v2 = vld [vmem:[#allocation2 + $0xbb8] sm:$0xff] }
 0x236   :  { %1404 = vmatpush.msra.mxu0 %v986_v20  ;;  %1423 = vmatpush.msra.mxu1 %v1122_v30  ;;  %v1229_v44 = vld [vmem:[#allocation2 + $0xff8] sm:$0xff]  ;;  %v1084_v20 = vld [vmem:[#allocation2 + $0xb70] sm:$0xff] }
 0x237   :  { %1444 = vmatpush.msra.mxu2 %v987_v11  ;;  %1463 = vmatpush.msra.mxu3 %v1123_v23  ;;  %v1220_v30 = vld [vmem:[#allocation2 + $0xfb0] sm:$0xff]  ;;  %v1085_v11 = vld [vmem:[#allocation2 + $0xb78] sm:$0xff] }
 0x238   :  { %1405 = vmatpush.msra.mxu0 %v978_v45  ;;  %1424 = vmatpush.msra.mxu1 %v1114_v29  ;;  %v1221_v23 = vld [vmem:[#allocation2 + $0xfb8] sm:$0xff]  ;;  %v1076_v45 = vld [vmem:[#allocation2 + $0xb30] sm:$0xff] }
 0x239   :  { %1445 = vmatpush.msra.mxu2 %v979_v58  ;;  %1464 = vmatpush.msra.mxu3 %v1115_v52  ;;  %v1212_v29 = vld [vmem:[#allocation2 + $0xf70] sm:$0xff]  ;;  %v1077_v58 = vld [vmem:[#allocation2 + $0xb38] sm:$0xff] }
 0x23a   :  { %1326 = vmatmul.f32.vlgmr.msrb.gmra.mxu0 %v4410_v12  ;;  %1366 = vmatmul.f32.vlgmr.msrb.gmra.mxu2 %v4410_v12  ;;  %v1213_v52 = vld [vmem:[#allocation2 + $0xf78] sm:$0xff] }
 0x23b   :  { %1386 = vmatmul.f32.vlgmr.msrb.gmra.mxu3 %v4412_v56  ;;  %1470 = vmatpush.msrb.mxu0 %v1100_v57  ;;  %v1068_v57 = vld [vmem:[#allocation2 + $0xaf0] sm:$0xff] }
 0x23c   :  { %1510 = vmatpush.msrb.mxu2 %v1101_v0  ;;  %1425 = vmatpush.msra.mxu1 %v1106_v37  ;;  %v1204_v0 = vld [vmem:[#allocation2 + $0xf30] sm:$0xff]  ;;  %v1069_v37 = vld [vmem:[#allocation2 + $0xaf8] sm:$0xff] }
 0x23d   :  { %1465 = vmatpush.msra.mxu3 %v1107_v61  ;;  %1346 = vmatmul.f32.vlgmr.msrb.gmra.mxu1 %v4412_v56  ;;  %v1205_v61 = vld [vmem:[#allocation2 + $0xf38] sm:$0xff] }
 0x23e   :  { %1471 = vmatpush.msrb.mxu0 %v1092_v26  ;;  %1490 = vmatpush.msrb.mxu1 %v1228_v6  ;;  %v1060_v26 = vld [vmem:[#allocation2 + $0xab0] sm:$0xff] }
 0x23f   :  { %1511 = vmatpush.msrb.mxu2 %v1093_v2  ;;  %1530 = vmatpush.msrb.mxu3 %v1229_v44  ;;  %v1196_v6 = vld [vmem:[#allocation2 + $0xef0] sm:$0xff]  ;;  %v1061_v2 = vld [vmem:[#allocation2 + $0xab8] sm:$0xff] }
 0x240   :  { %1472 = vmatpush.msrb.mxu0 %v1084_v20  ;;  %1491 = vmatpush.msrb.mxu1 %v1220_v30  ;;  %v1197_v44 = vld [vmem:[#allocation2 + $0xef8] sm:$0xff]  ;;  %v1052_v20 = vld [vmem:[#allocation2 + $0xa70] sm:$0xff] }
 0x241   :  { %1512 = vmatpush.msrb.mxu2 %v1085_v11  ;;  %1531 = vmatpush.msrb.mxu3 %v1221_v23  ;;  %v1188_v30 = vld [vmem:[#allocation2 + $0xeb0] sm:$0xff]  ;;  %v1053_v11 = vld [vmem:[#allocation2 + $0xa78] sm:$0xff] }
 0x242   :  { %1473 = vmatpush.msrb.mxu0 %v1076_v45  ;;  %1492 = vmatpush.msrb.mxu1 %v1212_v29  ;;  %v1189_v23 = vld [vmem:[#allocation2 + $0xeb8] sm:$0xff]  ;;  %v1044_v45 = vld [vmem:[#allocation2 + $0xa30] sm:$0xff] }
 0x243   :  { %1513 = vmatpush.msrb.mxu2 %v1077_v58  ;;  %1532 = vmatpush.msrb.mxu3 %v1213_v52  ;;  %v1180_v29 = vld [vmem:[#allocation2 + $0xe70] sm:$0xff]  ;;  %v1045_v58 = vld [vmem:[#allocation2 + $0xa38] sm:$0xff] }
 0x244   :  { %1474 = vmatpush.msrb.mxu0 %v1068_v57  ;;  %1493 = vmatpush.msrb.mxu1 %v1204_v0  ;;  %v1181_v52 = vld [vmem:[#allocation2 + $0xe78] sm:$0xff]  ;;  %v1036_v57 = vld [vmem:[#allocation2 + $0x9f0] sm:$0xff] }
 0x245   :  { %1514 = vmatpush.msrb.mxu2 %v1069_v37  ;;  %1533 = vmatpush.msrb.mxu3 %v1205_v61  ;;  %v1172_v0 = vld [vmem:[#allocation2 + $0xe30] sm:$0xff]  ;;  %v1037_v37 = vld [vmem:[#allocation2 + $0x9f8] sm:$0xff] }
 0x246   :  { %1475 = vmatpush.msrb.mxu0 %v1060_v26  ;;  %1494 = vmatpush.msrb.mxu1 %v1196_v6  ;;  %v1173_v61 = vld [vmem:[#allocation2 + $0xe38] sm:$0xff]  ;;  %v1028_v26 = vld [vmem:[#allocation2 + $0x9b0] sm:$0xff] }
 0x247   :  { %1515 = vmatpush.msrb.mxu2 %v1061_v2  ;;  %1534 = vmatpush.msrb.mxu3 %v1197_v44  ;;  %v1164_v6 = vld [vmem:[#allocation2 + $0xdf0] sm:$0xff]  ;;  %v1029_v2 = vld [vmem:[#allocation2 + $0x9b8] sm:$0xff] }
 0x248   :  { %1476 = vmatpush.msrb.mxu0 %v1052_v20  ;;  %1495 = vmatpush.msrb.mxu1 %v1188_v30  ;;  %v1165_v44 = vld [vmem:[#allocation2 + $0xdf8] sm:$0xff]  ;;  %v1020_v20 = vld [vmem:[#allocation2 + $0x970] sm:$0xff] }
 0x249   :  { %1516 = vmatpush.msrb.mxu2 %v1053_v11  ;;  %1535 = vmatpush.msrb.mxu3 %v1189_v23  ;;  %v1156_v30 = vld [vmem:[#allocation2 + $0xdb0] sm:$0xff]  ;;  %v1021_v11 = vld [vmem:[#allocation2 + $0x978] sm:$0xff] }
 0x24a   :  { %1477 = vmatpush.msrb.mxu0 %v1044_v45  ;;  %1496 = vmatpush.msrb.mxu1 %v1180_v29  ;;  %v1157_v23 = vld [vmem:[#allocation2 + $0xdb8] sm:$0xff]  ;;  %v1012_v45 = vld [vmem:[#allocation2 + $0x930] sm:$0xff] }
 0x24b   :  { %1517 = vmatpush.msrb.mxu2 %v1045_v58  ;;  %1536 = vmatpush.msrb.mxu3 %v1181_v52  ;;  %v1148_v29 = vld [vmem:[#allocation2 + $0xd70] sm:$0xff]  ;;  %v1013_v58 = vld [vmem:[#allocation2 + $0x938] sm:$0xff] }
 0x24c   :  { %1478 = vmatpush.msrb.mxu0 %v1036_v57  ;;  %1497 = vmatpush.msrb.mxu1 %v1172_v0  ;;  %v1149_v52 = vld [vmem:[#allocation2 + $0xd78] sm:$0xff]  ;;  %v1004_v57 = vld [vmem:[#allocation2 + $0x8f0] sm:$0xff] }
 0x24d   :  { %1518 = vmatpush.msrb.mxu2 %v1037_v37  ;;  %1537 = vmatpush.msrb.mxu3 %v1173_v61  ;;  %v1140_v0 = vld [vmem:[#allocation2 + $0xd30] sm:$0xff]  ;;  %v1005_v37 = vld [vmem:[#allocation2 + $0x8f8] sm:$0xff] }
 0x24e   :  { %1479 = vmatpush.msrb.mxu0 %v1028_v26  ;;  %1498 = vmatpush.msrb.mxu1 %v1164_v6  ;;  %v1141_v61 = vld [vmem:[#allocation2 + $0xd38] sm:$0xff]  ;;  %v996_v26 = vld [vmem:[#allocation2 + $0x8b0] sm:$0xff] }
 0x24f   :  { %1519 = vmatpush.msrb.mxu2 %v1029_v2  ;;  %1538 = vmatpush.msrb.mxu3 %v1165_v44  ;;  %v1132_v6 = vld [vmem:[#allocation2 + $0xcf0] sm:$0xff]  ;;  %v997_v2 = vld [vmem:[#allocation2 + $0x8b8] sm:$0xff] }
 0x250   :  { %1480 = vmatpush.msrb.mxu0 %v1020_v20  ;;  %1499 = vmatpush.msrb.mxu1 %v1156_v30  ;;  %v1133_v44 = vld [vmem:[#allocation2 + $0xcf8] sm:$0xff]  ;;  %v988_v20 = vld [vmem:[#allocation2 + $0x870] sm:$0xff] }
 0x251   :  { %1520 = vmatpush.msrb.mxu2 %v1021_v11  ;;  %1539 = vmatpush.msrb.mxu3 %v1157_v23  ;;  %v1124_v30 = vld [vmem:[#allocation2 + $0xcb0] sm:$0xff]  ;;  %v989_v11 = vld [vmem:[#allocation2 + $0x878] sm:$0xff] }
 0x252   :  { %1481 = vmatpush.msrb.mxu0 %v1012_v45  ;;  %1500 = vmatpush.msrb.mxu1 %v1148_v29  ;;  %v1125_v23 = vld [vmem:[#allocation2 + $0xcb8] sm:$0xff]  ;;  %v980_v45 = vld [vmem:[#allocation2 + $0x830] sm:$0xff] }
 0x253   :  { %1521 = vmatpush.msrb.mxu2 %v1013_v58  ;;  %1540 = vmatpush.msrb.mxu3 %v1149_v52  ;;  %v1116_v29 = vld [vmem:[#allocation2 + $0xc70] sm:$0xff]  ;;  %v981_v58 = vld [vmem:[#allocation2 + $0x838] sm:$0xff] }
 0x254   :  { %1482 = vmatpush.msrb.mxu0 %v1004_v57  ;;  %1501 = vmatpush.msrb.mxu1 %v1140_v0  ;;  %v1117_v52 = vld [vmem:[#allocation2 + $0xc78] sm:$0xff]  ;;  %v1108_v57 = vld [vmem:[#allocation2 + $0xc30] sm:$0xff] }
 0x255   :  { %1522 = vmatpush.msrb.mxu2 %v1005_v37  ;;  %1541 = vmatpush.msrb.mxu3 %v1141_v61  ;;  %v1109_v0 = vld [vmem:[#allocation2 + $0xc38] sm:$0xff]  ;;  %v5883_v37 = vld [vmem:[#allocation101_spill] sm:$0xff] }
 0x256   :  { %1483 = vmatpush.msrb.mxu0 %v996_v26  ;;  %1502 = vmatpush.msrb.mxu1 %v1132_v6  ;;  %v5884_v61 = vld [vmem:[#allocation213_spill] sm:$0xff]  ;;  %v5885_v26 = vld [vmem:[#allocation94_spill] sm:$0xff] }
 0x257   :  { %1523 = vmatpush.msrb.mxu2 %v997_v2  ;;  %1542 = vmatpush.msrb.mxu3 %v1133_v44  ;;  %v5886_v6 = vld [vmem:[#allocation206_spill] sm:$0xff]  ;;  %v5887_v2 = vld [vmem:[#allocation95_spill] sm:$0xff] }
 0x258   :  { %1484 = vmatpush.msrb.mxu0 %v988_v20  ;;  %1503 = vmatpush.msrb.mxu1 %v1124_v30  ;;  %v5888_v44 = vld [vmem:[#allocation207_spill] sm:$0xff]  ;;  %v5889_v20 = vld [vmem:[#allocation88_spill] sm:$0xff] }
 0x259   :  { %1524 = vmatpush.msrb.mxu2 %v989_v11  ;;  %1543 = vmatpush.msrb.mxu3 %v1125_v23  ;;  %v5890_v30 = vld [vmem:[#allocation200_spill] sm:$0xff]  ;;  %v5891_v11 = vld [vmem:[#allocation89_spill] sm:$0xff] }
 0x25a   :  { %1485 = vmatpush.msrb.mxu0 %v980_v45  ;;  %1504 = vmatpush.msrb.mxu1 %v1116_v29  ;;  %v5892_v23 = vld [vmem:[#allocation201_spill] sm:$0xff]  ;;  %v5893_v45 = vld [vmem:[#allocation82_spill] sm:$0xff] }
 0x25b   :  { %1525 = vmatpush.msrb.mxu2 %v981_v58  ;;  %1544 = vmatpush.msrb.mxu3 %v1117_v52  ;;  %v5894_v29 = vld [vmem:[#allocation194_spill] sm:$0xff]  ;;  %v5895_v58 = vld [vmem:[#allocation83_spill] sm:$0xff] }
 0x25c   :  { %1406 = vmatmul.f32.vlgmr.msra.gmra.mxu0 %v4410_v12  ;;  %1446 = vmatmul.f32.vlgmr.msra.gmra.mxu2 %v4410_v12  ;;  %v5896_v52 = vld [vmem:[#allocation195_spill] sm:$0xff] }
 0x25d   :  { %1466 = vmatmul.f32.vlgmr.msra.gmra.mxu3 %v4412_v56  ;;  %1550 = vmatpush.msra.mxu0 %v4662_v1  ;;  %v5842_v1 = vld [vmem:[#allocation173_spill] sm:$0xff] }
 0x25e   :  { %1590 = vmatpush.msra.mxu2 %v4664_v13  ;;  %1505 = vmatpush.msrb.mxu1 %v1108_v57  ;;  %v5848_v13 = vld [vmem:[#allocation156_spill] sm:$0xff] }
 0x25f   :  { %1545 = vmatpush.msrb.mxu3 %v1109_v0  ;;  %1426 = vmatmul.f32.vlgmr.msra.gmra.mxu1 %v4412_v56  ;;  %v5897_v57 = vld [vmem:[#allocation76_spill] sm:$0xff] }
 0x260   :  { %1551 = vmatpush.msra.mxu0 %v4646_v9  ;;  %1570 = vmatpush.msra.mxu1 %v4918_v24  ;;  %v5844_v9 = vld [vmem:[#allocation164_spill] sm:$0xff] }
 0x261   :  { %1591 = vmatpush.msra.mxu2 %v4648_v28  ;;  %1610 = vmatpush.msra.mxu3 %v4920_v22  ;;  %v5841_v22 = vld [vmem:[#allocation61_spill] sm:$0xff]  ;;  %v5854_v24 = vld [vmem:[#allocation148_spill] sm:$0xff]  ;;  %v5861_v28 = vld [vmem:[#allocation130_spill] sm:$0xff] }
 0x262   :  { %1552 = vmatpush.msra.mxu0 %v4630_v53  ;;  %1571 = vmatpush.msra.mxu1 %v4902_v18  ;;  %v5838_v18 = vld [vmem:[#allocation181_spill] sm:$0xff]  ;;  %v5881_v53 = vld [vmem:[#allocation100_spill] sm:$0xff] }
 0x263   :  { %1592 = vmatpush.msra.mxu2 %v4632_v25  ;;  %1611 = vmatpush.msra.mxu3 %v4904_v54  ;;  %v5837_v54 = vld [vmem:[#allocation69_spill] sm:$0xff]  ;;  %v5898_v0 = vld [vmem:[#allocation188_spill] sm:$0xff] }
 0x264   :  { %1553 = vmatpush.msra.mxu0 %v4614_v42  ;;  %1572 = vmatpush.msra.mxu1 %v4886_v31  ;;  %v5845_v25 = vld [vmem:[#allocation53_spill] sm:$0xff]  ;;  %v5847_v31 = vld [vmem:[#allocation44_spill] sm:$0xff]  ;;  %v5870_v42 = vld [vmem:[#allocation230_spill] sm:$0xff] }
 0x265   :  { %1593 = vmatpush.msra.mxu2 %v4616_v35  ;;  %1612 = vmatpush.msra.mxu3 %v4888_v7  ;;  %v5859_v7 = vld [vmem:[#allocation137_spill] sm:$0xff]  ;;  %v5869_v35 = vld [vmem:[#allocation118_spill] sm:$0xff] }
 0x266   :  { %1554 = vmatpush.msra.mxu0 %v4598_v33  ;;  %1573 = vmatpush.msra.mxu1 %v4870_v15  ;;  %v5875_v33 = vld [vmem:[#allocation113_spill] sm:$0xff]  ;;  %v5882_v15 = vld [vmem:[#allocation212_spill] sm:$0xff] }
 0x267   :  { %1594 = vmatpush.msra.mxu2 %v4600_v17  ;;  %1613 = vmatpush.msra.mxu3 %v4872_v14  ;;  %v5851_v17 = vld [vmem:[#allocation38_spill] sm:$0xff]  ;;  %v5860_v14 = vld [vmem:[#allocation249_spill] sm:$0xff] }
 0x268   :  { %1555 = vmatpush.msra.mxu0 %v4582_v27  ;;  %1574 = vmatpush.msra.mxu1 %v4854_v8  ;;  %v5856_v27 = vld [vmem:[#allocation39_spill] sm:$0xff] }
 0x269   :  { %1595 = vmatpush.msra.mxu2 %v4584_v40  ;;  %1614 = vmatpush.msra.mxu3 %v4856_v50  ;;  %v5862_v50 = vld [vmem:[#allocation242_spill] sm:$0xff]  ;;  %v5871_v8 = vld [vmem:[#allocation119_spill] sm:$0xff] }
 0x26a   :  { %1556 = vmatpush.msra.mxu0 %v4566_v49  ;;  %1575 = vmatpush.msra.mxu1 %v4838_v46  ;;  %v5835_v49 = vld [vmem:[#allocation68_spill] sm:$0xff]  ;;  %v5877_v40 = vld [vmem:[#allocation106_spill] sm:$0xff] }
 0x26b   :  { %1596 = vmatpush.msra.mxu2 %v4568_v55  ;;  %1615 = vmatpush.msra.mxu3 %v4840_v10  ;;  %v5836_v55 = vld [vmem:[#allocation180_spill] sm:$0xff]  ;;  %v5846_v10 = vld [vmem:[#allocation165_spill] sm:$0xff] }
 0x26c   :  { %1557 = vmatpush.msra.mxu0 %v4550_v51  ;;  %1576 = vmatpush.msra.mxu1 %v4822_v39  ;;  %v5855_v39 = vld [vmem:[#allocation149_spill] sm:$0xff]  ;;  %v5858_v51 = vld [vmem:[#allocation248_spill] sm:$0xff] }
 0x26d   :  { %1597 = vmatpush.msra.mxu2 %v4552_v48  ;;  %1616 = vmatpush.msra.mxu3 %v4824_v34  ;;  %v5857_v48 = vld [vmem:[#allocation136_spill] sm:$0xff]  ;;  %v5868_v34 = vld [vmem:[#allocation237_spill] sm:$0xff] }
 0x26e   :  { %1558 = vmatpush.msra.mxu0 %v4534_v60  ;;  %1577 = vmatpush.msra.mxu1 %v4806_v21  ;;  %v5840_v60 = vld [vmem:[#allocation172_spill] sm:$0xff]  ;;  %v5853_v21 = vld [vmem:[#allocation143_spill] sm:$0xff] }
 0x26f   :  { %1598 = vmatpush.msra.mxu2 %v4536_v59  ;;  %1617 = vmatpush.msra.mxu3 %v4808_v16  ;;  %v5839_v59 = vld [vmem:[#allocation60_spill] sm:$0xff]  ;;  %v5850_v16 = vld [vmem:[#allocation157_spill] sm:$0xff] }
 0x270   :  { %1559 = vmatpush.msra.mxu0 %v4518_v38  ;;  %1578 = vmatpush.msra.mxu1 %v4790_v62  ;;  %v5863_v62 = vld [vmem:[#allocation131_spill] sm:$0xff]  ;;  %v5874_v46 = vld [vmem:[#allocation224_spill] sm:$0xff]  ;;  %v5878_v38 = vld [vmem:[#allocation218_spill] sm:$0xff] }
 0x271   :  { %1599 = vmatpush.msra.mxu2 %v4520_v41  ;;  %1618 = vmatpush.msra.mxu3 %v4792_v47  ;;  %v5876_v47 = vld [vmem:[#allocation225_spill] sm:$0xff]  ;;  %v5879_v41 = vld [vmem:[#allocation107_spill] sm:$0xff] }
 0x272   :  { %1560 = vmatpush.msra.mxu0 %v4502_v43  ;;  %1579 = vmatpush.msra.mxu1 %v4774_v63  ;;  %v5872_v43 = vld [vmem:[#allocation231_spill] sm:$0xff] }
 0x273   :  { %1600 = vmatpush.msra.mxu2 %v4504_v36  ;;  %1619 = vmatpush.msra.mxu3 %v4776_v19  ;;  %v5852_v19 = vld [vmem:[#allocation142_spill] sm:$0xff]  ;;  %v5873_v36 = vld [vmem:[#allocation112_spill] sm:$0xff]  ;;  %v5880_v63 = vld [vmem:[#allocation219_spill] sm:$0xff] }
 0x274   :  { %1561 = vmatpush.msra.mxu0 %v4486_v5  ;;  %1580 = vmatpush.msra.mxu1 %v4758_v4  ;;  %v5865_v5 = vld [vmem:[#allocation124_spill] sm:$0xff]  ;;  %v5867_v4 = vld [vmem:[#allocation125_spill] sm:$0xff] }
 0x275   :  { %1601 = vmatpush.msra.mxu2 %v4488_v32  ;;  %1620 = vmatpush.msra.mxu3 %v4760_v3  ;;  %v5864_v3 = vld [vmem:[#allocation243_spill] sm:$0xff]  ;;  %v5866_v32 = vld [vmem:[#allocation236_spill] sm:$0xff] }
 0x276   :  { %1486 = vmatmul.f32.vlgmr.msrb.gmra.mxu0 %v4410_v12  ;;  %1526 = vmatmul.f32.vlgmr.msrb.gmra.mxu2 %v4410_v12  ;;  %v5843_v12 = vld [vmem:[#allocation52_spill] sm:$0xff] }
 0x277   :  { %1562 = vmatpush.msra.mxu0 %v5835_v49  ;;  %1581 = vmatpush.msra.mxu1 %v5836_v55  ;;  %v5899_v49 = vld [vmem:[#allocation77_spill] sm:$0xff] }
 0x278   :  { %1602 = vmatpush.msra.mxu2 %v5837_v54  ;;  %1621 = vmatpush.msra.mxu3 %v5838_v18  ;;  %v5900_v55 = vld [vmem:[#allocation189_spill] sm:$0xff]  ;;  %v5901_v54 = vld [vmem:[#allocation70_spill] sm:$0xff] }
 0x279   :  { %1506 = vmatmul.f32.vlgmr.msrb.gmra.mxu1 %v4412_v56  ;;  %1546 = vmatmul.f32.vlgmr.msrb.gmra.mxu3 %v4412_v56  ;;  %v5849_v56 = vld [vmem:[#allocation45_spill] sm:$0xff]  ;;  %v5902_v18 = vld [vmem:[#allocation182_spill] sm:$0xff] }
 0x27a   :  { %1563 = vmatpush.msra.mxu0 %v5839_v59  ;;  %1582 = vmatpush.msra.mxu1 %v5840_v60  ;;  %v5903_v59 = vld [vmem:[#allocation71_spill] sm:$0xff] }
 0x27b   :  { %1603 = vmatpush.msra.mxu2 %v5841_v22  ;;  %1622 = vmatpush.msra.mxu3 %v5842_v1  ;;  %v5904_v60 = vld [vmem:[#allocation183_spill] sm:$0xff]  ;;  %v5905_v22 = vld [vmem:[#allocation62_spill] sm:$0xff] }
 0x27c   :  { %1564 = vmatpush.msra.mxu0 %v5843_v12  ;;  %1583 = vmatpush.msra.mxu1 %v5844_v9  ;;  %v5906_v1 = vld [vmem:[#allocation174_spill] sm:$0xff]  ;;  %v5907_v12 = vld [vmem:[#allocation63_spill] sm:$0xff] }
 0x27d   :  { %1604 = vmatpush.msra.mxu2 %v5845_v25  ;;  %1623 = vmatpush.msra.mxu3 %v5846_v10  ;;  %v5908_v9 = vld [vmem:[#allocation175_spill] sm:$0xff]  ;;  %v5909_v25 = vld [vmem:[#allocation54_spill] sm:$0xff] }
 0x27e   :  { %1565 = vmatpush.msra.mxu0 %v5847_v31  ;;  %1584 = vmatpush.msra.mxu1 %v5848_v13  ;;  %v5910_v10 = vld [vmem:[#allocation166_spill] sm:$0xff]  ;;  %v5911_v31 = vld [vmem:[#allocation55_spill] sm:$0xff] }
 0x27f   :  { %1605 = vmatpush.msra.mxu2 %v5849_v56  ;;  %1624 = vmatpush.msra.mxu3 %v5850_v16  ;;  %v5912_v13 = vld [vmem:[#allocation167_spill] sm:$0xff]  ;;  %v5913_v56 = vld [vmem:[#allocation46_spill] sm:$0xff] }
 0x280   :  { %1566 = vmatmul.f32.vlgmr.msra.gmra.mxu0 %v5851_v17  ;;  %1606 = vmatmul.f32.vlgmr.msra.gmra.mxu2 %v5851_v17  ;;  %v5914_v16 = vld [vmem:[#allocation158_spill] sm:$0xff] }
 0x281   :  { %1630 = vmatpush.msrb.mxu0 %v5852_v19  ;;  %1670 = vmatpush.msrb.mxu2 %v5853_v21  ;;  %v5915_v19 = vld [vmem:[#allocation47_spill] sm:$0xff] }
 0x282   :  { %1585 = vmatpush.msra.mxu1 %v5854_v24  ;;  %1625 = vmatpush.msra.mxu3 %v5855_v39  ;;  %v5916_v21 = vld [vmem:[#allocation159_spill] sm:$0xff]  ;;  %v5917_v24 = vld [vmem:[#allocation144_spill] sm:$0xff]  ;;  %v5918_v39 = vld [vmem:[#allocation145_spill] sm:$0xff] }
 0x283   :  { %1586 = vmatmul.f32.vlgmr.msra.gmra.mxu1 %v5856_v27  ;;  %1626 = vmatmul.f32.vlgmr.msra.gmra.mxu3 %v5856_v27 }
 0x284   :  { %1631 = vmatpush.msrb.mxu0 %v5857_v48  ;;  %1650 = vmatpush.msrb.mxu1 %v5858_v51  ;;  %v5919_v48 = vld [vmem:[#allocation150_spill] sm:$0xff]  ;;  %v5920_v51 = vld [vmem:[#allocation151_spill] sm:$0xff] }
 0x285   :  { %1671 = vmatpush.msrb.mxu2 %v5859_v7  ;;  %1690 = vmatpush.msrb.mxu3 %v5860_v14  ;;  %v5921_v7 = vld [vmem:[#allocation138_spill] sm:$0xff] }
 0x286   :  { %1632 = vmatpush.msrb.mxu0 %v5861_v28  ;;  %1651 = vmatpush.msrb.mxu1 %v5862_v50  ;;  %v5922_v14 = vld [vmem:[#allocation250_spill] sm:$0xff]  ;;  %v5923_v28 = vld [vmem:[#allocation139_spill] sm:$0xff] }
 0x287   :  { %1672 = vmatpush.msrb.mxu2 %v5863_v62  ;;  %1691 = vmatpush.msrb.mxu3 %v5864_v3  ;;  %v5924_v50 = vld [vmem:[#allocation251_spill] sm:$0xff]  ;;  %v5925_v62 = vld [vmem:[#allocation132_spill] sm:$0xff] }
 0x288   :  { %1633 = vmatpush.msrb.mxu0 %v5865_v5  ;;  %1652 = vmatpush.msrb.mxu1 %v5866_v32  ;;  %v5926_v3 = vld [vmem:[#allocation244_spill] sm:$0xff]  ;;  %v5927_v5 = vld [vmem:[#allocation133_spill] sm:$0xff] }
 0x289   :  { %1673 = vmatpush.msrb.mxu2 %v5867_v4  ;;  %1692 = vmatpush.msrb.mxu3 %v5868_v34  ;;  %v5928_v32 = vld [vmem:[#allocation245_spill] sm:$0xff]  ;;  %v5929_v4 = vld [vmem:[#allocation126_spill] sm:$0xff] }
 0x28a   :  { %1634 = vmatpush.msrb.mxu0 %v5869_v35  ;;  %1653 = vmatpush.msrb.mxu1 %v5870_v42  ;;  %v5930_v34 = vld [vmem:[#allocation238_spill] sm:$0xff]  ;;  %v5931_v35 = vld [vmem:[#allocation127_spill] sm:$0xff] }
 0x28b   :  { %1674 = vmatpush.msrb.mxu2 %v5871_v8  ;;  %1693 = vmatpush.msrb.mxu3 %v5872_v43  ;;  %v5932_v42 = vld [vmem:[#allocation239_spill] sm:$0xff]  ;;  %v5933_v8 = vld [vmem:[#allocation120_spill] sm:$0xff] }
 0x28c   :  { %1635 = vmatpush.msrb.mxu0 %v5873_v36  ;;  %1654 = vmatpush.msrb.mxu1 %v5874_v46  ;;  %v5934_v43 = vld [vmem:[#allocation232_spill] sm:$0xff]  ;;  %v5935_v36 = vld [vmem:[#allocation121_spill] sm:$0xff] }
 0x28d   :  { %1675 = vmatpush.msrb.mxu2 %v5875_v33  ;;  %1694 = vmatpush.msrb.mxu3 %v5876_v47  ;;  %v5936_v46 = vld [vmem:[#allocation233_spill] sm:$0xff]  ;;  %v5937_v33 = vld [vmem:[#allocation114_spill] sm:$0xff] }
 0x28e   :  { %1636 = vmatpush.msrb.mxu0 %v5877_v40  ;;  %1655 = vmatpush.msrb.mxu1 %v5878_v38  ;;  %v5938_v47 = vld [vmem:[#allocation226_spill] sm:$0xff]  ;;  %v5939_v40 = vld [vmem:[#allocation115_spill] sm:$0xff] }
 0x28f   :  { %1676 = vmatpush.msrb.mxu2 %v5879_v41  ;;  %1695 = vmatpush.msrb.mxu3 %v5880_v63  ;;  %v5940_v38 = vld [vmem:[#allocation227_spill] sm:$0xff]  ;;  %v5941_v41 = vld [vmem:[#allocation108_spill] sm:$0xff] }
 0x290   :  { %1637 = vmatpush.msrb.mxu0 %v5881_v53  ;;  %1656 = vmatpush.msrb.mxu1 %v5882_v15  ;;  %v5942_v63 = vld [vmem:[#allocation220_spill] sm:$0xff]  ;;  %v5943_v53 = vld [vmem:[#allocation109_spill] sm:$0xff] }
 0x291   :  { %1677 = vmatpush.msrb.mxu2 %v5883_v37  ;;  %1696 = vmatpush.msrb.mxu3 %v5884_v61  ;;  %v5944_v15 = vld [vmem:[#allocation221_spill] sm:$0xff]  ;;  %v5945_v37 = vld [vmem:[#allocation102_spill] sm:$0xff] }
 0x292   :  { %1638 = vmatpush.msrb.mxu0 %v5885_v26  ;;  %1657 = vmatpush.msrb.mxu1 %v5886_v6  ;;  %v5946_v61 = vld [vmem:[#allocation214_spill] sm:$0xff]  ;;  %v5947_v26 = vld [vmem:[#allocation103_spill] sm:$0xff] }
 0x293   :  { %1678 = vmatpush.msrb.mxu2 %v5887_v2  ;;  %1697 = vmatpush.msrb.mxu3 %v5888_v44  ;;  %v5948_v6 = vld [vmem:[#allocation215_spill] sm:$0xff]  ;;  %v5949_v2 = vld [vmem:[#allocation96_spill] sm:$0xff] }
 0x294   :  { %1639 = vmatpush.msrb.mxu0 %v5889_v20  ;;  %1658 = vmatpush.msrb.mxu1 %v5890_v30  ;;  %v5950_v44 = vld [vmem:[#allocation208_spill] sm:$0xff]  ;;  %v5951_v20 = vld [vmem:[#allocation97_spill] sm:$0xff] }
 0x295   :  { %1679 = vmatpush.msrb.mxu2 %v5891_v11  ;;  %1698 = vmatpush.msrb.mxu3 %v5892_v23  ;;  %v5952_v30 = vld [vmem:[#allocation209_spill] sm:$0xff]  ;;  %v5953_v11 = vld [vmem:[#allocation90_spill] sm:$0xff] }
 0x296   :  { %1640 = vmatpush.msrb.mxu0 %v5893_v45  ;;  %1659 = vmatpush.msrb.mxu1 %v5894_v29  ;;  %v5954_v23 = vld [vmem:[#allocation202_spill] sm:$0xff]  ;;  %v5955_v45 = vld [vmem:[#allocation91_spill] sm:$0xff] }
 0x297   :  { %1680 = vmatpush.msrb.mxu2 %v5895_v58  ;;  %1699 = vmatpush.msrb.mxu3 %v5896_v52  ;;  %v5956_v29 = vld [vmem:[#allocation203_spill] sm:$0xff]  ;;  %v5957_v58 = vld [vmem:[#allocation84_spill] sm:$0xff] }
 0x298   :  { %1641 = vmatpush.msrb.mxu0 %v5897_v57  ;;  %1660 = vmatpush.msrb.mxu1 %v5898_v0  ;;  %v5958_v52 = vld [vmem:[#allocation196_spill] sm:$0xff]  ;;  %v5959_v57 = vld [vmem:[#allocation85_spill] sm:$0xff] }
 0x299   :  { %1681 = vmatpush.msrb.mxu2 %v5899_v49  ;;  %1700 = vmatpush.msrb.mxu3 %v5900_v55  ;;  %v5960_v0 = vld [vmem:[#allocation197_spill] sm:$0xff]  ;;  %v5961_v49 = vld [vmem:[#allocation78_spill] sm:$0xff] }
 0x29a   :  { %1642 = vmatpush.msrb.mxu0 %v5901_v54  ;;  %1661 = vmatpush.msrb.mxu1 %v5902_v18  ;;  %v5962_v55 = vld [vmem:[#allocation190_spill] sm:$0xff]  ;;  %v5963_v54 = vld [vmem:[#allocation79_spill] sm:$0xff] }
 0x29b   :  { %1682 = vmatpush.msrb.mxu2 %v5903_v59  ;;  %1701 = vmatpush.msrb.mxu3 %v5904_v60  ;;  %v5964_v18 = vld [vmem:[#allocation191_spill] sm:$0xff]  ;;  %v5965_v59 = vld [vmem:[#allocation72_spill] sm:$0xff] }
 0x29c   :  { %1643 = vmatpush.msrb.mxu0 %v5905_v22  ;;  %1662 = vmatpush.msrb.mxu1 %v5906_v1  ;;  %v5966_v60 = vld [vmem:[#allocation184_spill] sm:$0xff]  ;;  %v5967_v22 = vld [vmem:[#allocation73_spill] sm:$0xff] }
 0x29d   :  { %1683 = vmatpush.msrb.mxu2 %v5907_v12  ;;  %1702 = vmatpush.msrb.mxu3 %v5908_v9  ;;  %v5968_v1 = vld [vmem:[#allocation185_spill] sm:$0xff]  ;;  %v5969_v12 = vld [vmem:[#allocation64_spill] sm:$0xff] }
 0x29e   :  { %1644 = vmatpush.msrb.mxu0 %v5909_v25  ;;  %1663 = vmatpush.msrb.mxu1 %v5910_v10  ;;  %v5970_v9 = vld [vmem:[#allocation176_spill] sm:$0xff]  ;;  %v5971_v25 = vld [vmem:[#allocation65_spill] sm:$0xff] }
 0x29f   :  { %1684 = vmatpush.msrb.mxu2 %v5911_v31  ;;  %1703 = vmatpush.msrb.mxu3 %v5912_v13  ;;  %v5972_v10 = vld [vmem:[#allocation177_spill] sm:$0xff]  ;;  %v5973_v31 = vld [vmem:[#allocation56_spill] sm:$0xff] }
 0x2a0   :  { %1645 = vmatpush.msrb.mxu0 %v5913_v56  ;;  %1664 = vmatpush.msrb.mxu1 %v5914_v16  ;;  %v5974_v13 = vld [vmem:[#allocation168_spill] sm:$0xff]  ;;  %v5975_v56 = vld [vmem:[#allocation57_spill] sm:$0xff] }
 0x2a1   :  { %1685 = vmatpush.msrb.mxu2 %v5915_v19  ;;  %1704 = vmatpush.msrb.mxu3 %v5916_v21  ;;  %v5976_v16 = vld [vmem:[#allocation169_spill] sm:$0xff]  ;;  %v5977_v19 = vld [vmem:[#allocation48_spill] sm:$0xff] }
 0x2a2   :  { %1646 = vmatmul.f32.vlgmr.msrb.gmra.mxu0 %v5851_v17  ;;  %1686 = vmatmul.f32.vlgmr.msrb.gmra.mxu2 %v5851_v17  ;;  %v5978_v21 = vld [vmem:[#allocation160_spill] sm:$0xff] }
 0x2a3   :  { %1710 = vmatpush.msra.mxu0 %v5917_v24  ;;  %1750 = vmatpush.msra.mxu2 %v5918_v39  ;;  %v5979_v24 = vld [vmem:[#allocation49_spill] sm:$0xff] }
 0x2a4   :  { %1665 = vmatpush.msrb.mxu1 %v5919_v48  ;;  %1705 = vmatpush.msrb.mxu3 %v5920_v51  ;;  %v5980_v39 = vld [vmem:[#allocation161_spill] sm:$0xff]  ;;  %v5981_v48 = vld [vmem:[#allocation146_spill] sm:$0xff]  ;;  %v5982_v51 = vld [vmem:[#allocation147_spill] sm:$0xff] }
 0x2a5   :  { %1666 = vmatmul.f32.vlgmr.msrb.gmra.mxu1 %v5856_v27  ;;  %1706 = vmatmul.f32.vlgmr.msrb.gmra.mxu3 %v5856_v27 }
 0x2a6   :  { %1711 = vmatpush.msra.mxu0 %v5921_v7  ;;  %1730 = vmatpush.msra.mxu1 %v5922_v14  ;;  %v5983_v7 = vld [vmem:[#allocation152_spill] sm:$0xff]  ;;  %v5984_v14 = vld [vmem:[#allocation153_spill] sm:$0xff] }
 0x2a7   :  { %1751 = vmatpush.msra.mxu2 %v5923_v28  ;;  %1770 = vmatpush.msra.mxu3 %v5924_v50  ;;  %v5985_v28 = vld [vmem:[#allocation140_spill] sm:$0xff] }
 0x2a8   :  { %1712 = vmatpush.msra.mxu0 %v5925_v62  ;;  %1731 = vmatpush.msra.mxu1 %v5926_v3  ;;  %v5986_v50 = vld [vmem:[#allocation252_spill] sm:$0xff]  ;;  %v5987_v62 = vld [vmem:[#allocation141_spill] sm:$0xff] }
 0x2a9   :  { %1752 = vmatpush.msra.mxu2 %v5927_v5  ;;  %1771 = vmatpush.msra.mxu3 %v5928_v32  ;;  %v5988_v3 = vld [vmem:[#allocation253_spill] sm:$0xff]  ;;  %v5989_v5 = vld [vmem:[#allocation134_spill] sm:$0xff] }
 0x2aa   :  { %1713 = vmatpush.msra.mxu0 %v5929_v4  ;;  %1732 = vmatpush.msra.mxu1 %v5930_v34  ;;  %v5990_v32 = vld [vmem:[#allocation246_spill] sm:$0xff]  ;;  %v5991_v4 = vld [vmem:[#allocation135_spill] sm:$0xff] }
 0x2ab   :  { %1753 = vmatpush.msra.mxu2 %v5931_v35  ;;  %1772 = vmatpush.msra.mxu3 %v5932_v42  ;;  %v5992_v34 = vld [vmem:[#allocation247_spill] sm:$0xff]  ;;  %v5993_v35 = vld [vmem:[#allocation128_spill] sm:$0xff] }
 0x2ac   :  { %1714 = vmatpush.msra.mxu0 %v5933_v8  ;;  %1733 = vmatpush.msra.mxu1 %v5934_v43  ;;  %v5994_v42 = vld [vmem:[#allocation240_spill] sm:$0xff]  ;;  %v5995_v8 = vld [vmem:[#allocation129_spill] sm:$0xff] }
 0x2ad   :  { %1754 = vmatpush.msra.mxu2 %v5935_v36  ;;  %1773 = vmatpush.msra.mxu3 %v5936_v46  ;;  %v5996_v43 = vld [vmem:[#allocation241_spill] sm:$0xff]  ;;  %v5997_v36 = vld [vmem:[#allocation122_spill] sm:$0xff] }
 0x2ae   :  { %1715 = vmatpush.msra.mxu0 %v5937_v33  ;;  %1734 = vmatpush.msra.mxu1 %v5938_v47  ;;  %v5998_v46 = vld [vmem:[#allocation234_spill] sm:$0xff]  ;;  %v5999_v33 = vld [vmem:[#allocation123_spill] sm:$0xff] }
 0x2af   :  { %1755 = vmatpush.msra.mxu2 %v5939_v40  ;;  %1774 = vmatpush.msra.mxu3 %v5940_v38  ;;  %v6000_v47 = vld [vmem:[#allocation235_spill] sm:$0xff]  ;;  %v6001_v40 = vld [vmem:[#allocation116_spill] sm:$0xff] }
 0x2b0   :  { %1716 = vmatpush.msra.mxu0 %v5941_v41  ;;  %1735 = vmatpush.msra.mxu1 %v5942_v63  ;;  %v6002_v38 = vld [vmem:[#allocation228_spill] sm:$0xff]  ;;  %v6003_v41 = vld [vmem:[#allocation117_spill] sm:$0xff] }
 0x2b1   :  { %1756 = vmatpush.msra.mxu2 %v5943_v53  ;;  %1775 = vmatpush.msra.mxu3 %v5944_v15  ;;  %v6004_v63 = vld [vmem:[#allocation229_spill] sm:$0xff]  ;;  %v6005_v53 = vld [vmem:[#allocation110_spill] sm:$0xff] }
 0x2b2   :  { %1717 = vmatpush.msra.mxu0 %v5945_v37  ;;  %1736 = vmatpush.msra.mxu1 %v5946_v61  ;;  %v6006_v15 = vld [vmem:[#allocation222_spill] sm:$0xff]  ;;  %v6007_v37 = vld [vmem:[#allocation111_spill] sm:$0xff] }
 0x2b3   :  { %1757 = vmatpush.msra.mxu2 %v5947_v26  ;;  %1776 = vmatpush.msra.mxu3 %v5948_v6  ;;  %v6008_v61 = vld [vmem:[#allocation223_spill] sm:$0xff]  ;;  %v6009_v26 = vld [vmem:[#allocation104_spill] sm:$0xff] }
 0x2b4   :  { %1718 = vmatpush.msra.mxu0 %v5949_v2  ;;  %1737 = vmatpush.msra.mxu1 %v5950_v44  ;;  %v6010_v6 = vld [vmem:[#allocation216_spill] sm:$0xff]  ;;  %v6011_v2 = vld [vmem:[#allocation105_spill] sm:$0xff] }
 0x2b5   :  { %1758 = vmatpush.msra.mxu2 %v5951_v20  ;;  %1777 = vmatpush.msra.mxu3 %v5952_v30  ;;  %v6012_v44 = vld [vmem:[#allocation217_spill] sm:$0xff]  ;;  %v6013_v20 = vld [vmem:[#allocation98_spill] sm:$0xff] }
 0x2b6   :  { %1719 = vmatpush.msra.mxu0 %v5953_v11  ;;  %1738 = vmatpush.msra.mxu1 %v5954_v23  ;;  %v6014_v30 = vld [vmem:[#allocation210_spill] sm:$0xff]  ;;  %v6015_v11 = vld [vmem:[#allocation99_spill] sm:$0xff] }
 0x2b7   :  { %1759 = vmatpush.msra.mxu2 %v5955_v45  ;;  %1778 = vmatpush.msra.mxu3 %v5956_v29  ;;  %v6016_v23 = vld [vmem:[#allocation211_spill] sm:$0xff]  ;;  %v6017_v45 = vld [vmem:[#allocation92_spill] sm:$0xff] }
 0x2b8   :  { %1720 = vmatpush.msra.mxu0 %v5957_v58  ;;  %1739 = vmatpush.msra.mxu1 %v5958_v52  ;;  %v6018_v29 = vld [vmem:[#allocation204_spill] sm:$0xff]  ;;  %v6019_v58 = vld [vmem:[#allocation93_spill] sm:$0xff] }
 0x2b9   :  { %1760 = vmatpush.msra.mxu2 %v5959_v57  ;;  %1779 = vmatpush.msra.mxu3 %v5960_v0  ;;  %v6020_v52 = vld [vmem:[#allocation205_spill] sm:$0xff]  ;;  %v6021_v57 = vld [vmem:[#allocation86_spill] sm:$0xff] }
 0x2ba   :  { %1721 = vmatpush.msra.mxu0 %v5961_v49  ;;  %1740 = vmatpush.msra.mxu1 %v5962_v55  ;;  %v6022_v0 = vld [vmem:[#allocation198_spill] sm:$0xff]  ;;  %v1247_v49 = vpop.f32.mrf.mxu0  ;;  %v6023_v55 = vld [vmem:[#allocation87_spill] sm:$0xff] }
 0x2bb   :  { %1761 = vmatpush.msra.mxu2 %v5963_v54  ;;  %1780 = vmatpush.msra.mxu3 %v5964_v18  ;;  %v6024_v54 = vld [vmem:[#allocation199_spill] sm:$0xff]  ;;  %v6025_v18 = vld [vmem:[#allocation80_spill] sm:$0xff] }
 0x2bc   :  { %1722 = vmatpush.msra.mxu0 %v5965_v59  ;;  %1741 = vmatpush.msra.mxu1 %v5966_v60  ;;  %v6026_v59 = vld [vmem:[#allocation192_spill] sm:$0xff]  ;;  %v6027_v60 = vld [vmem:[#allocation81_spill] sm:$0xff] }
 0x2bd   :  { %1762 = vmatpush.msra.mxu2 %v5967_v22  ;;  %1781 = vmatpush.msra.mxu3 %v5968_v1  ;;  %v6028_v22 = vld [vmem:[#allocation193_spill] sm:$0xff]  ;;  %v1267_v1 = vpop.f32.mrf.mxu1 }
 0x2be   :  { %1723 = vmatpush.msra.mxu0 %v5969_v12  ;;  %1742 = vmatpush.msra.mxu1 %v5970_v9  ;;  %v6029_v12 = vld [vmem:[#allocation74_spill] sm:$0xff] }
 0x2bf   :  { %1763 = vmatpush.msra.mxu2 %v5971_v25  ;;  %1782 = vmatpush.msra.mxu3 %v5972_v10  ;;  %v6030_v9 = vld [vmem:[#allocation186_spill] sm:$0xff]  ;;  %v6031_v25 = vld [vmem:[#allocation75_spill] sm:$0xff] }
 0x2c0   :  { %1724 = vmatpush.msra.mxu0 %v5973_v31  ;;  %1743 = vmatpush.msra.mxu1 %v5974_v13  ;;  %v6032_v10 = vld [vmem:[#allocation187_spill] sm:$0xff]  ;;  %v6033_v31 = vld [vmem:[#allocation66_spill] sm:$0xff] }
 0x2c1   :  { %1764 = vmatpush.msra.mxu2 %v5975_v56  ;;  %1783 = vmatpush.msra.mxu3 %v5976_v16  ;;  %v6034_v13 = vld [vmem:[#allocation178_spill] sm:$0xff]  ;;  %v1287_v56 = vpop.f32.mrf.mxu2  ;;  %v6035_v16 = vld [vmem:[#allocation67_spill] sm:$0xff] }
 0x2c2   :  { %1725 = vmatpush.msra.mxu0 %v5977_v19  ;;  %1744 = vmatpush.msra.mxu1 %v5978_v21  ;;  %v6036_v19 = vld [vmem:[#allocation179_spill] sm:$0xff]  ;;  %v6037_v21 = vld [vmem:[#allocation58_spill] sm:$0xff] }
 0x2c3   :  { %1765 = vmatpush.msra.mxu2 %v5979_v24  ;;  %1784 = vmatpush.msra.mxu3 %v5980_v39  ;;  %v6038_v24 = vld [vmem:[#allocation170_spill] sm:$0xff]  ;;  %v1327_v39 = vpop.f32.mrf.mxu0 }
 0x2c4   :  { %1726 = vmatmul.f32.vlgmr.msra.gmra.mxu0 %v5851_v17  ;;  %1766 = vmatmul.f32.vlgmr.msra.gmra.mxu2 %v5851_v17 }
 0x2c5   :  { %1790 = vmatpush.msrb.mxu0 %v5981_v48  ;;  %1830 = vmatpush.msrb.mxu2 %v5982_v51  ;;  %v6039_v48 = vld [vmem:[#allocation59_spill] sm:$0xff] }
 0x2c6   :  { %1745 = vmatpush.msra.mxu1 %v5983_v7  ;;  %1785 = vmatpush.msra.mxu3 %v5984_v14  ;;  %v6040_v51 = vld [vmem:[#allocation171_spill] sm:$0xff]  ;;  %v1307_v7 = vpop.f32.mrf.mxu3  ;;  %v6041_v14 = vld [vmem:[#allocation50_spill] sm:$0xff] }
 0x2c7   :  { %1746 = vmatmul.f32.vlgmr.msra.gmra.mxu1 %v5856_v27  ;;  %1786 = vmatmul.f32.vlgmr.msra.gmra.mxu3 %v5856_v27 }
 0x2c8   :  { %1791 = vmatpush.msrb.mxu0 %v5985_v28  ;;  %1810 = vmatpush.msrb.mxu1 %v5986_v50  ;;  %v6042_v28 = vld [vmem:[#allocation162_spill] sm:$0xff]  ;;  %v6043_v50 = vld [vmem:[#allocation51_spill] sm:$0xff] }
 0x2c9   :  { %1831 = vmatpush.msrb.mxu2 %v5987_v62  ;;  %1850 = vmatpush.msrb.mxu3 %v5988_v3  ;;  %v6044_v62 = vld [vmem:[#allocation163_spill] sm:$0xff]  ;;  %v1347_v3 = vpop.f32.mrf.mxu1 }
 0x2ca   :  { %1792 = vmatpush.msrb.mxu0 %v5989_v5  ;;  %1811 = vmatpush.msrb.mxu1 %v5990_v32  ;;  %v6045_v5 = vld [vmem:[#allocation154_spill] sm:$0xff]  ;;  %v6046_v32 = vld [vmem:[#allocation155_spill] sm:$0xff] }
 0x2cb   :  { %1832 = vmatpush.msrb.mxu2 %v5991_v4  ;;  %1851 = vmatpush.msrb.mxu3 %v5992_v34  ;;  %v1367_v4 = vpop.f32.mrf.mxu2 }
 0x2cc   :  { %1793 = vmatpush.msrb.mxu0 %v5993_v35  ;;  %1812 = vmatpush.msrb.mxu1 %v5994_v42 }
 0x2cd   :  { %1833 = vmatpush.msrb.mxu2 %v5995_v8  ;;  %1852 = vmatpush.msrb.mxu3 %v5996_v43 }
 0x2ce   :  { %1794 = vmatpush.msrb.mxu0 %v5997_v36  ;;  %1813 = vmatpush.msrb.mxu1 %v5998_v46  ;;  %v1387_v35 = vpop.f32.mrf.mxu3 }
 0x2cf   :  { %1834 = vmatpush.msrb.mxu2 %v5999_v33  ;;  %1853 = vmatpush.msrb.mxu3 %v6000_v47  ;;  %v1268_v47 = vadd.f32 %v1267_v1, %v1247_v49 }
 0x2d0   :  { %1795 = vmatpush.msrb.mxu0 %v6001_v40  ;;  %1814 = vmatpush.msrb.mxu1 %v6002_v38 }
 0x2d1   :  { %1835 = vmatpush.msrb.mxu2 %v6003_v41  ;;  %1854 = vmatpush.msrb.mxu3 %v6004_v63 }
 0x2d2   :  { %1796 = vmatpush.msrb.mxu0 %v6005_v53  ;;  %1815 = vmatpush.msrb.mxu1 %v6006_v15  ;;  %v1308_v53 = vadd.f32 %v1307_v7, %v1287_v56 }
 0x2d3   :  { %1836 = vmatpush.msrb.mxu2 %v6007_v37  ;;  %1855 = vmatpush.msrb.mxu3 %v6008_v61 }
 0x2d4   :  { %1797 = vmatpush.msrb.mxu0 %v6009_v26  ;;  %1816 = vmatpush.msrb.mxu1 %v6010_v6  ;;  %v1348_v26 = vadd.f32 %v1347_v3, %v1327_v39 }
 0x2d5   :  { %1837 = vmatpush.msrb.mxu2 %v6011_v2  ;;  %1856 = vmatpush.msrb.mxu3 %v6012_v44 }
 0x2d6   :  { %1798 = vmatpush.msrb.mxu0 %v6013_v20  ;;  %1817 = vmatpush.msrb.mxu1 %v6014_v30  ;;  %v1388_v30 = vadd.f32 %v1387_v35, %v1367_v4 }
 0x2d7   :  { %1838 = vmatpush.msrb.mxu2 %v6015_v11  ;;  %1857 = vmatpush.msrb.mxu3 %v6016_v23 }
 0x2d8   :  { %1799 = vmatpush.msrb.mxu0 %v6017_v45  ;;  %1818 = vmatpush.msrb.mxu1 %v6018_v29 }
 0x2d9   :  { %1839 = vmatpush.msrb.mxu2 %v6019_v58  ;;  %1858 = vmatpush.msrb.mxu3 %v6020_v52  ;;  %v1407_v34 = vpop.f32.mrf.mxu0 }
 0x2da   :  { %1800 = vmatpush.msrb.mxu0 %v6021_v57  ;;  %1819 = vmatpush.msrb.mxu1 %v6022_v0 }
 0x2db   :  { %1840 = vmatpush.msrb.mxu2 %v6023_v55  ;;  %1859 = vmatpush.msrb.mxu3 %v6024_v54 }
 0x2dc   :  { %1801 = vmatpush.msrb.mxu0 %v6025_v18  ;;  %1820 = vmatpush.msrb.mxu1 %v6026_v59  ;;  %v1427_v42 = vpop.f32.mrf.mxu1 }
 0x2dd   :  { %1841 = vmatpush.msrb.mxu2 %v6027_v60  ;;  %1860 = vmatpush.msrb.mxu3 %v6028_v22  ;;  %v1428_v58 = vadd.f32 %v1427_v42, %v1407_v34 }
 0x2de   :  { %1802 = vmatpush.msrb.mxu0 %v6029_v12  ;;  %1821 = vmatpush.msrb.mxu1 %v6030_v9 }
 0x2df   :  { %1842 = vmatpush.msrb.mxu2 %v6031_v25  ;;  %1861 = vmatpush.msrb.mxu3 %v6032_v10  ;;  %v1447_v8 = vpop.f32.mrf.mxu2 }
 0x2e0   :  { %1803 = vmatpush.msrb.mxu0 %v6033_v31  ;;  %1822 = vmatpush.msrb.mxu1 %v6034_v13  ;;  %v1467_v36 = vpop.f32.mrf.mxu3 }
 0x2e1   :  { %1843 = vmatpush.msrb.mxu2 %v6035_v16  ;;  %1862 = vmatpush.msrb.mxu3 %v6036_v19  ;;  %v1468_v55 = vadd.f32 %v1467_v36, %v1447_v8 }
 0x2e2   :  { %1804 = vmatpush.msrb.mxu0 %v6037_v21  ;;  %1823 = vmatpush.msrb.mxu1 %v6038_v24 }
 0x2e3   :  { %1844 = vmatpush.msrb.mxu2 %v6039_v48  ;;  %1863 = vmatpush.msrb.mxu3 %v6040_v51 }
 0x2e4   :  { %1805 = vmatpush.msrb.mxu0 %v6041_v14  ;;  %1824 = vmatpush.msrb.mxu1 %v6042_v28 }
 0x2e5   :  { %1845 = vmatpush.msrb.mxu2 %v6043_v50  ;;  %1864 = vmatpush.msrb.mxu3 %v6044_v62 }
 0x2e6   :  { %1806 = vmatmul.f32.vlgmr.msrb.gmra.mxu0 %v5851_v17  ;;  %1846 = vmatmul.f32.vlgmr.msrb.gmra.mxu2 %v5851_v17 }
 0x2e7   :  { %1825 = vmatpush.msrb.mxu1 %v6045_v5  ;;  %1865 = vmatpush.msrb.mxu3 %v6046_v32 }
 0x2e8   :  { %1826 = vmatmul.f32.vlgmr.msrb.gmra.mxu1 %v5856_v27  ;;  %1866 = vmatmul.f32.vlgmr.msrb.gmra.mxu3 %v5856_v27 }
 0x2f3   :  { %v1487_v43 = vpop.f32.mrf.mxu0 }
 0x2f6   :  { %v1507_v46 = vpop.f32.mrf.mxu1 }
 0x2f7   :  { %v1508_v22 = vadd.f32 %v1507_v46, %v1487_v43 }
 0x2f9   :  { %v1527_v33 = vpop.f32.mrf.mxu2 }
 0x2fc   :  { %v1547_v40 = vpop.f32.mrf.mxu3 }
 0x2fd   :  { %v1567_v17 = vpop.f32.mrf.mxu0  ;;  %v1548_v10 = vadd.f32 %v1547_v40, %v1527_v33 }
 0x2fe   :  { %v1568_v38 = vadd.f32 %v1567_v17, %v1268_v47 }
 0x300   :  { %v1587_v41 = vpop.f32.mrf.mxu1 }
 0x301   :  { %v5222_v63 = vadd.f32 %v1587_v41, %v1568_v38 }
 0x303   :  { %v1607_v15 = vpop.f32.mrf.mxu2 }
 0x304   :  { %v1608_v37 = vadd.f32 %v1607_v15, %v1308_v53 }
 0x306   :  { %v1627_v27 = vpop.f32.mrf.mxu3 }
 0x307   :  { %v5224_v61 = vadd.f32 %v1627_v27, %v1608_v37 }
 0x31f   :  { %v1647_v6 = vpop.f32.mrf.mxu0 }
 0x320   :  { %v1648_v2 = vadd.f32 %v1647_v6, %v1348_v26 }
 0x322   :  { %v1667_v44 = vpop.f32.mrf.mxu1 }
 0x323   :  { %v5226_v20 = vadd.f32 %v1667_v44, %v1648_v2 }
 0x325   :  { %v1687_v11 = vpop.f32.mrf.mxu2 }
 0x326   :  { %v1688_v23 = vadd.f32 %v1687_v11, %v1388_v30 }
 0x328   :  { %v1707_v45 = vpop.f32.mrf.mxu3 }
 0x329   :  { %v5228_v29 = vadd.f32 %v1707_v45, %v1688_v23 }
 0x341   :  { %v1727_v52 = vpop.f32.mrf.mxu0 }
 0x342   :  { %v1728_v57 = vadd.f32 %v1727_v52, %v1428_v58 }
 0x344   :  { %v1747_v0 = vpop.f32.mrf.mxu1 }
 0x345   :  { %v5230_v49 = vadd.f32 %v1747_v0, %v1728_v57 }
 0x347   :  { %v1767_v54 = vpop.f32.mrf.mxu2 }
 0x348   :  { %v1768_v18 = vadd.f32 %v1767_v54, %v1468_v55 }
 0x34a   :  { %v1787_v59 = vpop.f32.mrf.mxu3 }
 0x34b   :  { %v5232_v60 = vadd.f32 %v1787_v59, %v1768_v18 }
 0x363   :  { %v1807_v1 = vpop.f32.mrf.mxu0 }
 0x364   :  { %v1808_v12 = vadd.f32 %v1807_v1, %v1508_v22 }
 0x365   :  { %v1827_v9 = vpop.f32.mrf.mxu1 }
 0x366   :  { %v5234_v25 = vadd.f32 %v1827_v9, %v1808_v12 }
 0x369   :  { %v1847_v31 = vpop.f32.mrf.mxu2 }
 0x36a   :  { %v1848_v13 = vadd.f32 %v1847_v31, %v1548_v10 }
 0x36b   :  { %v1867_v56 = vpop.f32.mrf.mxu3 }
 0x36c   :  { %v5236_v16 = vadd.f32 %v1867_v56, %v1848_v13 }
 0x36d   :  { %4062 = dma.done.wait [#allocation4 + $0x2], 32768 }
 0x36e   :  { %4063 = vsyncadd [#allocation4 + $0x2], 4294934528  ;;  %v1993_v19 = vld [vmem:[#allocation2 + $0x13c8] sm:$0xff]  ;;  %v1992_v7 = vld [vmem:[#allocation2 + $0x13c0] sm:$0xff] }
 0x36f   :  { %v2121_v21 = vld [vmem:[#allocation2 + $0x17c8] sm:$0xff]  ;;  %2168 = vmatpush.msra.mxu2 %v1993_v19  ;;  %v2120_v14 = vld [vmem:[#allocation2 + $0x17c0] sm:$0xff]  ;;  %2128 = vmatpush.msra.mxu0 %v1992_v7 }
 0x370   :  { %v1985_v24 = vld [vmem:[#allocation2 + $0x1388] sm:$0xff]  ;;  %2188 = vmatpush.msra.mxu3 %v2121_v21  ;;  %v1984_v28 = vld [vmem:[#allocation2 + $0x1380] sm:$0xff]  ;;  %2148 = vmatpush.msra.mxu1 %v2120_v14 }
 0x371   :  { %v2113_v39 = vld [vmem:[#allocation2 + $0x1788] sm:$0xff]  ;;  %2169 = vmatpush.msra.mxu2 %v1985_v24  ;;  %v2112_v50 = vld [vmem:[#allocation2 + $0x1780] sm:$0xff]  ;;  %2129 = vmatpush.msra.mxu0 %v1984_v28  ;;  %v1987_v28 = vld [vmem:[#allocation2 + $0x1398] sm:$0xff] }
 0x372   :  { %v1977_v48 = vld [vmem:[#allocation2 + $0x1348] sm:$0xff]  ;;  %2189 = vmatpush.msra.mxu3 %v2113_v39  ;;  %v1976_v5 = vld [vmem:[#allocation2 + $0x1340] sm:$0xff]  ;;  %2149 = vmatpush.msra.mxu1 %v2112_v50  ;;  %v2115_v50 = vld [vmem:[#allocation2 + $0x1798] sm:$0xff] }
 0x373   :  { %v2105_v51 = vld [vmem:[#allocation2 + $0x1748] sm:$0xff]  ;;  %2170 = vmatpush.msra.mxu2 %v1977_v48  ;;  %v2104_v32 = vld [vmem:[#allocation2 + $0x1740] sm:$0xff]  ;;  %2130 = vmatpush.msra.mxu0 %v1976_v5  ;;  %v1995_v48 = vld [vmem:[#allocation2 + $0x13d8] sm:$0xff] }
 0x374   :  { %v1969_v62 = vld [vmem:[#allocation2 + $0x1308] sm:$0xff]  ;;  %2190 = vmatpush.msra.mxu3 %v2105_v51  ;;  %v1968_v35 = vld [vmem:[#allocation2 + $0x1300] sm:$0xff]  ;;  %2150 = vmatpush.msra.mxu1 %v2104_v32  ;;  %v2123_v51 = vld [vmem:[#allocation2 + $0x17d8] sm:$0xff] }
 0x375   :  { %v2097_v3 = vld [vmem:[#allocation2 + $0x1708] sm:$0xff]  ;;  %2171 = vmatpush.msra.mxu2 %v1969_v62  ;;  %v2096_v42 = vld [vmem:[#allocation2 + $0x1700] sm:$0xff]  ;;  %2131 = vmatpush.msra.mxu0 %v1968_v35  ;;  %v1979_v5 = vld [vmem:[#allocation2 + $0x1358] sm:$0xff] }
 0x376   :  { %v1961_v4 = vld [vmem:[#allocation2 + $0x12c8] sm:$0xff]  ;;  %2191 = vmatpush.msra.mxu3 %v2097_v3  ;;  %v1960_v36 = vld [vmem:[#allocation2 + $0x12c0] sm:$0xff]  ;;  %2151 = vmatpush.msra.mxu1 %v2096_v42  ;;  %v2107_v32 = vld [vmem:[#allocation2 + $0x1758] sm:$0xff] }
 0x377   :  { %v2089_v34 = vld [vmem:[#allocation2 + $0x16c8] sm:$0xff]  ;;  %2172 = vmatpush.msra.mxu2 %v1961_v4  ;;  %v2088_v46 = vld [vmem:[#allocation2 + $0x16c0] sm:$0xff]  ;;  %2132 = vmatpush.msra.mxu0 %v1960_v36  ;;  %v1994_v4 = vld [vmem:[#allocation2 + $0x13d0] sm:$0xff] }
 0x378   :  { %v1953_v8 = vld [vmem:[#allocation2 + $0x1288] sm:$0xff]  ;;  %2192 = vmatpush.msra.mxu3 %v2089_v34  ;;  %v1952_v40 = vld [vmem:[#allocation2 + $0x1280] sm:$0xff]  ;;  %2152 = vmatpush.msra.mxu1 %v2088_v46  ;;  %v2122_v34 = vld [vmem:[#allocation2 + $0x17d0] sm:$0xff] }
 0x379   :  { %v2081_v43 = vld [vmem:[#allocation2 + $0x1688] sm:$0xff]  ;;  %2173 = vmatpush.msra.mxu2 %v1953_v8  ;;  %v2080_v17 = vld [vmem:[#allocation2 + $0x1680] sm:$0xff]  ;;  %2133 = vmatpush.msra.mxu0 %v1952_v40  ;;  %v1971_v35 = vld [vmem:[#allocation2 + $0x1318] sm:$0xff] }
 0x37a   :  { %v1945_v33 = vld [vmem:[#allocation2 + $0x1248] sm:$0xff]  ;;  %2193 = vmatpush.msra.mxu3 %v2081_v43  ;;  %v1944_v53 = vld [vmem:[#allocation2 + $0x1240] sm:$0xff]  ;;  %2153 = vmatpush.msra.mxu1 %v2080_v17  ;;  %v2099_v42 = vld [vmem:[#allocation2 + $0x1718] sm:$0xff] }
 0x37b   :  { %v2073_v47 = vld [vmem:[#allocation2 + $0x1648] sm:$0xff]  ;;  %2174 = vmatpush.msra.mxu2 %v1945_v33  ;;  %v2072_v15 = vld [vmem:[#allocation2 + $0x1640] sm:$0xff]  ;;  %2134 = vmatpush.msra.mxu0 %v1944_v53  ;;  %v1986_v8 = vld [vmem:[#allocation2 + $0x1390] sm:$0xff] }
 0x37c   :  { %v1937_v38 = vld [vmem:[#allocation2 + $0x1208] sm:$0xff]  ;;  %2194 = vmatpush.msra.mxu3 %v2073_v47  ;;  %v1936_v26 = vld [vmem:[#allocation2 + $0x1200] sm:$0xff]  ;;  %2154 = vmatpush.msra.mxu1 %v2072_v15  ;;  %v2114_v43 = vld [vmem:[#allocation2 + $0x1790] sm:$0xff] }
 0x37d   :  { %v2065_v41 = vld [vmem:[#allocation2 + $0x1608] sm:$0xff]  ;;  %2175 = vmatpush.msra.mxu2 %v1937_v38  ;;  %v2064_v6 = vld [vmem:[#allocation2 + $0x1600] sm:$0xff]  ;;  %2135 = vmatpush.msra.mxu0 %v1936_v26  ;;  %v1963_v36 = vld [vmem:[#allocation2 + $0x12d8] sm:$0xff] }
 0x37e   :  { %v1929_v37 = vld [vmem:[#allocation2 + $0x11c8] sm:$0xff]  ;;  %2195 = vmatpush.msra.mxu3 %v2065_v41  ;;  %v1928_v30 = vld [vmem:[#allocation2 + $0x11c0] sm:$0xff]  ;;  %2155 = vmatpush.msra.mxu1 %v2064_v6  ;;  %v2091_v46 = vld [vmem:[#allocation2 + $0x16d8] sm:$0xff] }
 0x37f   :  { %v2057_v27 = vld [vmem:[#allocation2 + $0x15c8] sm:$0xff]  ;;  %2176 = vmatpush.msra.mxu2 %v1929_v37  ;;  %v2056_v11 = vld [vmem:[#allocation2 + $0x15c0] sm:$0xff]  ;;  %2136 = vmatpush.msra.mxu0 %v1928_v30  ;;  %v1978_v33 = vld [vmem:[#allocation2 + $0x1350] sm:$0xff] }
 0x380   :  { %v1921_v2 = vld [vmem:[#allocation2 + $0x1188] sm:$0xff]  ;;  %2196 = vmatpush.msra.mxu3 %v2057_v27  ;;  %v1920_v58 = vld [vmem:[#allocation2 + $0x1180] sm:$0xff]  ;;  %2156 = vmatpush.msra.mxu1 %v2056_v11  ;;  %v2106_v47 = vld [vmem:[#allocation2 + $0x1750] sm:$0xff] }
 0x381   :  { %v2049_v44 = vld [vmem:[#allocation2 + $0x1588] sm:$0xff]  ;;  %2177 = vmatpush.msra.mxu2 %v1921_v2  ;;  %v2048_v52 = vld [vmem:[#allocation2 + $0x1580] sm:$0xff]  ;;  %2137 = vmatpush.msra.mxu0 %v1920_v58  ;;  %v1955_v40 = vld [vmem:[#allocation2 + $0x1298] sm:$0xff] }
 0x382   :  { %v1913_v23 = vld [vmem:[#allocation2 + $0x1148] sm:$0xff]  ;;  %2197 = vmatpush.msra.mxu3 %v2049_v44  ;;  %v1912_v55 = vld [vmem:[#allocation2 + $0x1140] sm:$0xff]  ;;  %2157 = vmatpush.msra.mxu1 %v2048_v52  ;;  %v2083_v17 = vld [vmem:[#allocation2 + $0x1698] sm:$0xff] }
 0x383   :  { %v2041_v45 = vld [vmem:[#allocation2 + $0x1548] sm:$0xff]  ;;  %2178 = vmatpush.msra.mxu2 %v1913_v23  ;;  %v2040_v54 = vld [vmem:[#allocation2 + $0x1540] sm:$0xff]  ;;  %2138 = vmatpush.msra.mxu0 %v1912_v55  ;;  %v1970_v38 = vld [vmem:[#allocation2 + $0x1310] sm:$0xff] }
 0x384   :  { %v1905_v57 = vld [vmem:[#allocation2 + $0x1108] sm:$0xff]  ;;  %2198 = vmatpush.msra.mxu3 %v2041_v45  ;;  %v1904_v22 = vld [vmem:[#allocation2 + $0x1100] sm:$0xff]  ;;  %2158 = vmatpush.msra.mxu1 %v2040_v54  ;;  %v2098_v41 = vld [vmem:[#allocation2 + $0x1710] sm:$0xff] }
 0x385   :  { %v2033_v0 = vld [vmem:[#allocation2 + $0x1508] sm:$0xff]  ;;  %2179 = vmatpush.msra.mxu2 %v1905_v57  ;;  %v2032_v1 = vld [vmem:[#allocation2 + $0x1500] sm:$0xff]  ;;  %2139 = vmatpush.msra.mxu0 %v1904_v22  ;;  %v1947_v53 = vld [vmem:[#allocation2 + $0x1258] sm:$0xff] }
 0x386   :  { %v1897_v18 = vld [vmem:[#allocation2 + $0x10c8] sm:$0xff]  ;;  %2199 = vmatpush.msra.mxu3 %v2033_v0  ;;  %v1896_v10 = vld [vmem:[#allocation2 + $0x10c0] sm:$0xff]  ;;  %2159 = vmatpush.msra.mxu1 %v2032_v1  ;;  %v2075_v15 = vld [vmem:[#allocation2 + $0x1658] sm:$0xff] }
 0x387   :  { %v2025_v59 = vld [vmem:[#allocation2 + $0x14c8] sm:$0xff]  ;;  %2180 = vmatpush.msra.mxu2 %v1897_v18  ;;  %v2024_v31 = vld [vmem:[#allocation2 + $0x14c0] sm:$0xff]  ;;  %2140 = vmatpush.msra.mxu0 %v1896_v10  ;;  %v1962_v37 = vld [vmem:[#allocation2 + $0x12d0] sm:$0xff] }
 0x388   :  { %v1889_v12 = vld [vmem:[#allocation2 + $0x1088] sm:$0xff]  ;;  %2200 = vmatpush.msra.mxu3 %v2025_v59  ;;  %v1888_v19 = vld [vmem:[#allocation2 + $0x1080] sm:$0xff]  ;;  %2160 = vmatpush.msra.mxu1 %v2024_v31  ;;  %v2090_v27 = vld [vmem:[#allocation2 + $0x16d0] sm:$0xff] }
 0x389   :  { %v2017_v9 = vld [vmem:[#allocation2 + $0x1488] sm:$0xff]  ;;  %2181 = vmatpush.msra.mxu2 %v1889_v12  ;;  %v2016_v21 = vld [vmem:[#allocation2 + $0x1480] sm:$0xff]  ;;  %2141 = vmatpush.msra.mxu0 %v1888_v19  ;;  %v1939_v26 = vld [vmem:[#allocation2 + $0x1218] sm:$0xff] }
 0x38a   :  { %v1881_v13 = vld [vmem:[#allocation2 + $0x1048] sm:$0xff]  ;;  %2201 = vmatpush.msra.mxu3 %v2017_v9  ;;  %2161 = vmatpush.msra.mxu1 %v2016_v21  ;;  %v1880_v7 = vld [vmem:[#allocation2 + $0x1040] sm:$0xff]  ;;  %v2067_v6 = vld [vmem:[#allocation2 + $0x1618] sm:$0xff] }
 0x38b   :  { %v2009_v56 = vld [vmem:[#allocation2 + $0x1448] sm:$0xff]  ;;  %2182 = vmatpush.msra.mxu2 %v1881_v13  ;;  %v2008_v14 = vld [vmem:[#allocation2 + $0x1440] sm:$0xff]  ;;  %2142 = vmatpush.msra.mxu0 %v1880_v7  ;;  %v1954_v2 = vld [vmem:[#allocation2 + $0x1290] sm:$0xff] }
 0x38c   :  { %v1873_v24 = vld [vmem:[#allocation2 + $0x1008] sm:$0xff]  ;;  %2202 = vmatpush.msra.mxu3 %v2009_v56  ;;  %v1872_v62 = vld [vmem:[#allocation2 + $0x1000] sm:$0xff]  ;;  %2162 = vmatpush.msra.mxu1 %v2008_v14  ;;  %v2082_v44 = vld [vmem:[#allocation2 + $0x1690] sm:$0xff] }
 0x38d   :  { %v2001_v39 = vld [vmem:[#allocation2 + $0x1408] sm:$0xff]  ;;  %2183 = vmatpush.msra.mxu2 %v1873_v24  ;;  %v2000_v3 = vld [vmem:[#allocation2 + $0x1400] sm:$0xff]  ;;  %2143 = vmatpush.msra.mxu0 %v1872_v62  ;;  %v1931_v30 = vld [vmem:[#allocation2 + $0x11d8] sm:$0xff] }
 0x38e   :  { %2203 = vmatpush.msra.mxu3 %v2001_v39  ;;  %2163 = vmatpush.msra.mxu1 %v2000_v3  ;;  %v2059_v11 = vld [vmem:[#allocation2 + $0x15d8] sm:$0xff]  ;;  %v1946_v23 = vld [vmem:[#allocation2 + $0x1250] sm:$0xff]  ;;  %v1997_v62 = vld [vmem:[#allocation2 + $0x13e8] sm:$0xff] }
 0x38f   :  { %2248 = vmatpush.msrb.mxu2 %v1995_v48  ;;  %2208 = vmatpush.msrb.mxu0 %v1994_v4  ;;  %v2074_v45 = vld [vmem:[#allocation2 + $0x1650] sm:$0xff]  ;;  %v1923_v58 = vld [vmem:[#allocation2 + $0x1198] sm:$0xff]  ;;  %v2125_v3 = vld [vmem:[#allocation2 + $0x17e8] sm:$0xff] }
 0x390   :  { %2268 = vmatpush.msrb.mxu3 %v2123_v51  ;;  %2228 = vmatpush.msrb.mxu1 %v2122_v34  ;;  %v2051_v52 = vld [vmem:[#allocation2 + $0x1598] sm:$0xff]  ;;  %v1938_v57 = vld [vmem:[#allocation2 + $0x1210] sm:$0xff]  ;;  %v6047_v4 = vld [vmem:[#allocation40_spill] sm:$0xff] }
 0x391   :  { %2249 = vmatpush.msrb.mxu2 %v1987_v28  ;;  %2209 = vmatpush.msrb.mxu0 %v1986_v8  ;;  %v2066_v0 = vld [vmem:[#allocation2 + $0x1610] sm:$0xff]  ;;  %v1915_v55 = vld [vmem:[#allocation2 + $0x1158] sm:$0xff] }
 0x392   :  { %2269 = vmatpush.msrb.mxu3 %v2115_v50  ;;  %2229 = vmatpush.msrb.mxu1 %v2114_v43  ;;  %v2043_v54 = vld [vmem:[#allocation2 + $0x1558] sm:$0xff]  ;;  %v1930_v18 = vld [vmem:[#allocation2 + $0x11d0] sm:$0xff] }
 0x393   :  { %2250 = vmatpush.msrb.mxu2 %v1979_v5  ;;  %2210 = vmatpush.msrb.mxu0 %v1978_v33  ;;  %v2058_v59 = vld [vmem:[#allocation2 + $0x15d0] sm:$0xff]  ;;  %v1907_v22 = vld [vmem:[#allocation2 + $0x1118] sm:$0xff] }
 0x394   :  { %2270 = vmatpush.msrb.mxu3 %v2107_v32  ;;  %2230 = vmatpush.msrb.mxu1 %v2106_v47  ;;  %v2035_v1 = vld [vmem:[#allocation2 + $0x1518] sm:$0xff]  ;;  %v1922_v12 = vld [vmem:[#allocation2 + $0x1190] sm:$0xff] }
 0x395   :  { %2251 = vmatpush.msrb.mxu2 %v1971_v35  ;;  %2211 = vmatpush.msrb.mxu0 %v1970_v38  ;;  %v2050_v9 = vld [vmem:[#allocation2 + $0x1590] sm:$0xff]  ;;  %v1899_v10 = vld [vmem:[#allocation2 + $0x10d8] sm:$0xff]  ;;  %v1989_v35 = vld [vmem:[#allocation2 + $0x13a8] sm:$0xff] }
 0x396   :  { %2271 = vmatpush.msrb.mxu3 %v2099_v42  ;;  %2231 = vmatpush.msrb.mxu1 %v2098_v41  ;;  %v2027_v31 = vld [vmem:[#allocation2 + $0x14d8] sm:$0xff]  ;;  %v1914_v13 = vld [vmem:[#allocation2 + $0x1150] sm:$0xff]  ;;  %v2117_v42 = vld [vmem:[#allocation2 + $0x17a8] sm:$0xff] }
 0x397   :  { %2252 = vmatpush.msrb.mxu2 %v1963_v36  ;;  %2212 = vmatpush.msrb.mxu0 %v1962_v37  ;;  %v2042_v56 = vld [vmem:[#allocation2 + $0x1550] sm:$0xff]  ;;  %v1891_v19 = vld [vmem:[#allocation2 + $0x1098] sm:$0xff]  ;;  %v1981_v36 = vld [vmem:[#allocation2 + $0x1368] sm:$0xff] }
 0x398   :  { %2272 = vmatpush.msrb.mxu3 %v2091_v46  ;;  %2232 = vmatpush.msrb.mxu1 %v2090_v27  ;;  %v2019_v21 = vld [vmem:[#allocation2 + $0x1498] sm:$0xff]  ;;  %v1906_v24 = vld [vmem:[#allocation2 + $0x1110] sm:$0xff]  ;;  %v2109_v46 = vld [vmem:[#allocation2 + $0x1768] sm:$0xff] }
 0x399   :  { %2253 = vmatpush.msrb.mxu2 %v1955_v40  ;;  %2213 = vmatpush.msrb.mxu0 %v1954_v2  ;;  %v2034_v39 = vld [vmem:[#allocation2 + $0x1510] sm:$0xff]  ;;  %v1883_v48 = vld [vmem:[#allocation2 + $0x1058] sm:$0xff]  ;;  %v1996_v40 = vld [vmem:[#allocation2 + $0x13e0] sm:$0xff] }
 0x39a   :  { %2273 = vmatpush.msrb.mxu3 %v2083_v17  ;;  %2233 = vmatpush.msrb.mxu1 %v2082_v44  ;;  %v2011_v51 = vld [vmem:[#allocation2 + $0x1458] sm:$0xff]  ;;  %v1898_v7 = vld [vmem:[#allocation2 + $0x10d0] sm:$0xff]  ;;  %v2124_v17 = vld [vmem:[#allocation2 + $0x17e0] sm:$0xff] }
 0x39b   :  { %2254 = vmatpush.msrb.mxu2 %v1947_v53  ;;  %2214 = vmatpush.msrb.mxu0 %v1946_v23  ;;  %v2026_v14 = vld [vmem:[#allocation2 + $0x14d0] sm:$0xff]  ;;  %v1875_v28 = vld [vmem:[#allocation2 + $0x1018] sm:$0xff]  ;;  %v1973_v38 = vld [vmem:[#allocation2 + $0x1328] sm:$0xff] }
 0x39c   :  { %2274 = vmatpush.msrb.mxu3 %v2075_v15  ;;  %2234 = vmatpush.msrb.mxu1 %v2074_v45  ;;  %v2003_v50 = vld [vmem:[#allocation2 + $0x1418] sm:$0xff]  ;;  %v1890_v5 = vld [vmem:[#allocation2 + $0x1090] sm:$0xff]  ;;  %v2101_v41 = vld [vmem:[#allocation2 + $0x1728] sm:$0xff] }
 0x39d   :  { %2255 = vmatpush.msrb.mxu2 %v1939_v26  ;;  %2215 = vmatpush.msrb.mxu0 %v1938_v57  ;;  %v2018_v32 = vld [vmem:[#allocation2 + $0x1490] sm:$0xff]  ;;  %v1988_v53 = vld [vmem:[#allocation2 + $0x13a0] sm:$0xff]  ;;  %v1965_v37 = vld [vmem:[#allocation2 + $0x12e8] sm:$0xff] }
 0x39e   :  { %2275 = vmatpush.msrb.mxu3 %v2067_v6  ;;  %2235 = vmatpush.msrb.mxu1 %v2066_v0  ;;  %v6048_v34 = vld [vmem:[#allocation41_spill] sm:$0xff]  ;;  %v2116_v15 = vld [vmem:[#allocation2 + $0x17a0] sm:$0xff] }
 0x39f   :  { %2256 = vmatpush.msrb.mxu2 %v1931_v30  ;;  %2216 = vmatpush.msrb.mxu0 %v1930_v18  ;;  %v1882_v8 = vld [vmem:[#allocation2 + $0x1050] sm:$0xff]  ;;  %v2093_v27 = vld [vmem:[#allocation2 + $0x16e8] sm:$0xff]  ;;  %v1980_v26 = vld [vmem:[#allocation2 + $0x1360] sm:$0xff] }
 0x3a0   :  { %2276 = vmatpush.msrb.mxu3 %v2059_v11  ;;  %2236 = vmatpush.msrb.mxu1 %v2058_v59  ;;  %v2010_v43 = vld [vmem:[#allocation2 + $0x1450] sm:$0xff]  ;;  %v2108_v6 = vld [vmem:[#allocation2 + $0x1760] sm:$0xff]  ;;  %v1957_v2 = vld [vmem:[#allocation2 + $0x12a8] sm:$0xff] }
 0x3a1   :  { %2257 = vmatpush.msrb.mxu2 %v1923_v58  ;;  %2217 = vmatpush.msrb.mxu0 %v1922_v12  ;;  %v1874_v33 = vld [vmem:[#allocation2 + $0x1010] sm:$0xff]  ;;  %v2085_v44 = vld [vmem:[#allocation2 + $0x16a8] sm:$0xff]  ;;  %v1972_v30 = vld [vmem:[#allocation2 + $0x1320] sm:$0xff] }
 0x3a2   :  { %2277 = vmatpush.msrb.mxu3 %v2051_v52  ;;  %2237 = vmatpush.msrb.mxu1 %v2050_v9  ;;  %v2002_v47 = vld [vmem:[#allocation2 + $0x1410] sm:$0xff]  ;;  %v2100_v11 = vld [vmem:[#allocation2 + $0x1720] sm:$0xff]  ;;  %v1949_v23 = vld [vmem:[#allocation2 + $0x1268] sm:$0xff] }
 0x3a3   :  { %2258 = vmatpush.msrb.mxu2 %v1915_v55  ;;  %2218 = vmatpush.msrb.mxu0 %v1914_v13  ;;  %v2077_v45 = vld [vmem:[#allocation2 + $0x1668] sm:$0xff]  ;;  %v1964_v58 = vld [vmem:[#allocation2 + $0x12e0] sm:$0xff] }
 0x3a4   :  { %2278 = vmatpush.msrb.mxu3 %v2043_v54  ;;  %2238 = vmatpush.msrb.mxu1 %v2042_v56  ;;  %v2092_v52 = vld [vmem:[#allocation2 + $0x16e0] sm:$0xff]  ;;  %v1941_v57 = vld [vmem:[#allocation2 + $0x1228] sm:$0xff] }
 0x3a5   :  { %2259 = vmatpush.msrb.mxu2 %v1907_v22  ;;  %2219 = vmatpush.msrb.mxu0 %v1906_v24  ;;  %v2069_v0 = vld [vmem:[#allocation2 + $0x1628] sm:$0xff]  ;;  %v1956_v55 = vld [vmem:[#allocation2 + $0x12a0] sm:$0xff] }
 0x3a6   :  { %2279 = vmatpush.msrb.mxu3 %v2035_v1  ;;  %2239 = vmatpush.msrb.mxu1 %v2034_v39  ;;  %v2084_v54 = vld [vmem:[#allocation2 + $0x16a0] sm:$0xff]  ;;  %v1933_v18 = vld [vmem:[#allocation2 + $0x11e8] sm:$0xff] }
 0x3a7   :  { %2260 = vmatpush.msrb.mxu2 %v1899_v10  ;;  %2220 = vmatpush.msrb.mxu0 %v1898_v7  ;;  %v2061_v59 = vld [vmem:[#allocation2 + $0x15e8] sm:$0xff]  ;;  %v1948_v22 = vld [vmem:[#allocation2 + $0x1260] sm:$0xff] }
 0x3a8   :  { %2280 = vmatpush.msrb.mxu3 %v2027_v31  ;;  %2240 = vmatpush.msrb.mxu1 %v2026_v14  ;;  %v2076_v1 = vld [vmem:[#allocation2 + $0x1660] sm:$0xff]  ;;  %v1925_v12 = vld [vmem:[#allocation2 + $0x11a8] sm:$0xff] }
 0x3a9   :  { %2261 = vmatpush.msrb.mxu2 %v1891_v19  ;;  %2204 = vmatmul.f32.vlgmr.msra.gmra.mxu3 %v6048_v34  ;;  %v2053_v9 = vld [vmem:[#allocation2 + $0x15a8] sm:$0xff]  ;;  %v1940_v10 = vld [vmem:[#allocation2 + $0x1220] sm:$0xff] }
 0x3aa   :  { %2281 = vmatpush.msrb.mxu3 %v2019_v21  ;;  %2184 = vmatmul.f32.vlgmr.msra.gmra.mxu2 %v6047_v4  ;;  %v2068_v31 = vld [vmem:[#allocation2 + $0x1620] sm:$0xff]  ;;  %v1917_v13 = vld [vmem:[#allocation2 + $0x1168] sm:$0xff] }
 0x3ab   :  { %2262 = vmatpush.msrb.mxu2 %v1883_v48  ;;  %2221 = vmatpush.msrb.mxu0 %v1890_v5  ;;  %v2045_v56 = vld [vmem:[#allocation2 + $0x1568] sm:$0xff]  ;;  %v1932_v19 = vld [vmem:[#allocation2 + $0x11e0] sm:$0xff] }
 0x3ac   :  { %2282 = vmatpush.msrb.mxu3 %v2011_v51  ;;  %2241 = vmatpush.msrb.mxu1 %v2018_v32  ;;  %v2060_v21 = vld [vmem:[#allocation2 + $0x15e0] sm:$0xff]  ;;  %v1909_v24 = vld [vmem:[#allocation2 + $0x1128] sm:$0xff] }
 0x3ad   :  { %2263 = vmatpush.msrb.mxu2 %v1875_v28  ;;  %2222 = vmatpush.msrb.mxu0 %v1882_v8  ;;  %v2037_v39 = vld [vmem:[#allocation2 + $0x1528] sm:$0xff]  ;;  %v1924_v48 = vld [vmem:[#allocation2 + $0x11a0] sm:$0xff] }
 0x3ae   :  { %2283 = vmatpush.msrb.mxu3 %v2003_v50  ;;  %2242 = vmatpush.msrb.mxu1 %v2010_v43  ;;  %v2052_v51 = vld [vmem:[#allocation2 + $0x15a0] sm:$0xff]  ;;  %v1901_v7 = vld [vmem:[#allocation2 + $0x10e8] sm:$0xff] }
 0x3af   :  { %2328 = vmatpush.msra.mxu2 %v1997_v62  ;;  %2223 = vmatpush.msrb.mxu0 %v1874_v33  ;;  %v2029_v14 = vld [vmem:[#allocation2 + $0x14e8] sm:$0xff]  ;;  %v1916_v28 = vld [vmem:[#allocation2 + $0x1160] sm:$0xff]  ;;  %v1999_v33 = vld [vmem:[#allocation2 + $0x13f8] sm:$0xff] }
 0x3b0   :  { %2348 = vmatpush.msra.mxu3 %v2125_v3  ;;  %2243 = vmatpush.msrb.mxu1 %v2002_v47  ;;  %v2044_v50 = vld [vmem:[#allocation2 + $0x1560] sm:$0xff]  ;;  %v1893_v62 = vld [vmem:[#allocation2 + $0x10a8] sm:$0xff]  ;;  %v2127_v47 = vld [vmem:[#allocation2 + $0x17f8] sm:$0xff] }
 0x3b1   :  { %2329 = vmatpush.msra.mxu2 %v1989_v35  ;;  %2144 = vmatmul.f32.vlgmr.msra.gmra.mxu0 %v6047_v4  ;;  %v2021_v3 = vld [vmem:[#allocation2 + $0x14a8] sm:$0xff]  ;;  %v1908_v5 = vld [vmem:[#allocation2 + $0x1120] sm:$0xff] }
 0x3b2   :  { %2349 = vmatpush.msra.mxu3 %v2117_v42  ;;  %2164 = vmatmul.f32.vlgmr.msra.gmra.mxu1 %v6048_v34  ;;  %v2036_v32 = vld [vmem:[#allocation2 + $0x1520] sm:$0xff]  ;;  %v1885_v35 = vld [vmem:[#allocation2 + $0x1068] sm:$0xff] }
 0x3b3   :  { %2330 = vmatpush.msra.mxu2 %v1981_v36  ;;  %2288 = vmatpush.msra.mxu0 %v1996_v40  ;;  %v2013_v42 = vld [vmem:[#allocation2 + $0x1468] sm:$0xff]  ;;  %v1900_v8 = vld [vmem:[#allocation2 + $0x10e0] sm:$0xff] }
 0x3b4   :  { %2350 = vmatpush.msra.mxu3 %v2109_v46  ;;  %2308 = vmatpush.msra.mxu1 %v2124_v17  ;;  %v2028_v43 = vld [vmem:[#allocation2 + $0x14e0] sm:$0xff]  ;;  %v1877_v36 = vld [vmem:[#allocation2 + $0x1028] sm:$0xff] }
 0x3b5   :  { %2331 = vmatpush.msra.mxu2 %v1973_v38  ;;  %2289 = vmatpush.msra.mxu0 %v1988_v53  ;;  %v2005_v46 = vld [vmem:[#allocation2 + $0x1428] sm:$0xff]  ;;  %v1892_v40 = vld [vmem:[#allocation2 + $0x10a0] sm:$0xff]  ;;  %v1991_v38 = vld [vmem:[#allocation2 + $0x13b8] sm:$0xff] }
 0x3b6   :  { %2351 = vmatpush.msra.mxu3 %v2101_v41  ;;  %2309 = vmatpush.msra.mxu1 %v2116_v15  ;;  %v2020_v17 = vld [vmem:[#allocation2 + $0x14a0] sm:$0xff]  ;;  %v2119_v41 = vld [vmem:[#allocation2 + $0x17b8] sm:$0xff] }
 0x3b7   :  { %2332 = vmatpush.msra.mxu2 %v1965_v37  ;;  %2290 = vmatpush.msra.mxu0 %v1980_v26  ;;  %v1884_v53 = vld [vmem:[#allocation2 + $0x1060] sm:$0xff]  ;;  %v1983_v37 = vld [vmem:[#allocation2 + $0x1378] sm:$0xff] }
 0x3b8   :  { %2352 = vmatpush.msra.mxu3 %v2093_v27  ;;  %2310 = vmatpush.msra.mxu1 %v2108_v6  ;;  %v2012_v15 = vld [vmem:[#allocation2 + $0x1460] sm:$0xff]  ;;  %v2111_v27 = vld [vmem:[#allocation2 + $0x1778] sm:$0xff] }
 0x3b9   :  { %2333 = vmatpush.msra.mxu2 %v1957_v2  ;;  %2291 = vmatpush.msra.mxu0 %v1972_v30  ;;  %v1876_v26 = vld [vmem:[#allocation2 + $0x1020] sm:$0xff]  ;;  %v1998_v2 = vld [vmem:[#allocation2 + $0x13f0] sm:$0xff]  ;;  %v1975_v30 = vld [vmem:[#allocation2 + $0x1338] sm:$0xff] }
 0x3ba   :  { %2353 = vmatpush.msra.mxu3 %v2085_v44  ;;  %2311 = vmatpush.msra.mxu1 %v2100_v11  ;;  %v2004_v6 = vld [vmem:[#allocation2 + $0x1420] sm:$0xff]  ;;  %v2126_v44 = vld [vmem:[#allocation2 + $0x17f0] sm:$0xff]  ;;  %v2103_v11 = vld [vmem:[#allocation2 + $0x1738] sm:$0xff] }
 0x3bb   :  { %2334 = vmatpush.msra.mxu2 %v1949_v23  ;;  %2292 = vmatpush.msra.mxu0 %v1964_v58  ;;  %v1990_v23 = vld [vmem:[#allocation2 + $0x13b0] sm:$0xff]  ;;  %v1967_v58 = vld [vmem:[#allocation2 + $0x12f8] sm:$0xff] }
 0x3bc   :  { %2354 = vmatpush.msra.mxu3 %v2077_v45  ;;  %2312 = vmatpush.msra.mxu1 %v2092_v52  ;;  %v2118_v45 = vld [vmem:[#allocation2 + $0x17b0] sm:$0xff]  ;;  %v2095_v52 = vld [vmem:[#allocation2 + $0x16f8] sm:$0xff] }
 0x3bd   :  { %2335 = vmatpush.msra.mxu2 %v1941_v57  ;;  %2293 = vmatpush.msra.mxu0 %v1956_v55  ;;  %v1982_v57 = vld [vmem:[#allocation2 + $0x1370] sm:$0xff]  ;;  %v1959_v55 = vld [vmem:[#allocation2 + $0x12b8] sm:$0xff] }
 0x3be   :  { %2355 = vmatpush.msra.mxu3 %v2069_v0  ;;  %2313 = vmatpush.msra.mxu1 %v2084_v54  ;;  %v2110_v0 = vld [vmem:[#allocation2 + $0x1770] sm:$0xff]  ;;  %v2087_v54 = vld [vmem:[#allocation2 + $0x16b8] sm:$0xff] }
 0x3bf   :  { %2336 = vmatpush.msra.mxu2 %v1933_v18  ;;  %2294 = vmatpush.msra.mxu0 %v1948_v22  ;;  %v1974_v18 = vld [vmem:[#allocation2 + $0x1330] sm:$0xff]  ;;  %v1951_v22 = vld [vmem:[#allocation2 + $0x1278] sm:$0xff] }
 0x3c0   :  { %2356 = vmatpush.msra.mxu3 %v2061_v59  ;;  %2314 = vmatpush.msra.mxu1 %v2076_v1  ;;  %v2102_v59 = vld [vmem:[#allocation2 + $0x1730] sm:$0xff]  ;;  %v2079_v1 = vld [vmem:[#allocation2 + $0x1678] sm:$0xff] }
 0x3c1   :  { %2337 = vmatpush.msra.mxu2 %v1925_v12  ;;  %2295 = vmatpush.msra.mxu0 %v1940_v10  ;;  %v1966_v12 = vld [vmem:[#allocation2 + $0x12f0] sm:$0xff]  ;;  %v1943_v10 = vld [vmem:[#allocation2 + $0x1238] sm:$0xff] }
 0x3c2   :  { %2357 = vmatpush.msra.mxu3 %v2053_v9  ;;  %2315 = vmatpush.msra.mxu1 %v2068_v31  ;;  %v2094_v9 = vld [vmem:[#allocation2 + $0x16f0] sm:$0xff]  ;;  %v2071_v31 = vld [vmem:[#allocation2 + $0x1638] sm:$0xff] }
 0x3c3   :  { %2338 = vmatpush.msra.mxu2 %v1917_v13  ;;  %2296 = vmatpush.msra.mxu0 %v1932_v19  ;;  %v1958_v13 = vld [vmem:[#allocation2 + $0x12b0] sm:$0xff]  ;;  %v1935_v19 = vld [vmem:[#allocation2 + $0x11f8] sm:$0xff] }
 0x3c4   :  { %2358 = vmatpush.msra.mxu3 %v2045_v56  ;;  %2316 = vmatpush.msra.mxu1 %v2060_v21  ;;  %v2086_v56 = vld [vmem:[#allocation2 + $0x16b0] sm:$0xff]  ;;  %v2063_v21 = vld [vmem:[#allocation2 + $0x15f8] sm:$0xff] }
 0x3c5   :  { %2339 = vmatpush.msra.mxu2 %v1909_v24  ;;  %2297 = vmatpush.msra.mxu0 %v1924_v48  ;;  %v1950_v24 = vld [vmem:[#allocation2 + $0x1270] sm:$0xff]  ;;  %v1927_v48 = vld [vmem:[#allocation2 + $0x11b8] sm:$0xff] }
 0x3c6   :  { %2359 = vmatpush.msra.mxu3 %v2037_v39  ;;  %2317 = vmatpush.msra.mxu1 %v2052_v51  ;;  %v2078_v39 = vld [vmem:[#allocation2 + $0x1670] sm:$0xff]  ;;  %v2055_v51 = vld [vmem:[#allocation2 + $0x15b8] sm:$0xff] }
 0x3c7   :  { %2340 = vmatpush.msra.mxu2 %v1901_v7  ;;  %2298 = vmatpush.msra.mxu0 %v1916_v28  ;;  %v1942_v7 = vld [vmem:[#allocation2 + $0x1230] sm:$0xff]  ;;  %v1919_v28 = vld [vmem:[#allocation2 + $0x1178] sm:$0xff] }
 0x3c8   :  { %2360 = vmatpush.msra.mxu3 %v2029_v14  ;;  %2318 = vmatpush.msra.mxu1 %v2044_v50  ;;  %v2070_v14 = vld [vmem:[#allocation2 + $0x1630] sm:$0xff]  ;;  %v2047_v50 = vld [vmem:[#allocation2 + $0x1578] sm:$0xff] }
 0x3c9   :  { %2341 = vmatpush.msra.mxu2 %v1893_v62  ;;  %2299 = vmatpush.msra.mxu0 %v1908_v5  ;;  %v1934_v62 = vld [vmem:[#allocation2 + $0x11f0] sm:$0xff]  ;;  %v1911_v5 = vld [vmem:[#allocation2 + $0x1138] sm:$0xff] }
 0x3ca   :  { %2361 = vmatpush.msra.mxu3 %v2021_v3  ;;  %2319 = vmatpush.msra.mxu1 %v2036_v32  ;;  %v2062_v3 = vld [vmem:[#allocation2 + $0x15f0] sm:$0xff]  ;;  %v2039_v32 = vld [vmem:[#allocation2 + $0x1538] sm:$0xff] }
 0x3cb   :  { %2342 = vmatpush.msra.mxu2 %v1885_v35  ;;  %2300 = vmatpush.msra.mxu0 %v1900_v8  ;;  %v1926_v35 = vld [vmem:[#allocation2 + $0x11b0] sm:$0xff]  ;;  %v1903_v8 = vld [vmem:[#allocation2 + $0x10f8] sm:$0xff] }
 0x3cc   :  { %2362 = vmatpush.msra.mxu3 %v2013_v42  ;;  %2320 = vmatpush.msra.mxu1 %v2028_v43  ;;  %v2054_v42 = vld [vmem:[#allocation2 + $0x15b0] sm:$0xff]  ;;  %v2031_v43 = vld [vmem:[#allocation2 + $0x14f8] sm:$0xff] }
 0x3cd   :  { %2343 = vmatpush.msra.mxu2 %v1877_v36  ;;  %2284 = vmatmul.f32.vlgmr.msrb.gmra.mxu3 %v6048_v34  ;;  %v1918_v36 = vld [vmem:[#allocation2 + $0x1170] sm:$0xff] }
 0x3ce   :  { %2363 = vmatpush.msra.mxu3 %v2005_v46  ;;  %2264 = vmatmul.f32.vlgmr.msrb.gmra.mxu2 %v6047_v4  ;;  %v2046_v46 = vld [vmem:[#allocation2 + $0x1570] sm:$0xff] }
 0x3cf   :  { %2408 = vmatpush.msrb.mxu2 %v1999_v33  ;;  %2301 = vmatpush.msra.mxu0 %v1892_v40  ;;  %v1895_v33 = vld [vmem:[#allocation2 + $0x10b8] sm:$0xff]  ;;  %v1910_v40 = vld [vmem:[#allocation2 + $0x1130] sm:$0xff] }
 0x3d0   :  { %2428 = vmatpush.msrb.mxu3 %v2127_v47  ;;  %2321 = vmatpush.msra.mxu1 %v2020_v17  ;;  %v2023_v47 = vld [vmem:[#allocation2 + $0x14b8] sm:$0xff]  ;;  %v2038_v17 = vld [vmem:[#allocation2 + $0x1530] sm:$0xff] }
 0x3d1   :  { %2409 = vmatpush.msrb.mxu2 %v1991_v38  ;;  %2302 = vmatpush.msra.mxu0 %v1884_v53  ;;  %v1887_v38 = vld [vmem:[#allocation2 + $0x1078] sm:$0xff]  ;;  %v1902_v53 = vld [vmem:[#allocation2 + $0x10f0] sm:$0xff] }
 0x3d2   :  { %2429 = vmatpush.msrb.mxu3 %v2119_v41  ;;  %2322 = vmatpush.msra.mxu1 %v2012_v15  ;;  %v2015_v41 = vld [vmem:[#allocation2 + $0x1478] sm:$0xff]  ;;  %v2030_v15 = vld [vmem:[#allocation2 + $0x14f0] sm:$0xff] }
 0x3d3   :  { %2410 = vmatpush.msrb.mxu2 %v1983_v37  ;;  %2303 = vmatpush.msra.mxu0 %v1876_v26  ;;  %v1879_v37 = vld [vmem:[#allocation2 + $0x1038] sm:$0xff]  ;;  %v1894_v26 = vld [vmem:[#allocation2 + $0x10b0] sm:$0xff] }
 0x3d4   :  { %2430 = vmatpush.msrb.mxu3 %v2111_v27  ;;  %2323 = vmatpush.msra.mxu1 %v2004_v6  ;;  %v2007_v27 = vld [vmem:[#allocation2 + $0x1438] sm:$0xff]  ;;  %v2022_v6 = vld [vmem:[#allocation2 + $0x14b0] sm:$0xff] }
 0x3d5   :  { %2224 = vmatmul.f32.vlgmr.msrb.gmra.mxu0 %v6047_v4  ;;  %2244 = vmatmul.f32.vlgmr.msrb.gmra.mxu1 %v6048_v34 }
 0x3d6   :  { %2368 = vmatpush.msrb.mxu0 %v1998_v2  ;;  %2388 = vmatpush.msrb.mxu1 %v2126_v44  ;;  %v1886_v2 = vld [vmem:[#allocation2 + $0x1070] sm:$0xff] }
 0x3d7   :  { %2411 = vmatpush.msrb.mxu2 %v1975_v30  ;;  %2431 = vmatpush.msrb.mxu3 %v2103_v11  ;;  %v2014_v44 = vld [vmem:[#allocation2 + $0x1470] sm:$0xff] }
 0x3d8   :  { %2369 = vmatpush.msrb.mxu0 %v1990_v23  ;;  %2389 = vmatpush.msrb.mxu1 %v2118_v45  ;;  %v1878_v30 = vld [vmem:[#allocation2 + $0x1030] sm:$0xff] }
 0x3d9   :  { %2412 = vmatpush.msrb.mxu2 %v1967_v58  ;;  %2432 = vmatpush.msrb.mxu3 %v2095_v52  ;;  %v2006_v11 = vld [vmem:[#allocation2 + $0x1430] sm:$0xff] }
 0x3da   :  { %2370 = vmatpush.msrb.mxu0 %v1982_v57  ;;  %2390 = vmatpush.msrb.mxu1 %v2110_v0 }
 0x3db   :  { %2413 = vmatpush.msrb.mxu2 %v1959_v55  ;;  %2433 = vmatpush.msrb.mxu3 %v2087_v54 }
 0x3dc   :  { %2371 = vmatpush.msrb.mxu0 %v1974_v18  ;;  %2391 = vmatpush.msrb.mxu1 %v2102_v59 }
 0x3dd   :  { %2414 = vmatpush.msrb.mxu2 %v1951_v22  ;;  %2434 = vmatpush.msrb.mxu3 %v2079_v1 }
 0x3de   :  { %2372 = vmatpush.msrb.mxu0 %v1966_v12  ;;  %2392 = vmatpush.msrb.mxu1 %v2094_v9 }
 0x3df   :  { %2415 = vmatpush.msrb.mxu2 %v1943_v10  ;;  %2435 = vmatpush.msrb.mxu3 %v2071_v31 }
 0x3e0   :  { %2373 = vmatpush.msrb.mxu0 %v1958_v13  ;;  %2393 = vmatpush.msrb.mxu1 %v2086_v56 }
 0x3e1   :  { %2416 = vmatpush.msrb.mxu2 %v1935_v19  ;;  %2436 = vmatpush.msrb.mxu3 %v2063_v21 }
 0x3e2   :  { %2374 = vmatpush.msrb.mxu0 %v1950_v24  ;;  %2394 = vmatpush.msrb.mxu1 %v2078_v39 }
 0x3e3   :  { %2417 = vmatpush.msrb.mxu2 %v1927_v48  ;;  %2437 = vmatpush.msrb.mxu3 %v2055_v51 }
 0x3e4   :  { %2375 = vmatpush.msrb.mxu0 %v1942_v7  ;;  %2395 = vmatpush.msrb.mxu1 %v2070_v14 }
 0x3e5   :  { %2418 = vmatpush.msrb.mxu2 %v1919_v28  ;;  %2438 = vmatpush.msrb.mxu3 %v2047_v50 }
 0x3e6   :  { %2376 = vmatpush.msrb.mxu0 %v1934_v62  ;;  %2396 = vmatpush.msrb.mxu1 %v2062_v3 }
 0x3e7   :  { %2419 = vmatpush.msrb.mxu2 %v1911_v5  ;;  %2439 = vmatpush.msrb.mxu3 %v2039_v32 }
 0x3e8   :  { %2344 = vmatmul.f32.vlgmr.msra.gmra.mxu2 %v6047_v4  ;;  %2364 = vmatmul.f32.vlgmr.msra.gmra.mxu3 %v6048_v34 }
 0x3e9   :  { %2377 = vmatpush.msrb.mxu0 %v1926_v35  ;;  %2397 = vmatpush.msrb.mxu1 %v2054_v42 }
 0x3ea   :  { %2420 = vmatpush.msrb.mxu2 %v1903_v8  ;;  %2440 = vmatpush.msrb.mxu3 %v2031_v43 }
 0x3eb   :  { %2378 = vmatpush.msrb.mxu0 %v1918_v36  ;;  %2398 = vmatpush.msrb.mxu1 %v2046_v46 }
 0x3ec   :  { %2421 = vmatpush.msrb.mxu2 %v1895_v33  ;;  %2441 = vmatpush.msrb.mxu3 %v2023_v47 }
 0x3ed   :  { %2379 = vmatpush.msrb.mxu0 %v1910_v40  ;;  %2399 = vmatpush.msrb.mxu1 %v2038_v17 }
 0x3ee   :  { %2422 = vmatpush.msrb.mxu2 %v1887_v38  ;;  %2442 = vmatpush.msrb.mxu3 %v2015_v41 }
 0x3ef   :  { %2304 = vmatmul.f32.vlgmr.msra.gmra.mxu0 %v6047_v4  ;;  %2324 = vmatmul.f32.vlgmr.msra.gmra.mxu1 %v6048_v34 }
 0x3f0   :  { %2380 = vmatpush.msrb.mxu0 %v1902_v53  ;;  %2400 = vmatpush.msrb.mxu1 %v2030_v15 }
 0x3f1   :  { %2423 = vmatpush.msrb.mxu2 %v1879_v37  ;;  %2443 = vmatpush.msrb.mxu3 %v2007_v27 }
 0x3f2   :  { %2424 = vmatmul.f32.vlgmr.msrb.gmra.mxu2 %v6047_v4  ;;  %2444 = vmatmul.f32.vlgmr.msrb.gmra.mxu3 %v6048_v34 }
 0x3f3   :  { %2381 = vmatpush.msrb.mxu0 %v1894_v26  ;;  %2401 = vmatpush.msrb.mxu1 %v2022_v6 }
 0x3f5   :  { %2382 = vmatpush.msrb.mxu0 %v1886_v2  ;;  %2402 = vmatpush.msrb.mxu1 %v2014_v44 }
 0x3f7   :  { %2383 = vmatpush.msrb.mxu0 %v1878_v30  ;;  %2403 = vmatpush.msrb.mxu1 %v2006_v11 }
 0x3f8   :  { %2384 = vmatmul.f32.vlgmr.msrb.gmra.mxu0 %v6047_v4  ;;  %2404 = vmatmul.f32.vlgmr.msrb.gmra.mxu1 %v6048_v34 }
 0x42c   :  { %v2205_v45 = vpop.f32.mrf.mxu3 }
 0x42d   :  { %v2185_v23 = vpop.f32.mrf.mxu2 }
 0x42e   :  { %v2145_v58 = vpop.f32.mrf.mxu0  ;;  %v2206_v57 = vadd.f32 %v2205_v45, %v2185_v23 }
 0x42f   :  { %v2165_v52 = vpop.f32.mrf.mxu1 }
 0x430   :  { %v2166_v0 = vadd.f32 %v2165_v52, %v2145_v58  ;;  %v5255_v55 = vadd.f32 %v2206_v57, %v5224_v61 }
 0x432   :  { %v5258_v54 = vadd.f32 %v2166_v0, %v5222_v63 }
 0x450   :  { %v2285_v59 = vpop.f32.mrf.mxu3 }
 0x451   :  { %v2265_v18 = vpop.f32.mrf.mxu2 }
 0x452   :  { %v2225_v22 = vpop.f32.mrf.mxu0  ;;  %v2245_v1 = vpop.f32.mrf.mxu1  ;;  %v2286_v12 = vadd.f32 %v2285_v59, %v2265_v18 }
 0x453   :  { %v2246_v4 = vadd.f32 %v2245_v1, %v2225_v22 }
 0x454   :  { %v5261_v34 = vadd.f32 %v2286_v12, %v5228_v29 }
 0x455   :  { %v5264_v9 = vadd.f32 %v2246_v4, %v5226_v20 }
 0x46b   :  { %v2345_v10 = vpop.f32.mrf.mxu2  ;;  %v2365_v31 = vpop.f32.mrf.mxu3 }
 0x46c   :  { %v2305_v13 = vpop.f32.mrf.mxu0  ;;  %v2325_v61 = vpop.f32.mrf.mxu1  ;;  %v2366_v56 = vadd.f32 %v2365_v31, %v2345_v10 }
 0x46d   :  { %v2326_v19 = vadd.f32 %v2325_v61, %v2305_v13 }
 0x46e   :  { %v5267_v63 = vadd.f32 %v2366_v56, %v5232_v60 }
 0x46f   :  { %v5270_v21 = vadd.f32 %v2326_v19, %v5230_v49 }
 0x475   :  { %v2385_v24 = vpop.f32.mrf.mxu0  ;;  %v2405_v39 = vpop.f32.mrf.mxu1 }
 0x476   :  { %v2406_v48 = vadd.f32 %v2405_v39, %v2385_v24  ;;  %v2425_v29 = vpop.f32.mrf.mxu2  ;;  %v2445_v51 = vpop.f32.mrf.mxu3 }
 0x477   :  { %v2446_v7 = vadd.f32 %v2445_v51, %v2425_v29 }
 0x478   :  { %v5273_v20 = vadd.f32 %v2406_v48, %v5234_v25 }
 0x479   :  { %v5276_v14 = vadd.f32 %v2446_v7, %v5236_v16 }
 0x47a   :  { %4064 = dma.done.wait [#allocation4 + $0x3], 32768 }
 0x47b   :  { %4065 = vsyncadd [#allocation4 + $0x3], 4294934528  ;;  %v2578_v28 = vld [vmem:[#allocation2 + $0x1bc0] sm:$0xff]  ;;  %v2579_v50 = vld [vmem:[#allocation2 + $0x1bc8] sm:$0xff] }
 0x47c   :  { %v2706_v60 = vld [vmem:[#allocation2 + $0x1fc0] sm:$0xff]  ;;  %2714 = vmatpush.msra.mxu0 %v2578_v28  ;;  %v2707_v49 = vld [vmem:[#allocation2 + $0x1fc8] sm:$0xff]  ;;  %2754 = vmatpush.msra.mxu2 %v2579_v50 }
 0x47d   :  { %2734 = vmatpush.msra.mxu1 %v2706_v60  ;;  %v2570_v62 = vld [vmem:[#allocation2 + $0x1b80] sm:$0xff]  ;;  %2774 = vmatpush.msra.mxu3 %v2707_v49  ;;  %v2571_v5 = vld [vmem:[#allocation2 + $0x1b88] sm:$0xff] }
 0x47e   :  { %v2698_v3 = vld [vmem:[#allocation2 + $0x1f80] sm:$0xff]  ;;  %v2699_v32 = vld [vmem:[#allocation2 + $0x1f88] sm:$0xff]  ;;  %2715 = vmatpush.msra.mxu0 %v2570_v62  ;;  %2755 = vmatpush.msra.mxu2 %v2571_v5 }
 0x47f   :  { %v2562_v35 = vld [vmem:[#allocation2 + $0x1b40] sm:$0xff]  ;;  %2735 = vmatpush.msra.mxu1 %v2698_v3  ;;  %v2563_v16 = vld [vmem:[#allocation2 + $0x1b48] sm:$0xff]  ;;  %2775 = vmatpush.msra.mxu3 %v2699_v32 }
 0x480   :  { %v2690_v25 = vld [vmem:[#allocation2 + $0x1f40] sm:$0xff]  ;;  %v2691_v42 = vld [vmem:[#allocation2 + $0x1f48] sm:$0xff]  ;;  %2716 = vmatpush.msra.mxu0 %v2562_v35  ;;  %2756 = vmatpush.msra.mxu2 %v2563_v16  ;;  %v2580_v35 = vld [vmem:[#allocation2 + $0x1bd0] sm:$0xff] }
 0x481   :  { %v2554_v8 = vld [vmem:[#allocation2 + $0x1b00] sm:$0xff]  ;;  %2736 = vmatpush.msra.mxu1 %v2690_v25  ;;  %v2555_v36 = vld [vmem:[#allocation2 + $0x1b08] sm:$0xff]  ;;  %2776 = vmatpush.msra.mxu3 %v2691_v42  ;;  %v2708_v25 = vld [vmem:[#allocation2 + $0x1fd0] sm:$0xff] }
 0x482   :  { %v2682_v43 = vld [vmem:[#allocation2 + $0x1f00] sm:$0xff]  ;;  %v2683_v46 = vld [vmem:[#allocation2 + $0x1f08] sm:$0xff]  ;;  %2717 = vmatpush.msra.mxu0 %v2554_v8  ;;  %2757 = vmatpush.msra.mxu2 %v2555_v36  ;;  %v2581_v16 = vld [vmem:[#allocation2 + $0x1bd8] sm:$0xff] }
 0x483   :  { %v2546_v33 = vld [vmem:[#allocation2 + $0x1ac0] sm:$0xff]  ;;  %2737 = vmatpush.msra.mxu1 %v2682_v43  ;;  %v2547_v40 = vld [vmem:[#allocation2 + $0x1ac8] sm:$0xff]  ;;  %2777 = vmatpush.msra.mxu3 %v2683_v46  ;;  %v2709_v42 = vld [vmem:[#allocation2 + $0x1fd8] sm:$0xff] }
 0x484   :  { %v2674_v47 = vld [vmem:[#allocation2 + $0x1ec0] sm:$0xff]  ;;  %v2675_v17 = vld [vmem:[#allocation2 + $0x1ec8] sm:$0xff]  ;;  %2718 = vmatpush.msra.mxu0 %v2546_v33  ;;  %2758 = vmatpush.msra.mxu2 %v2547_v40  ;;  %v2572_v8 = vld [vmem:[#allocation2 + $0x1b90] sm:$0xff] }
 0x485   :  { %v2538_v38 = vld [vmem:[#allocation2 + $0x1a80] sm:$0xff]  ;;  %2738 = vmatpush.msra.mxu1 %v2674_v47  ;;  %v2539_v53 = vld [vmem:[#allocation2 + $0x1a88] sm:$0xff]  ;;  %2778 = vmatpush.msra.mxu3 %v2675_v17  ;;  %v2700_v43 = vld [vmem:[#allocation2 + $0x1f90] sm:$0xff] }
 0x486   :  { %v2666_v41 = vld [vmem:[#allocation2 + $0x1e80] sm:$0xff]  ;;  %v2667_v15 = vld [vmem:[#allocation2 + $0x1e88] sm:$0xff]  ;;  %2719 = vmatpush.msra.mxu0 %v2538_v38  ;;  %2759 = vmatpush.msra.mxu2 %v2539_v53  ;;  %v2573_v36 = vld [vmem:[#allocation2 + $0x1b98] sm:$0xff] }
 0x487   :  { %v2530_v37 = vld [vmem:[#allocation2 + $0x1a40] sm:$0xff]  ;;  %2739 = vmatpush.msra.mxu1 %v2666_v41  ;;  %v2531_v26 = vld [vmem:[#allocation2 + $0x1a48] sm:$0xff]  ;;  %2779 = vmatpush.msra.mxu3 %v2667_v15  ;;  %v2701_v46 = vld [vmem:[#allocation2 + $0x1f98] sm:$0xff] }
 0x488   :  { %v2658_v27 = vld [vmem:[#allocation2 + $0x1e40] sm:$0xff]  ;;  %v2659_v6 = vld [vmem:[#allocation2 + $0x1e48] sm:$0xff]  ;;  %2720 = vmatpush.msra.mxu0 %v2530_v37  ;;  %2760 = vmatpush.msra.mxu2 %v2531_v26  ;;  %v2564_v33 = vld [vmem:[#allocation2 + $0x1b50] sm:$0xff] }
 0x489   :  { %v2522_v2 = vld [vmem:[#allocation2 + $0x1a00] sm:$0xff]  ;;  %2740 = vmatpush.msra.mxu1 %v2658_v27  ;;  %v2523_v30 = vld [vmem:[#allocation2 + $0x1a08] sm:$0xff]  ;;  %2780 = vmatpush.msra.mxu3 %v2659_v6  ;;  %v2692_v47 = vld [vmem:[#allocation2 + $0x1f50] sm:$0xff] }
 0x48a   :  { %v2650_v44 = vld [vmem:[#allocation2 + $0x1e00] sm:$0xff]  ;;  %v2651_v11 = vld [vmem:[#allocation2 + $0x1e08] sm:$0xff]  ;;  %2721 = vmatpush.msra.mxu0 %v2522_v2  ;;  %2761 = vmatpush.msra.mxu2 %v2523_v30  ;;  %v2565_v40 = vld [vmem:[#allocation2 + $0x1b58] sm:$0xff] }
 0x48b   :  { %v2514_v23 = vld [vmem:[#allocation2 + $0x19c0] sm:$0xff]  ;;  %2741 = vmatpush.msra.mxu1 %v2650_v44  ;;  %v2515_v58 = vld [vmem:[#allocation2 + $0x19c8] sm:$0xff]  ;;  %2781 = vmatpush.msra.mxu3 %v2651_v11  ;;  %v2693_v17 = vld [vmem:[#allocation2 + $0x1f58] sm:$0xff] }
 0x48c   :  { %v2642_v45 = vld [vmem:[#allocation2 + $0x1dc0] sm:$0xff]  ;;  %v2643_v52 = vld [vmem:[#allocation2 + $0x1dc8] sm:$0xff]  ;;  %2722 = vmatpush.msra.mxu0 %v2514_v23  ;;  %2762 = vmatpush.msra.mxu2 %v2515_v58  ;;  %v2556_v38 = vld [vmem:[#allocation2 + $0x1b10] sm:$0xff] }
 0x48d   :  { %v2506_v57 = vld [vmem:[#allocation2 + $0x1980] sm:$0xff]  ;;  %2742 = vmatpush.msra.mxu1 %v2642_v45  ;;  %v2507_v18 = vld [vmem:[#allocation2 + $0x1988] sm:$0xff]  ;;  %2782 = vmatpush.msra.mxu3 %v2643_v52  ;;  %v2684_v41 = vld [vmem:[#allocation2 + $0x1f10] sm:$0xff] }
 0x48e   :  { %v2634_v0 = vld [vmem:[#allocation2 + $0x1d80] sm:$0xff]  ;;  %v2635_v59 = vld [vmem:[#allocation2 + $0x1d88] sm:$0xff]  ;;  %2723 = vmatpush.msra.mxu0 %v2506_v57  ;;  %2763 = vmatpush.msra.mxu2 %v2507_v18  ;;  %v2557_v53 = vld [vmem:[#allocation2 + $0x1b18] sm:$0xff] }
 0x48f   :  { %v2498_v22 = vld [vmem:[#allocation2 + $0x1940] sm:$0xff]  ;;  %2743 = vmatpush.msra.mxu1 %v2634_v0  ;;  %v2499_v12 = vld [vmem:[#allocation2 + $0x1948] sm:$0xff]  ;;  %2783 = vmatpush.msra.mxu3 %v2635_v59  ;;  %v2685_v15 = vld [vmem:[#allocation2 + $0x1f18] sm:$0xff] }
 0x490   :  { %v2626_v1 = vld [vmem:[#allocation2 + $0x1d40] sm:$0xff]  ;;  %v2627_v4 = vld [vmem:[#allocation2 + $0x1d48] sm:$0xff]  ;;  %2724 = vmatpush.msra.mxu0 %v2498_v22  ;;  %2764 = vmatpush.msra.mxu2 %v2499_v12  ;;  %v2548_v37 = vld [vmem:[#allocation2 + $0x1ad0] sm:$0xff] }
 0x491   :  { %v2490_v10 = vld [vmem:[#allocation2 + $0x1900] sm:$0xff]  ;;  %2744 = vmatpush.msra.mxu1 %v2626_v1  ;;  %v2491_v13 = vld [vmem:[#allocation2 + $0x1908] sm:$0xff]  ;;  %2784 = vmatpush.msra.mxu3 %v2627_v4  ;;  %v2676_v27 = vld [vmem:[#allocation2 + $0x1ed0] sm:$0xff] }
 0x492   :  { %v2618_v31 = vld [vmem:[#allocation2 + $0x1d00] sm:$0xff]  ;;  %v2619_v61 = vld [vmem:[#allocation2 + $0x1d08] sm:$0xff]  ;;  %2725 = vmatpush.msra.mxu0 %v2490_v10  ;;  %2765 = vmatpush.msra.mxu2 %v2491_v13  ;;  %v2549_v26 = vld [vmem:[#allocation2 + $0x1ad8] sm:$0xff] }
 0x493   :  { %v2482_v56 = vld [vmem:[#allocation2 + $0x18c0] sm:$0xff]  ;;  %2745 = vmatpush.msra.mxu1 %v2618_v31  ;;  %v2483_v24 = vld [vmem:[#allocation2 + $0x18c8] sm:$0xff]  ;;  %2785 = vmatpush.msra.mxu3 %v2619_v61  ;;  %v2677_v6 = vld [vmem:[#allocation2 + $0x1ed8] sm:$0xff] }
 0x494   :  { %v2610_v19 = vld [vmem:[#allocation2 + $0x1cc0] sm:$0xff]  ;;  %v2611_v39 = vld [vmem:[#allocation2 + $0x1cc8] sm:$0xff]  ;;  %2726 = vmatpush.msra.mxu0 %v2482_v56  ;;  %2766 = vmatpush.msra.mxu2 %v2483_v24  ;;  %v6049_v2 = vld [vmem:[#allocation42_spill] sm:$0xff] }
 0x495   :  { %v2474_v48 = vld [vmem:[#allocation2 + $0x1880] sm:$0xff]  ;;  %2746 = vmatpush.msra.mxu1 %v2610_v19  ;;  %v2475_v51 = vld [vmem:[#allocation2 + $0x1888] sm:$0xff]  ;;  %2786 = vmatpush.msra.mxu3 %v2611_v39  ;;  %v2540_v30 = vld [vmem:[#allocation2 + $0x1a90] sm:$0xff] }
 0x496   :  { %v2602_v29 = vld [vmem:[#allocation2 + $0x1c80] sm:$0xff]  ;;  %v2603_v7 = vld [vmem:[#allocation2 + $0x1c88] sm:$0xff]  ;;  %2727 = vmatpush.msra.mxu0 %v2474_v48  ;;  %2767 = vmatpush.msra.mxu2 %v2475_v51  ;;  %v2668_v11 = vld [vmem:[#allocation2 + $0x1e90] sm:$0xff] }
 0x497   :  { %v2466_v28 = vld [vmem:[#allocation2 + $0x1840] sm:$0xff]  ;;  %2747 = vmatpush.msra.mxu1 %v2602_v29  ;;  %v2467_v50 = vld [vmem:[#allocation2 + $0x1848] sm:$0xff]  ;;  %2787 = vmatpush.msra.mxu3 %v2603_v7  ;;  %v2541_v23 = vld [vmem:[#allocation2 + $0x1a98] sm:$0xff] }
 0x498   :  { %v2594_v60 = vld [vmem:[#allocation2 + $0x1c40] sm:$0xff]  ;;  %v2595_v49 = vld [vmem:[#allocation2 + $0x1c48] sm:$0xff]  ;;  %2728 = vmatpush.msra.mxu0 %v2466_v28  ;;  %2768 = vmatpush.msra.mxu2 %v2467_v50  ;;  %v2669_v45 = vld [vmem:[#allocation2 + $0x1e98] sm:$0xff] }
 0x499   :  { %v2458_v62 = vld [vmem:[#allocation2 + $0x1800] sm:$0xff]  ;;  %2748 = vmatpush.msra.mxu1 %v2594_v60  ;;  %v2459_v5 = vld [vmem:[#allocation2 + $0x1808] sm:$0xff]  ;;  %2788 = vmatpush.msra.mxu3 %v2595_v49  ;;  %v2532_v58 = vld [vmem:[#allocation2 + $0x1a50] sm:$0xff] }
 0x49a   :  { %v2586_v3 = vld [vmem:[#allocation2 + $0x1c00] sm:$0xff]  ;;  %v2587_v32 = vld [vmem:[#allocation2 + $0x1c08] sm:$0xff]  ;;  %2729 = vmatpush.msra.mxu0 %v2458_v62  ;;  %2769 = vmatpush.msra.mxu2 %v2459_v5  ;;  %v2660_v52 = vld [vmem:[#allocation2 + $0x1e50] sm:$0xff] }
 0x49b   :  { %2749 = vmatpush.msra.mxu1 %v2586_v3  ;;  %2789 = vmatpush.msra.mxu3 %v2587_v32  ;;  %v6050_v44 = vld [vmem:[#allocation43_spill] sm:$0xff]  ;;  %v2524_v18 = vld [vmem:[#allocation2 + $0x1a10] sm:$0xff] }
 0x49c   :  { %2794 = vmatpush.msrb.mxu0 %v2580_v35  ;;  %2834 = vmatpush.msrb.mxu2 %v2581_v16  ;;  %v2533_v57 = vld [vmem:[#allocation2 + $0x1a58] sm:$0xff]  ;;  %v2652_v59 = vld [vmem:[#allocation2 + $0x1e10] sm:$0xff] }
 0x49d   :  { %2814 = vmatpush.msrb.mxu1 %v2708_v25  ;;  %2854 = vmatpush.msrb.mxu3 %v2709_v42  ;;  %v2661_v0 = vld [vmem:[#allocation2 + $0x1e58] sm:$0xff]  ;;  %v2516_v12 = vld [vmem:[#allocation2 + $0x19d0] sm:$0xff] }
 0x49e   :  { %2795 = vmatpush.msrb.mxu0 %v2572_v8  ;;  %2835 = vmatpush.msrb.mxu2 %v2573_v36  ;;  %v2525_v22 = vld [vmem:[#allocation2 + $0x1a18] sm:$0xff]  ;;  %v2644_v4 = vld [vmem:[#allocation2 + $0x1dd0] sm:$0xff] }
 0x49f   :  { %2815 = vmatpush.msrb.mxu1 %v2700_v43  ;;  %2855 = vmatpush.msrb.mxu3 %v2701_v46  ;;  %v2653_v1 = vld [vmem:[#allocation2 + $0x1e18] sm:$0xff]  ;;  %v2508_v13 = vld [vmem:[#allocation2 + $0x1990] sm:$0xff] }
 0x4a0   :  { %2796 = vmatpush.msrb.mxu0 %v2564_v33  ;;  %2836 = vmatpush.msrb.mxu2 %v2565_v40  ;;  %v2517_v10 = vld [vmem:[#allocation2 + $0x19d8] sm:$0xff]  ;;  %v2636_v61 = vld [vmem:[#allocation2 + $0x1d90] sm:$0xff]  ;;  %v2582_v40 = vld [vmem:[#allocation2 + $0x1be0] sm:$0xff] }
 0x4a1   :  { %2816 = vmatpush.msrb.mxu1 %v2692_v47  ;;  %2856 = vmatpush.msrb.mxu3 %v2693_v17  ;;  %v2645_v31 = vld [vmem:[#allocation2 + $0x1dd8] sm:$0xff]  ;;  %v2500_v24 = vld [vmem:[#allocation2 + $0x1950] sm:$0xff]  ;;  %v2710_v17 = vld [vmem:[#allocation2 + $0x1fe0] sm:$0xff] }
 0x4a2   :  { %2797 = vmatpush.msrb.mxu0 %v2556_v38  ;;  %2837 = vmatpush.msrb.mxu2 %v2557_v53  ;;  %v2509_v56 = vld [vmem:[#allocation2 + $0x1998] sm:$0xff]  ;;  %v2628_v39 = vld [vmem:[#allocation2 + $0x1d50] sm:$0xff]  ;;  %v2583_v38 = vld [vmem:[#allocation2 + $0x1be8] sm:$0xff] }
 0x4a3   :  { %2817 = vmatpush.msrb.mxu1 %v2684_v41  ;;  %2857 = vmatpush.msrb.mxu3 %v2685_v15  ;;  %v2637_v19 = vld [vmem:[#allocation2 + $0x1d98] sm:$0xff]  ;;  %v2492_v51 = vld [vmem:[#allocation2 + $0x1910] sm:$0xff]  ;;  %v2711_v41 = vld [vmem:[#allocation2 + $0x1fe8] sm:$0xff] }
 0x4a4   :  { %2770 = vmatmul.f32.vlgmr.msra.gmra.mxu2 %v6049_v2  ;;  %2790 = vmatmul.f32.vlgmr.msra.gmra.mxu3 %v6050_v44  ;;  %v2501_v48 = vld [vmem:[#allocation2 + $0x1958] sm:$0xff]  ;;  %v2620_v7 = vld [vmem:[#allocation2 + $0x1d10] sm:$0xff]  ;;  %v2574_v53 = vld [vmem:[#allocation2 + $0x1ba0] sm:$0xff] }
 0x4a5   :  { %2798 = vmatpush.msrb.mxu0 %v2548_v37  ;;  %2818 = vmatpush.msrb.mxu1 %v2676_v27  ;;  %v2629_v29 = vld [vmem:[#allocation2 + $0x1d58] sm:$0xff]  ;;  %v2484_v50 = vld [vmem:[#allocation2 + $0x18d0] sm:$0xff]  ;;  %v2702_v15 = vld [vmem:[#allocation2 + $0x1fa0] sm:$0xff] }
 0x4a6   :  { %2838 = vmatpush.msrb.mxu2 %v2549_v26  ;;  %2858 = vmatpush.msrb.mxu3 %v2677_v6  ;;  %v2493_v28 = vld [vmem:[#allocation2 + $0x1918] sm:$0xff]  ;;  %v2612_v49 = vld [vmem:[#allocation2 + $0x1cd0] sm:$0xff]  ;;  %v2575_v37 = vld [vmem:[#allocation2 + $0x1ba8] sm:$0xff] }
 0x4a7   :  { %2799 = vmatpush.msrb.mxu0 %v2540_v30  ;;  %2819 = vmatpush.msrb.mxu1 %v2668_v11  ;;  %v2621_v60 = vld [vmem:[#allocation2 + $0x1d18] sm:$0xff]  ;;  %v2476_v5 = vld [vmem:[#allocation2 + $0x1890] sm:$0xff]  ;;  %v2703_v27 = vld [vmem:[#allocation2 + $0x1fa8] sm:$0xff] }
 0x4a8   :  { %2839 = vmatpush.msrb.mxu2 %v2541_v23  ;;  %2859 = vmatpush.msrb.mxu3 %v2669_v45  ;;  %v2485_v62 = vld [vmem:[#allocation2 + $0x18d8] sm:$0xff]  ;;  %v2604_v32 = vld [vmem:[#allocation2 + $0x1c90] sm:$0xff]  ;;  %v2566_v26 = vld [vmem:[#allocation2 + $0x1b60] sm:$0xff] }
 0x4a9   :  { %2800 = vmatpush.msrb.mxu0 %v2532_v58  ;;  %2820 = vmatpush.msrb.mxu1 %v2660_v52  ;;  %v2613_v3 = vld [vmem:[#allocation2 + $0x1cd8] sm:$0xff]  ;;  %v2468_v16 = vld [vmem:[#allocation2 + $0x1850] sm:$0xff]  ;;  %v2694_v6 = vld [vmem:[#allocation2 + $0x1f60] sm:$0xff] }
 0x4aa   :  { %2840 = vmatpush.msrb.mxu2 %v2533_v57  ;;  %2860 = vmatpush.msrb.mxu3 %v2661_v0  ;;  %v2477_v35 = vld [vmem:[#allocation2 + $0x1898] sm:$0xff]  ;;  %v2596_v42 = vld [vmem:[#allocation2 + $0x1c50] sm:$0xff]  ;;  %v2567_v30 = vld [vmem:[#allocation2 + $0x1b68] sm:$0xff] }
 0x4ab   :  { %2801 = vmatpush.msrb.mxu0 %v2524_v18  ;;  %2821 = vmatpush.msrb.mxu1 %v2652_v59  ;;  %v2605_v25 = vld [vmem:[#allocation2 + $0x1c98] sm:$0xff]  ;;  %v2460_v36 = vld [vmem:[#allocation2 + $0x1810] sm:$0xff]  ;;  %v2695_v11 = vld [vmem:[#allocation2 + $0x1f68] sm:$0xff] }
 0x4ac   :  { %2841 = vmatpush.msrb.mxu2 %v2525_v22  ;;  %2861 = vmatpush.msrb.mxu3 %v2653_v1  ;;  %v2469_v8 = vld [vmem:[#allocation2 + $0x1858] sm:$0xff]  ;;  %v2588_v46 = vld [vmem:[#allocation2 + $0x1c10] sm:$0xff]  ;;  %v2558_v23 = vld [vmem:[#allocation2 + $0x1b20] sm:$0xff] }
 0x4ad   :  { %2730 = vmatmul.f32.vlgmr.msra.gmra.mxu0 %v6049_v2  ;;  %2750 = vmatmul.f32.vlgmr.msra.gmra.mxu1 %v6050_v44  ;;  %v2597_v43 = vld [vmem:[#allocation2 + $0x1c58] sm:$0xff]  ;;  %v2686_v45 = vld [vmem:[#allocation2 + $0x1f20] sm:$0xff]  ;;  %v2559_v58 = vld [vmem:[#allocation2 + $0x1b28] sm:$0xff] }
 0x4ae   :  { %2802 = vmatpush.msrb.mxu0 %v2516_v12  ;;  %2822 = vmatpush.msrb.mxu1 %v2644_v4  ;;  %v2461_v33 = vld [vmem:[#allocation2 + $0x1818] sm:$0xff]  ;;  %v2687_v52 = vld [vmem:[#allocation2 + $0x1f28] sm:$0xff]  ;;  %v2550_v57 = vld [vmem:[#allocation2 + $0x1ae0] sm:$0xff] }
 0x4af   :  { %2842 = vmatpush.msrb.mxu2 %v2517_v10  ;;  %2862 = vmatpush.msrb.mxu3 %v2645_v31  ;;  %v2589_v47 = vld [vmem:[#allocation2 + $0x1c18] sm:$0xff]  ;;  %v2678_v0 = vld [vmem:[#allocation2 + $0x1ee0] sm:$0xff]  ;;  %v2551_v18 = vld [vmem:[#allocation2 + $0x1ae8] sm:$0xff] }
 0x4b0   :  { %2803 = vmatpush.msrb.mxu0 %v2508_v13  ;;  %2823 = vmatpush.msrb.mxu1 %v2636_v61  ;;  %v2679_v59 = vld [vmem:[#allocation2 + $0x1ee8] sm:$0xff]  ;;  %v2542_v22 = vld [vmem:[#allocation2 + $0x1aa0] sm:$0xff] }
 0x4b1   :  { %2843 = vmatpush.msrb.mxu2 %v2509_v56  ;;  %2863 = vmatpush.msrb.mxu3 %v2637_v19  ;;  %v2670_v1 = vld [vmem:[#allocation2 + $0x1ea0] sm:$0xff]  ;;  %v2543_v12 = vld [vmem:[#allocation2 + $0x1aa8] sm:$0xff] }
 0x4b2   :  { %2804 = vmatpush.msrb.mxu0 %v2500_v24  ;;  %2824 = vmatpush.msrb.mxu1 %v2628_v39  ;;  %v2671_v4 = vld [vmem:[#allocation2 + $0x1ea8] sm:$0xff]  ;;  %v2534_v10 = vld [vmem:[#allocation2 + $0x1a60] sm:$0xff] }
 0x4b3   :  { %2844 = vmatpush.msrb.mxu2 %v2501_v48  ;;  %2864 = vmatpush.msrb.mxu3 %v2629_v29  ;;  %v2662_v31 = vld [vmem:[#allocation2 + $0x1e60] sm:$0xff]  ;;  %v2535_v13 = vld [vmem:[#allocation2 + $0x1a68] sm:$0xff] }
 0x4b4   :  { %2805 = vmatpush.msrb.mxu0 %v2492_v51  ;;  %2825 = vmatpush.msrb.mxu1 %v2620_v7  ;;  %v2663_v61 = vld [vmem:[#allocation2 + $0x1e68] sm:$0xff]  ;;  %v2526_v56 = vld [vmem:[#allocation2 + $0x1a20] sm:$0xff] }
 0x4b5   :  { %2845 = vmatpush.msrb.mxu2 %v2493_v28  ;;  %2865 = vmatpush.msrb.mxu3 %v2621_v60  ;;  %v2654_v19 = vld [vmem:[#allocation2 + $0x1e20] sm:$0xff]  ;;  %v2527_v24 = vld [vmem:[#allocation2 + $0x1a28] sm:$0xff] }
 0x4b6   :  { %2806 = vmatpush.msrb.mxu0 %v2484_v50  ;;  %2826 = vmatpush.msrb.mxu1 %v2612_v49  ;;  %v2655_v39 = vld [vmem:[#allocation2 + $0x1e28] sm:$0xff]  ;;  %v2518_v48 = vld [vmem:[#allocation2 + $0x19e0] sm:$0xff] }
 0x4b7   :  { %2846 = vmatpush.msrb.mxu2 %v2485_v62  ;;  %2866 = vmatpush.msrb.mxu3 %v2613_v3  ;;  %v2646_v29 = vld [vmem:[#allocation2 + $0x1de0] sm:$0xff]  ;;  %v2519_v51 = vld [vmem:[#allocation2 + $0x19e8] sm:$0xff] }
 0x4b8   :  { %2807 = vmatpush.msrb.mxu0 %v2476_v5  ;;  %2827 = vmatpush.msrb.mxu1 %v2604_v32  ;;  %v2647_v7 = vld [vmem:[#allocation2 + $0x1de8] sm:$0xff]  ;;  %v2510_v28 = vld [vmem:[#allocation2 + $0x19a0] sm:$0xff] }
 0x4b9   :  { %2847 = vmatpush.msrb.mxu2 %v2477_v35  ;;  %2867 = vmatpush.msrb.mxu3 %v2605_v25  ;;  %v2638_v60 = vld [vmem:[#allocation2 + $0x1da0] sm:$0xff]  ;;  %v2511_v50 = vld [vmem:[#allocation2 + $0x19a8] sm:$0xff] }
 0x4ba   :  { %2808 = vmatpush.msrb.mxu0 %v2468_v16  ;;  %2828 = vmatpush.msrb.mxu1 %v2596_v42  ;;  %v2639_v49 = vld [vmem:[#allocation2 + $0x1da8] sm:$0xff]  ;;  %v2502_v62 = vld [vmem:[#allocation2 + $0x1960] sm:$0xff] }
 0x4bb   :  { %2848 = vmatpush.msrb.mxu2 %v2469_v8  ;;  %2868 = vmatpush.msrb.mxu3 %v2597_v43  ;;  %v2630_v3 = vld [vmem:[#allocation2 + $0x1d60] sm:$0xff]  ;;  %v2503_v5 = vld [vmem:[#allocation2 + $0x1968] sm:$0xff] }
 0x4bc   :  { %2809 = vmatpush.msrb.mxu0 %v2460_v36  ;;  %2829 = vmatpush.msrb.mxu1 %v2588_v46  ;;  %v2631_v32 = vld [vmem:[#allocation2 + $0x1d68] sm:$0xff]  ;;  %v2494_v35 = vld [vmem:[#allocation2 + $0x1920] sm:$0xff] }
 0x4bd   :  { %2849 = vmatpush.msrb.mxu2 %v2461_v33  ;;  %2869 = vmatpush.msrb.mxu3 %v2589_v47  ;;  %v2622_v25 = vld [vmem:[#allocation2 + $0x1d20] sm:$0xff]  ;;  %v2495_v16 = vld [vmem:[#allocation2 + $0x1928] sm:$0xff] }
 0x4be   :  { %2850 = vmatmul.f32.vlgmr.msrb.gmra.mxu2 %v6049_v2  ;;  %2870 = vmatmul.f32.vlgmr.msrb.gmra.mxu3 %v6050_v44  ;;  %v2623_v42 = vld [vmem:[#allocation2 + $0x1d28] sm:$0xff]  ;;  %v2486_v8 = vld [vmem:[#allocation2 + $0x18e0] sm:$0xff] }
 0x4bf   :  { %2874 = vmatpush.msra.mxu0 %v2582_v40  ;;  %2894 = vmatpush.msra.mxu1 %v2710_v17  ;;  %v2614_v43 = vld [vmem:[#allocation2 + $0x1ce0] sm:$0xff]  ;;  %v2487_v36 = vld [vmem:[#allocation2 + $0x18e8] sm:$0xff] }
 0x4c0   :  { %2914 = vmatpush.msra.mxu2 %v2583_v38  ;;  %2934 = vmatpush.msra.mxu3 %v2711_v41  ;;  %v2615_v46 = vld [vmem:[#allocation2 + $0x1ce8] sm:$0xff]  ;;  %v2478_v33 = vld [vmem:[#allocation2 + $0x18a0] sm:$0xff] }
 0x4c1   :  { %2875 = vmatpush.msra.mxu0 %v2574_v53  ;;  %2895 = vmatpush.msra.mxu1 %v2702_v15  ;;  %v2606_v47 = vld [vmem:[#allocation2 + $0x1ca0] sm:$0xff]  ;;  %v2479_v40 = vld [vmem:[#allocation2 + $0x18a8] sm:$0xff] }
 0x4c2   :  { %2915 = vmatpush.msra.mxu2 %v2575_v37  ;;  %2935 = vmatpush.msra.mxu3 %v2703_v27  ;;  %v2607_v17 = vld [vmem:[#allocation2 + $0x1ca8] sm:$0xff]  ;;  %v2470_v38 = vld [vmem:[#allocation2 + $0x1860] sm:$0xff] }
 0x4c3   :  { %2876 = vmatpush.msra.mxu0 %v2566_v26  ;;  %2896 = vmatpush.msra.mxu1 %v2694_v6  ;;  %v2598_v41 = vld [vmem:[#allocation2 + $0x1c60] sm:$0xff]  ;;  %v2471_v53 = vld [vmem:[#allocation2 + $0x1868] sm:$0xff] }
 0x4c4   :  { %2916 = vmatpush.msra.mxu2 %v2567_v30  ;;  %2936 = vmatpush.msra.mxu3 %v2695_v11  ;;  %v2599_v15 = vld [vmem:[#allocation2 + $0x1c68] sm:$0xff]  ;;  %v2462_v37 = vld [vmem:[#allocation2 + $0x1820] sm:$0xff]  ;;  %v2584_v30 = vld [vmem:[#allocation2 + $0x1bf0] sm:$0xff] }
 0x4c5   :  { %2810 = vmatmul.f32.vlgmr.msrb.gmra.mxu0 %v6049_v2  ;;  %2830 = vmatmul.f32.vlgmr.msrb.gmra.mxu1 %v6050_v44  ;;  %v2590_v27 = vld [vmem:[#allocation2 + $0x1c20] sm:$0xff]  ;;  %v2463_v26 = vld [vmem:[#allocation2 + $0x1828] sm:$0xff]  ;;  %v2712_v11 = vld [vmem:[#allocation2 + $0x1ff0] sm:$0xff] }
 0x4c6   :  { %2877 = vmatpush.msra.mxu0 %v2558_v23  ;;  %2897 = vmatpush.msra.mxu1 %v2686_v45  ;;  %v2591_v6 = vld [vmem:[#allocation2 + $0x1c28] sm:$0xff]  ;;  %v2585_v23 = vld [vmem:[#allocation2 + $0x1bf8] sm:$0xff] }
 0x4c7   :  { %2917 = vmatpush.msra.mxu2 %v2559_v58  ;;  %2937 = vmatpush.msra.mxu3 %v2687_v52  ;;  %v2713_v45 = vld [vmem:[#allocation2 + $0x1ff8] sm:$0xff]  ;;  %v2576_v58 = vld [vmem:[#allocation2 + $0x1bb0] sm:$0xff] }
 0x4c8   :  { %2878 = vmatpush.msra.mxu0 %v2550_v57  ;;  %2898 = vmatpush.msra.mxu1 %v2678_v0  ;;  %v2704_v52 = vld [vmem:[#allocation2 + $0x1fb0] sm:$0xff]  ;;  %v2577_v57 = vld [vmem:[#allocation2 + $0x1bb8] sm:$0xff] }
 0x4c9   :  { %2918 = vmatpush.msra.mxu2 %v2551_v18  ;;  %2938 = vmatpush.msra.mxu3 %v2679_v59  ;;  %v2705_v0 = vld [vmem:[#allocation2 + $0x1fb8] sm:$0xff]  ;;  %v2568_v18 = vld [vmem:[#allocation2 + $0x1b70] sm:$0xff] }
 0x4ca   :  { %2879 = vmatpush.msra.mxu0 %v2542_v22  ;;  %2899 = vmatpush.msra.mxu1 %v2670_v1  ;;  %v2696_v59 = vld [vmem:[#allocation2 + $0x1f70] sm:$0xff]  ;;  %v2569_v22 = vld [vmem:[#allocation2 + $0x1b78] sm:$0xff] }
 0x4cb   :  { %2919 = vmatpush.msra.mxu2 %v2543_v12  ;;  %2939 = vmatpush.msra.mxu3 %v2671_v4  ;;  %v2697_v1 = vld [vmem:[#allocation2 + $0x1f78] sm:$0xff]  ;;  %v2560_v12 = vld [vmem:[#allocation2 + $0x1b30] sm:$0xff] }
 0x4cc   :  { %2880 = vmatpush.msra.mxu0 %v2534_v10  ;;  %2900 = vmatpush.msra.mxu1 %v2662_v31  ;;  %v2688_v4 = vld [vmem:[#allocation2 + $0x1f30] sm:$0xff]  ;;  %v2561_v10 = vld [vmem:[#allocation2 + $0x1b38] sm:$0xff] }
 0x4cd   :  { %2920 = vmatpush.msra.mxu2 %v2535_v13  ;;  %2940 = vmatpush.msra.mxu3 %v2663_v61  ;;  %v2689_v31 = vld [vmem:[#allocation2 + $0x1f38] sm:$0xff]  ;;  %v2552_v13 = vld [vmem:[#allocation2 + $0x1af0] sm:$0xff] }
 0x4ce   :  { %2881 = vmatpush.msra.mxu0 %v2526_v56  ;;  %2901 = vmatpush.msra.mxu1 %v2654_v19  ;;  %v2680_v61 = vld [vmem:[#allocation2 + $0x1ef0] sm:$0xff]  ;;  %v2553_v56 = vld [vmem:[#allocation2 + $0x1af8] sm:$0xff] }
 0x4cf   :  { %2921 = vmatpush.msra.mxu2 %v2527_v24  ;;  %2941 = vmatpush.msra.mxu3 %v2655_v39  ;;  %v2681_v19 = vld [vmem:[#allocation2 + $0x1ef8] sm:$0xff]  ;;  %v2544_v24 = vld [vmem:[#allocation2 + $0x1ab0] sm:$0xff] }
 0x4d0   :  { %2882 = vmatpush.msra.mxu0 %v2518_v48  ;;  %2902 = vmatpush.msra.mxu1 %v2646_v29  ;;  %v2672_v39 = vld [vmem:[#allocation2 + $0x1eb0] sm:$0xff]  ;;  %v2545_v48 = vld [vmem:[#allocation2 + $0x1ab8] sm:$0xff] }
 0x4d1   :  { %2922 = vmatpush.msra.mxu2 %v2519_v51  ;;  %2942 = vmatpush.msra.mxu3 %v2647_v7  ;;  %v2673_v29 = vld [vmem:[#allocation2 + $0x1eb8] sm:$0xff]  ;;  %v2536_v51 = vld [vmem:[#allocation2 + $0x1a70] sm:$0xff] }
 0x4d2   :  { %2883 = vmatpush.msra.mxu0 %v2510_v28  ;;  %2903 = vmatpush.msra.mxu1 %v2638_v60  ;;  %v2664_v7 = vld [vmem:[#allocation2 + $0x1e70] sm:$0xff]  ;;  %v2537_v28 = vld [vmem:[#allocation2 + $0x1a78] sm:$0xff] }
 0x4d3   :  { %2923 = vmatpush.msra.mxu2 %v2511_v50  ;;  %2943 = vmatpush.msra.mxu3 %v2639_v49  ;;  %v2665_v60 = vld [vmem:[#allocation2 + $0x1e78] sm:$0xff]  ;;  %v2528_v50 = vld [vmem:[#allocation2 + $0x1a30] sm:$0xff] }
 0x4d4   :  { %2884 = vmatpush.msra.mxu0 %v2502_v62  ;;  %2904 = vmatpush.msra.mxu1 %v2630_v3  ;;  %v2656_v49 = vld [vmem:[#allocation2 + $0x1e30] sm:$0xff]  ;;  %v2529_v62 = vld [vmem:[#allocation2 + $0x1a38] sm:$0xff] }
 0x4d5   :  { %2924 = vmatpush.msra.mxu2 %v2503_v5  ;;  %2944 = vmatpush.msra.mxu3 %v2631_v32  ;;  %v2657_v3 = vld [vmem:[#allocation2 + $0x1e38] sm:$0xff]  ;;  %v2520_v5 = vld [vmem:[#allocation2 + $0x19f0] sm:$0xff] }
 0x4d6   :  { %2885 = vmatpush.msra.mxu0 %v2494_v35  ;;  %2905 = vmatpush.msra.mxu1 %v2622_v25  ;;  %v2648_v32 = vld [vmem:[#allocation2 + $0x1df0] sm:$0xff]  ;;  %v2521_v35 = vld [vmem:[#allocation2 + $0x19f8] sm:$0xff] }
 0x4d7   :  { %2925 = vmatpush.msra.mxu2 %v2495_v16  ;;  %2945 = vmatpush.msra.mxu3 %v2623_v42  ;;  %v2649_v25 = vld [vmem:[#allocation2 + $0x1df8] sm:$0xff]  ;;  %v2512_v16 = vld [vmem:[#allocation2 + $0x19b0] sm:$0xff] }
 0x4d8   :  { %2886 = vmatpush.msra.mxu0 %v2486_v8  ;;  %2906 = vmatpush.msra.mxu1 %v2614_v43  ;;  %v2640_v42 = vld [vmem:[#allocation2 + $0x1db0] sm:$0xff]  ;;  %v2513_v8 = vld [vmem:[#allocation2 + $0x19b8] sm:$0xff] }
 0x4d9   :  { %2926 = vmatpush.msra.mxu2 %v2487_v36  ;;  %2946 = vmatpush.msra.mxu3 %v2615_v46  ;;  %v2641_v43 = vld [vmem:[#allocation2 + $0x1db8] sm:$0xff]  ;;  %v2504_v36 = vld [vmem:[#allocation2 + $0x1970] sm:$0xff] }
 0x4da   :  { %2887 = vmatpush.msra.mxu0 %v2478_v33  ;;  %2907 = vmatpush.msra.mxu1 %v2606_v47  ;;  %v2632_v46 = vld [vmem:[#allocation2 + $0x1d70] sm:$0xff]  ;;  %v2505_v33 = vld [vmem:[#allocation2 + $0x1978] sm:$0xff] }
 0x4db   :  { %2927 = vmatpush.msra.mxu2 %v2479_v40  ;;  %2947 = vmatpush.msra.mxu3 %v2607_v17  ;;  %v2633_v47 = vld [vmem:[#allocation2 + $0x1d78] sm:$0xff]  ;;  %v2496_v40 = vld [vmem:[#allocation2 + $0x1930] sm:$0xff] }
 0x4dc   :  { %2888 = vmatpush.msra.mxu0 %v2470_v38  ;;  %2908 = vmatpush.msra.mxu1 %v2598_v41  ;;  %v2624_v17 = vld [vmem:[#allocation2 + $0x1d30] sm:$0xff]  ;;  %v2497_v38 = vld [vmem:[#allocation2 + $0x1938] sm:$0xff] }
 0x4dd   :  { %2928 = vmatpush.msra.mxu2 %v2471_v53  ;;  %2948 = vmatpush.msra.mxu3 %v2599_v15  ;;  %v2625_v41 = vld [vmem:[#allocation2 + $0x1d38] sm:$0xff]  ;;  %v2488_v53 = vld [vmem:[#allocation2 + $0x18f0] sm:$0xff] }
 0x4de   :  { %2889 = vmatpush.msra.mxu0 %v2462_v37  ;;  %2909 = vmatpush.msra.mxu1 %v2590_v27  ;;  %v2616_v15 = vld [vmem:[#allocation2 + $0x1cf0] sm:$0xff]  ;;  %v2489_v37 = vld [vmem:[#allocation2 + $0x18f8] sm:$0xff] }
 0x4df   :  { %2929 = vmatpush.msra.mxu2 %v2463_v26  ;;  %2949 = vmatpush.msra.mxu3 %v2591_v6  ;;  %v2617_v27 = vld [vmem:[#allocation2 + $0x1cf8] sm:$0xff]  ;;  %v2480_v26 = vld [vmem:[#allocation2 + $0x18b0] sm:$0xff] }
 0x4e0   :  { %2954 = vmatpush.msrb.mxu0 %v2584_v30  ;;  %2974 = vmatpush.msrb.mxu1 %v2712_v11  ;;  %v2608_v6 = vld [vmem:[#allocation2 + $0x1cb0] sm:$0xff]  ;;  %v2481_v30 = vld [vmem:[#allocation2 + $0x18b8] sm:$0xff] }
 0x4e1   :  { %2994 = vmatpush.msrb.mxu2 %v2585_v23  ;;  %3014 = vmatpush.msrb.mxu3 %v2713_v45  ;;  %v2609_v11 = vld [vmem:[#allocation2 + $0x1cb8] sm:$0xff]  ;;  %v2472_v23 = vld [vmem:[#allocation2 + $0x1870] sm:$0xff] }
 0x4e2   :  { %2930 = vmatmul.f32.vlgmr.msra.gmra.mxu2 %v6049_v2  ;;  %2950 = vmatmul.f32.vlgmr.msra.gmra.mxu3 %v6050_v44  ;;  %v2600_v45 = vld [vmem:[#allocation2 + $0x1c70] sm:$0xff] }
 0x4e3   :  { %2955 = vmatpush.msrb.mxu0 %v2576_v58  ;;  %2975 = vmatpush.msrb.mxu1 %v2704_v52  ;;  %v2473_v58 = vld [vmem:[#allocation2 + $0x1878] sm:$0xff] }
 0x4e4   :  { %2995 = vmatpush.msrb.mxu2 %v2577_v57  ;;  %3015 = vmatpush.msrb.mxu3 %v2705_v0  ;;  %v2601_v52 = vld [vmem:[#allocation2 + $0x1c78] sm:$0xff]  ;;  %v2464_v57 = vld [vmem:[#allocation2 + $0x1830] sm:$0xff] }
 0x4e5   :  { %2956 = vmatpush.msrb.mxu0 %v2568_v18  ;;  %2976 = vmatpush.msrb.mxu1 %v2696_v59  ;;  %v2592_v0 = vld [vmem:[#allocation2 + $0x1c30] sm:$0xff]  ;;  %v2465_v18 = vld [vmem:[#allocation2 + $0x1838] sm:$0xff] }
 0x4e6   :  { %2996 = vmatpush.msrb.mxu2 %v2569_v22  ;;  %3016 = vmatpush.msrb.mxu3 %v2697_v1  ;;  %v2593_v59 = vld [vmem:[#allocation2 + $0x1c38] sm:$0xff] }
 0x4e7   :  { %2957 = vmatpush.msrb.mxu0 %v2560_v12  ;;  %2977 = vmatpush.msrb.mxu1 %v2688_v4 }
 0x4e8   :  { %2997 = vmatpush.msrb.mxu2 %v2561_v10  ;;  %3017 = vmatpush.msrb.mxu3 %v2689_v31 }
 0x4e9   :  { %2890 = vmatmul.f32.vlgmr.msra.gmra.mxu0 %v6049_v2  ;;  %2910 = vmatmul.f32.vlgmr.msra.gmra.mxu1 %v6050_v44 }
 0x4ea   :  { %2958 = vmatpush.msrb.mxu0 %v2552_v13  ;;  %2978 = vmatpush.msrb.mxu1 %v2680_v61 }
 0x4eb   :  { %2998 = vmatpush.msrb.mxu2 %v2553_v56  ;;  %3018 = vmatpush.msrb.mxu3 %v2681_v19 }
 0x4ec   :  { %2959 = vmatpush.msrb.mxu0 %v2544_v24  ;;  %2979 = vmatpush.msrb.mxu1 %v2672_v39 }
 0x4ed   :  { %2999 = vmatpush.msrb.mxu2 %v2545_v48  ;;  %3019 = vmatpush.msrb.mxu3 %v2673_v29 }
 0x4ee   :  { %2960 = vmatpush.msrb.mxu0 %v2536_v51  ;;  %2980 = vmatpush.msrb.mxu1 %v2664_v7 }
 0x4ef   :  { %3000 = vmatpush.msrb.mxu2 %v2537_v28  ;;  %3020 = vmatpush.msrb.mxu3 %v2665_v60 }
 0x4f0   :  { %2961 = vmatpush.msrb.mxu0 %v2528_v50  ;;  %2981 = vmatpush.msrb.mxu1 %v2656_v49 }
 0x4f1   :  { %3001 = vmatpush.msrb.mxu2 %v2529_v62  ;;  %3021 = vmatpush.msrb.mxu3 %v2657_v3 }
 0x4f2   :  { %2962 = vmatpush.msrb.mxu0 %v2520_v5  ;;  %2982 = vmatpush.msrb.mxu1 %v2648_v32 }
 0x4f3   :  { %3002 = vmatpush.msrb.mxu2 %v2521_v35  ;;  %3022 = vmatpush.msrb.mxu3 %v2649_v25 }
 0x4f4   :  { %2963 = vmatpush.msrb.mxu0 %v2512_v16  ;;  %2983 = vmatpush.msrb.mxu1 %v2640_v42 }
 0x4f5   :  { %3003 = vmatpush.msrb.mxu2 %v2513_v8  ;;  %3023 = vmatpush.msrb.mxu3 %v2641_v43 }
 0x4f6   :  { %2964 = vmatpush.msrb.mxu0 %v2504_v36  ;;  %2984 = vmatpush.msrb.mxu1 %v2632_v46 }
 0x4f7   :  { %3004 = vmatpush.msrb.mxu2 %v2505_v33  ;;  %3024 = vmatpush.msrb.mxu3 %v2633_v47 }
 0x4f8   :  { %2965 = vmatpush.msrb.mxu0 %v2496_v40  ;;  %2985 = vmatpush.msrb.mxu1 %v2624_v17 }
 0x4f9   :  { %3005 = vmatpush.msrb.mxu2 %v2497_v38  ;;  %3025 = vmatpush.msrb.mxu3 %v2625_v41 }
 0x4fa   :  { %2966 = vmatpush.msrb.mxu0 %v2488_v53  ;;  %2986 = vmatpush.msrb.mxu1 %v2616_v15 }
 0x4fb   :  { %3006 = vmatpush.msrb.mxu2 %v2489_v37  ;;  %3026 = vmatpush.msrb.mxu3 %v2617_v27 }
 0x4fc   :  { %2967 = vmatpush.msrb.mxu0 %v2480_v26  ;;  %2987 = vmatpush.msrb.mxu1 %v2608_v6 }
 0x4fd   :  { %3007 = vmatpush.msrb.mxu2 %v2481_v30  ;;  %3027 = vmatpush.msrb.mxu3 %v2609_v11 }
 0x4fe   :  { %2968 = vmatpush.msrb.mxu0 %v2472_v23  ;;  %2988 = vmatpush.msrb.mxu1 %v2600_v45 }
 0x4ff   :  { %3008 = vmatpush.msrb.mxu2 %v2473_v58  ;;  %3028 = vmatpush.msrb.mxu3 %v2601_v52 }
 0x500   :  { %2969 = vmatpush.msrb.mxu0 %v2464_v57  ;;  %2989 = vmatpush.msrb.mxu1 %v2592_v0 }
 0x501   :  { %3009 = vmatpush.msrb.mxu2 %v2465_v18  ;;  %3029 = vmatpush.msrb.mxu3 %v2593_v59 }
 0x502   :  { %2970 = vmatmul.f32.vlgmr.msrb.gmra.mxu0 %v6049_v2  ;;  %2990 = vmatmul.f32.vlgmr.msrb.gmra.mxu1 %v6050_v44 }
 0x503   :  { %3010 = vmatmul.f32.vlgmr.msrb.gmra.mxu2 %v6049_v2  ;;  %3030 = vmatmul.f32.vlgmr.msrb.gmra.mxu3 %v6050_v44 }
 0x527   :  { %v2771_v22 = vpop.f32.mrf.mxu2  ;;  %v2791_v1 = vpop.f32.mrf.mxu3 }
 0x528   :  { %v2792_v56 = vadd.f32 %v2791_v1, %v2771_v22 }
 0x52a   :  { %v2731_v12 = vpop.f32.mrf.mxu0  ;;  %v2751_v4 = vpop.f32.mrf.mxu1  ;;  %v5295_v39 = vadd.f32 %v2792_v56, %v5255_v55 }
 0x52b   :  { %v2752_v44 = vadd.f32 %v2751_v4, %v2731_v12 }
 0x52c   :  { %v3048_v29 = vrot.slane %v5295_v39, 4  ;;  %v3091_v51 = vmul.f32 %v5295_v39, %v5295_v39 }
 0x52d   :  { %v5313_v60 = vadd.f32 %v2752_v44, %v5258_v54 }
 0x52e   :  { %v3049_v49 = vadd.f32 %v3048_v29, %v5295_v39  ;;  %v3104_v62 = vrot.slane %v3091_v51, 4 }
 0x52f   :  { %v3042_v54 = vrot.slane %v5313_v60, 4  ;;  %v3090_v36 = vmul.f32 %v5313_v60, %v5313_v60 }
 0x530   :  { %v3050_v33 = vrot.slane %v3049_v49, 2  ;;  %v3105_v47 = vadd.f32 %v3104_v62, %v3091_v51 }
 0x531   :  { %v3043_v26 = vadd.f32 %v3042_v54, %v5313_v60  ;;  %v3098_v6 = vrot.slane %v3090_v36, 4 }
 0x532   :  { %v3051_v22 = vadd.f32 %v3050_v33, %v3049_v49  ;;  %v3106_v1 = vrot.slane %v3105_v47, 2 }
 0x533   :  { %v3044_v12 = vrot.slane %v3043_v26, 2  ;;  %v3099_v4 = vadd.f32 %v3098_v6, %v3090_v36 }
 0x534   :  { %v3052_v29 = vrot.slane %v3051_v22, 1  ;;  %v3107_v51 = vadd.f32 %v3106_v1, %v3105_v47 }
 0x541   :  { %v2851_v10 = vpop.f32.mrf.mxu2  ;;  %v2871_v31 = vpop.f32.mrf.mxu3 }
 0x542   :  { %v2811_v13 = vpop.f32.mrf.mxu0  ;;  %v2831_v61 = vpop.f32.mrf.mxu1  ;;  %v2872_v19 = vadd.f32 %v2871_v31, %v2851_v10 }
 0x543   :  { %v2832_v24 = vadd.f32 %v2831_v61, %v2811_v13 }
 0x544   :  { %v5298_v48 = vadd.f32 %v2872_v19, %v5261_v34 }
 0x545   :  { %v5301_v2 = vadd.f32 %v2832_v24, %v5264_v9 }
 0x546   :  { %v3060_v7 = vrot.slane %v5298_v48, 4  ;;  %v3093_v28 = vmul.f32 %v5298_v48, %v5298_v48 }
 0x547   :  { %v3054_v55 = vrot.slane %v5301_v2, 4  ;;  %v3092_v34 = vmul.f32 %v5301_v2, %v5301_v2 }
 0x548   :  { %v3061_v35 = vadd.f32 %v3060_v7, %v5298_v48  ;;  %v3116_v25 = vrot.slane %v3093_v28, 4  ;;  %v3045_v7 = vadd.f32 %v3044_v12, %v3043_v26 }
 0x549   :  { %v3055_v42 = vadd.f32 %v3054_v55, %v5301_v2  ;;  %v3110_v8 = vrot.slane %v3092_v34, 4 }
 0x54a   :  { %v3062_v38 = vrot.slane %v3061_v35, 2  ;;  %v3117_v41 = vadd.f32 %v3116_v25, %v3093_v28  ;;  %v3100_v28 = vrot.slane %v3099_v4, 2  ;;  %v3046_v25 = vrot.slane %v3045_v7, 1 }
 0x54b   :  { %v3056_v15 = vrot.slane %v3055_v42, 2  ;;  %v3111_v37 = vadd.f32 %v3110_v8, %v3092_v34 }
 0x54c   :  { %v3063_v58 = vadd.f32 %v3062_v38, %v3061_v35  ;;  %v3118_v52 = vrot.slane %v3117_v41, 2  ;;  %v3108_v35 = vrot.slane %v3107_v51, 1 }
 0x54d   :  { %v3057_v18 = vadd.f32 %v3056_v15, %v3055_v42  ;;  %v3112_v59 = vrot.slane %v3111_v37, 2 }
 0x54e   :  { %v3064_v13 = vrot.slane %v3063_v58, 1  ;;  %v3119_v61 = vadd.f32 %v3118_v52, %v3117_v41  ;;  %v3109_v38 = vadd.f32 %v3108_v35, %v3107_v51 }
 0x54f   :  { %v3058_v24 = vrot.slane %v3057_v18, 1  ;;  %v3113_v44 = vadd.f32 %v3112_v59, %v3111_v37 }
 0x550   :  { %v3155_v52 = vmul.f32 0.125, %v3109_v38 }
 0x565   :  { %v2931_v9 = vpop.f32.mrf.mxu2  ;;  %v2951_v50 = vpop.f32.mrf.mxu3 }
 0x566   :  { %v2891_v3 = vpop.f32.mrf.mxu0  ;;  %v2911_v5 = vpop.f32.mrf.mxu1  ;;  %v2952_v32 = vadd.f32 %v2951_v50, %v2931_v9  ;;  %v3065_v9 = vadd.f32 %v3064_v13, %v3063_v58  ;;  %v3120_v50 = vrot.slane %v3119_v61, 1 }
 0x567   :  { %v2912_v16 = vadd.f32 %v2911_v5, %v2891_v3  ;;  %v3059_v3 = vadd.f32 %v3058_v24, %v3057_v18  ;;  %v3114_v5 = vrot.slane %v3113_v44, 1 }
 0x568   :  { %v5319_v43 = vadd.f32 %v2952_v32, %v5267_v63  ;;  %v3053_v32 = vadd.f32 %v3052_v29, %v3051_v22  ;;  %v3121_v54 = vadd.f32 %v3120_v50, %v3119_v61  ;;  %v5336_v36 = vmul.f32 0.125, %v3065_v9 }
 0x569   :  { %v5325_v46 = vadd.f32 %v2912_v16, %v5270_v21  ;;  %v3101_v16 = vadd.f32 %v3100_v28, %v3099_v4 }
 0x56a   :  { %v3072_v40 = vrot.slane %v5319_v43, 4  ;;  %v3095_v17 = vmul.f32 %v5319_v43, %v5319_v43  ;;  %v5340_v41 = vmul.f32 0.125, %v3053_v32 }
 0x56b   :  { %v3066_v63 = vrot.slane %v5325_v46, 4  ;;  %v3094_v53 = vmul.f32 %v5325_v46, %v5325_v46 }
 0x56c   :  { %v3073_v27 = vadd.f32 %v3072_v40, %v5319_v43  ;;  %v3128_v21 = vrot.slane %v3095_v17, 4  ;;  %v3115_v40 = vadd.f32 %v3114_v5, %v3113_v44 }
 0x56d   :  { %v3067_v30 = vadd.f32 %v3066_v63, %v5325_v46  ;;  %v3122_v11 = vrot.slane %v3094_v53, 4  ;;  %v3047_v63 = vadd.f32 %v3046_v25, %v3045_v7 }
 0x56e   :  { %v3074_v23 = vrot.slane %v3073_v27, 2  ;;  %v3129_v45 = vadd.f32 %v3128_v21, %v3095_v17  ;;  %v5338_v17 = vmul.f32 0.125, %v3059_v3  ;;  %v3165_v21 = vmul.f32 %v5336_v36, %v5336_v36 }
 0x56f   :  { %v3068_v57 = vrot.slane %v3067_v30, 2  ;;  %v3123_v0 = vadd.f32 %v3122_v11, %v3094_v53  ;;  %v3102_v53 = vrot.slane %v3101_v16, 1  ;;  %v5352_v18 = vmul.f32 0.125, %v3047_v63 }
 0x570   :  { %v3075_v10 = vadd.f32 %v3074_v23, %v3073_v27  ;;  %v3130_v31 = vrot.slane %v3129_v45, 2  ;;  %v3157_v27 = vmul.f32 0.125, %v3121_v54  ;;  %v3156_v23 = vmul.f32 0.125, %v3115_v40 }
 0x571   :  { %v3069_v56 = vadd.f32 %v3068_v57, %v3067_v30  ;;  %v3124_v19 = vrot.slane %v3123_v0, 2  ;;  %v3163_v57 = vmul.f32 %v5340_v41, %v5340_v41  ;;  %v3162_v24 = vmul.f32 %v5352_v18, %v5352_v18 }
 0x572   :  { %v3076_v55 = vrot.slane %v3075_v10, 1  ;;  %v3131_v34 = vadd.f32 %v3130_v31, %v3129_v45  ;;  %v3164_v45 = vmul.f32 %v5338_v17, %v5338_v17  ;;  %v3173_v12 = vsub.f32 %v3157_v27, %v3165_v21 }
 0x573   :  { %v3070_v49 = vrot.slane %v3069_v56, 1  ;;  %v3125_v62 = vadd.f32 %v3124_v19, %v3123_v0  ;;  %v3103_v0 = vadd.f32 %v3102_v53, %v3101_v16 }
 0x574   :  { %v3077_v42 = vadd.f32 %v3076_v55, %v3075_v10  ;;  %v3132_v8 = vrot.slane %v3131_v34, 1  ;;  %v3172_v31 = vsub.f32 %v3156_v23, %v3164_v45  ;;  %v5367_v28 = vadd.f32 1e-05, %v3173_v12 }
 0x575   :  { %v3071_v33 = vadd.f32 %v3070_v49, %v3069_v56  ;;  %v3126_v47 = vrot.slane %v3125_v62, 1  ;;  %v3171_v56 = vsub.f32 %v3155_v52, %v3163_v57  ;;  %v3154_v19 = vmul.f32 0.125, %v3103_v0 }
 0x576   :  { %v3133_v15 = vadd.f32 %v3132_v8, %v3131_v34  ;;  %v5342_v37 = vmul.f32 0.125, %v3077_v42  ;;  %v5369_v9 = vadd.f32 1e-05, %v3172_v31  ;;  %3771 = vrsqrt.f32 %v5367_v28 }
 0x577   :  { %v3127_v26 = vadd.f32 %v3126_v47, %v3125_v62  ;;  %v5346_v6 = vmul.f32 0.125, %v3071_v33  ;;  %v5371_v62 = vadd.f32 1e-05, %v3171_v56  ;;  %v3170_v3 = vsub.f32 %v3154_v19, %v3162_v24 }
 0x578   :  { %v3159_v59 = vmul.f32 0.125, %v3133_v15  ;;  %v3167_v22 = vmul.f32 %v5342_v37, %v5342_v37  ;;  %3773 = vrsqrt.f32 %v5369_v9  ;;  %vm3222_vm2 = vweird.f32 %v5367_v28 }
 0x579   :  { %v3158_v4 = vmul.f32 0.125, %v3127_v26  ;;  %v3166_v10 = vmul.f32 %v5346_v6, %v5346_v6  ;;  %3775 = vrsqrt.f32 %v5371_v62  ;;  %vm3202_vm0 = vweird.f32 %v5371_v62 }
 0x57a   :  { %v3175_v44 = vsub.f32 %v3159_v59, %v3167_v22  ;;  %vm3212_vm4 = vweird.f32 %v5369_v9 }
 0x57b   :  { %v3174_v55 = vsub.f32 %v3158_v4, %v3166_v10 }
 0x57c   :  { %v5376_v32 = vadd.f32 1e-05, %v3175_v44  ;;  %v5393_v26 = vpop.eup %3771 }
 0x57d   :  { %v5379_v16 = vadd.f32 1e-05, %v3174_v55  ;;  %v3217_v10 = vmul.f32 %v5393_v26, %v5367_v28  ;;  %vm3223_vm3 = vweird.f32 %v5393_v26 }
 0x57e   :  { %3777 = vrsqrt.f32 %v5376_v32  ;;  %v5396_v23 = vpop.eup %3773  ;;  %vm3242_vm8 = vweird.f32 %v5376_v32  ;;  %vm5455_vm15 = vmor %vm3222_vm2, %vm3223_vm3 }
 0x57f   :  { %v2971_v30 = vpop.f32.mrf.mxu0  ;;  %v2991_v11 = vpop.f32.mrf.mxu1  ;;  %3779 = vrsqrt.f32 %v5379_v16  ;;  %v3207_v4 = vmul.f32 %v5396_v23, %v5369_v9  ;;  %vm3213_vm5 = vweird.f32 %v5396_v23  ;;  %vm3232_vm14 = vweird.f32 %v5379_v16 }
 0x580   :  { %v2992_v58 = vadd.f32 %v2991_v11, %v2971_v30  ;;  %v5400_v52 = vpop.eup %3775 }
 0x581   :  { %vm3203_vm1 = vweird.f32 %v5400_v52 }
 0x582   :  { %v5357_v1 = vadd.f32 %v2992_v58, %v5273_v20  ;;  %vm5447_vm6 = vmor %vm3202_vm0, %vm3203_vm1 }
 0x583   :  { %vm5467_vm0 = vmor %vm3212_vm4, %vm3213_vm5 }
 0x584   :  { %v3078_v13 = vrot.slane %v5357_v1, 4  ;;  %v3096_v61 = vmul.f32 %v5357_v1, %v5357_v1  ;;  %v5402_v59 = vpop.eup %3777 }
 0x585   :  { %v5404_v12 = vpop.eup %3779  ;;  %v3237_v24 = vmul.f32 %v5402_v59, %v5376_v32  ;;  %vm3243_vm12 = vweird.f32 %v5402_v59 }
 0x586   :  { %v3079_v20 = vadd.f32 %v3078_v13, %v5357_v1  ;;  %v3134_v29 = vrot.slane %v3096_v61, 4  ;;  %v3011_v51 = vpop.f32.mrf.mxu2  ;;  %v3031_v7 = vpop.f32.mrf.mxu3  ;;  %vm3233_vm13 = vweird.f32 %v5404_v12  ;;  %vm5473_vm1 = vmor %vm3242_vm8, %vm3243_vm12 }
 0x587   :  { %v3032_v34 = vadd.f32 %v3031_v7, %v3011_v51  ;;  %v3208_v51 = vmul.f32 %v5396_v23, %v3207_v4  ;;  %v3218_v7 = vmul.f32 %v5393_v26, %v3217_v10  ;;  %vm5482_vm4 = vmor %vm3232_vm14, %vm3233_vm13 }
 0x588   :  { %v3080_v50 = vrot.slane %v3079_v20, 2  ;;  %v3135_v49 = vadd.f32 %v3134_v29, %v3096_v61  ;;  %v3197_v61 = vmul.f32 %v5400_v52, %v5371_v62  ;;  %v3227_v29 = vmul.f32 %v5404_v12, %v5379_v16 }
 0x589   :  { %v5374_v5 = vadd.f32 %v3032_v34, %v5276_v14  ;;  %v5386_v14 = vadd.f32 1e-05, %v3170_v3  ;;  %v3238_v3 = vmul.f32 %v5402_v59, %v3237_v24 }
 0x58a   :  { %v3081_v35 = vadd.f32 %v3080_v50, %v3079_v20  ;;  %v3136_v25 = vrot.slane %v3135_v49, 2  ;;  %v3198_v50 = vmul.f32 %v5400_v52, %v3197_v61 }
 0x58b   :  { %v3084_v42 = vrot.slane %v5374_v5, 4  ;;  %v3097_v8 = vmul.f32 %v5374_v5, %v5374_v5  ;;  %3781 = vrsqrt.f32 %v5386_v14  ;;  %vm3192_vm2 = vweird.f32 %v5386_v14 }
 0x58c   :  { %v3082_v54 = vrot.slane %v3081_v35, 1  ;;  %v3137_v33 = vadd.f32 %v3136_v25, %v3135_v49  ;;  %v3228_v25 = vmul.f32 %v5404_v12, %v3227_v29 }
 0x58d   :  { %v3085_v47 = vadd.f32 %v3084_v42, %v5374_v5  ;;  %v3140_v40 = vrot.slane %v3097_v8, 4  ;;  %v3209_v42 = vmul.f32 0.5, %v3208_v51 }
 0x58e   :  { %v3083_v38 = vadd.f32 %v3082_v54, %v3081_v35  ;;  %v3138_v63 = vrot.slane %v3137_v33, 1 }
 0x58f   :  { %v3086_v53 = vrot.slane %v3085_v47, 2  ;;  %v3141_v15 = vadd.f32 %v3140_v40, %v3097_v8  ;;  %v3219_v8 = vmul.f32 0.5, %v3218_v7 }
 0x590   :  { %v3139_v27 = vadd.f32 %v3138_v63, %v3137_v33  ;;  %v5391_v21 = vmul.f32 0.125, %v3083_v38  ;;  %v3239_v38 = vmul.f32 0.5, %v3238_v3 }
 0x591   :  { %v3087_v30 = vadd.f32 %v3086_v53, %v3085_v47  ;;  %v3142_v11 = vrot.slane %v3141_v15, 2  ;;  %v5414_v19 = vpop.eup %3781  ;;  %v3199_v47 = vmul.f32 0.5, %v3198_v50  ;;  %v3229_v53 = vmul.f32 0.5, %v3228_v25 }
 0x592   :  { %v3160_v45 = vmul.f32 0.125, %v3139_v27  ;;  %v3168_v58 = vmul.f32 %v5391_v21, %v5391_v21  ;;  %v3187_v49 = vmul.f32 %v5414_v19, %v5386_v14  ;;  %v3220_v27 = vsub.f32 1.5, %v3219_v8 }
 0x593   :  { %v3088_v57 = vrot.slane %v3087_v30, 1  ;;  %v3143_v0 = vadd.f32 %v3142_v11, %v3141_v15  ;;  %v3210_v15 = vsub.f32 1.5, %v3209_v42  ;;  %v3200_v11 = vsub.f32 1.5, %v3199_v47 }
 0x594   :  { %v3176_v22 = vsub.f32 %v3160_v45, %v3168_v58  ;;  %v3188_v40 = vmul.f32 %v5414_v19, %v3187_v49  ;;  %v3240_v58 = vsub.f32 1.5, %v3239_v38  ;;  %v3221_v10 = vmul.f32 %v5393_v26, %v3220_v27 }
 0x595   :  { %v3089_v31 = vadd.f32 %v3088_v57, %v3087_v30  ;;  %v3144_v13 = vrot.slane %v3143_v0, 1  ;;  %v3211_v62 = vmul.f32 %v5396_v23, %v3210_v15  ;;  %v3201_v61 = vmul.f32 %v5400_v52, %v3200_v11 }
 0x596   :  { %v5412_v56 = vadd.f32 1e-05, %v3176_v22  ;;  %v3189_v45 = vmul.f32 0.5, %v3188_v40  ;;  %vm3193_vm3 = vweird.f32 %v5414_v19  ;;  %v3225_v9 = vsel %vm5455_vm15, %v5393_v26, %v3221_v10 }
 0x597   :  { %v3145_v44 = vadd.f32 %v3144_v13, %v3143_v0  ;;  %v5418_v20 = vmul.f32 0.125, %v3089_v31  ;;  %v3230_v0 = vsub.f32 1.5, %v3229_v53  ;;  %v3205_v14 = vsel %vm5447_vm6, %v5400_v52, %v3201_v61  ;;  %vm5498_vm13 = vmor %vm3192_vm2, %vm3193_vm3 }
 0x598   :  { %3783 = vrsqrt.f32 %v5412_v56  ;;  %v3190_v24 = vsub.f32 1.5, %v3189_v45  ;;  %vm3252_vm14 = vweird.f32 %v5412_v56  ;;  %v3276_v52 = vrot.slane %v3225_v9, 5  ;;  %v6066_v45 = vld [vmem:[#allocation36_spill] sm:$0xff] }
 0x599   :  { %v3161_v55 = vmul.f32 0.125, %v3145_v44  ;;  %v3169_v34 = vmul.f32 %v5418_v20, %v5418_v20  ;;  %v3241_v44 = vmul.f32 %v5402_v59, %v3240_v58  ;;  %v3231_v16 = vmul.f32 %v5404_v12, %v3230_v0 }
 0x59a   :  { %v3191_v49 = vmul.f32 %v5414_v19, %v3190_v24  ;;  %vm6065_vm2 = vcmask 1043456  }
 0x59b   :  { %v3177_v35 = vsub.f32 %v3161_v55, %v3169_v34  ;;  %v3215_v55 = vsel %vm5467_vm0, %v5396_v23, %v3211_v62  ;;  %v3245_v26 = vsel %vm5473_vm1, %v5402_v59, %v3241_v44  ;;  %v3235_v23 = vsel %vm5482_vm4, %v5404_v12, %v3231_v16 }
 0x59c   :  { %v3275_v25 = vrot.slane %v3215_v55, 6  ;;  %v3274_v59 = vrot.slane %v3205_v14, 7  ;;  %v3277_v47 = vrot.slane %v3235_v23, 4  ;;  %v3278_v40 = vrot.slane %v3245_v26, 3 }
 0x59d   :  { %v5432_v54 = vadd.f32 1e-05, %v3177_v35  ;;  %v3195_v12 = vsel %vm5498_vm13, %v5414_v19, %v3191_v49  ;;  %vm6063_vm0 = vcmask 1041408   ;;  %vm6064_vm1 = vcmask 1045508   ;;  %v6070_v49 = vld [vmem:[#allocation37_spill] sm:$0xff] }
 0x59e   :  { %v5434_v33 = vpop.eup %3783  ;;  %v3281_v15 = vsel %vm606_vm9, %v3195_v12, %v3274_v59  ;;  %vm6067_vm3 = vmmov %vm6063_vm0 }
 0x59f   :  { %v3247_v63 = vmul.f32 %v5434_v33, %v5412_v56  ;;  %3785 = vrsqrt.f32 %v5432_v54  ;;  %vm3253_vm5 = vweird.f32 %v5434_v33  ;;  %vm3262_vm8 = vweird.f32 %v5432_v54  ;;  %vm6068_vm4 = vmmov %vm6064_vm1 }
 0x5a0   :  { %vm3254_vm6 = vmor %vm3252_vm14, %vm3253_vm5  ;;  %v3282_v56 = vsel %vm608_vm7, %v3275_v25, %v3276_v52 }
 0x5a1   :  { %v3248_v30 = vmul.f32 %v5434_v33, %v3247_v63  ;;  %vm6069_vm5 = vmmov %vm6065_vm2 }
 0x5a3   :  { %v3249_v57 = vmul.f32 0.5, %v3248_v30 }
 0x5a5   :  { %v3786_v22 = vpop.eup %3785  ;;  %v3250_v31 = vsub.f32 1.5, %v3249_v57 }
 0x5a6   :  { %v3257_v13 = vmul.f32 %v3786_v22, %v5432_v54  ;;  %vm3263_vm15 = vweird.f32 %v3786_v22  ;;  %v3283_v54 = vsel %vm6063_vm0, %v3281_v15, %v3282_v56 }
 0x5a7   :  { %v3251_v34 = vmul.f32 %v5434_v33, %v3250_v31  ;;  %vm3264_vm12 = vmor %vm3262_vm8, %vm3263_vm15 }
 0x5a8   :  { %v3258_v51 = vmul.f32 %v3786_v22, %v3257_v13 }
 0x5a9   :  { %v3255_v42 = vsel %vm3254_vm6, %v5434_v33, %v3251_v34  ;;  %v3284_v33 = vsel %vm612_vm10, %v3277_v47, %v3278_v40 }
 0x5aa   :  { %v3259_v50 = vmul.f32 0.5, %v3258_v51  ;;  %v3279_v63 = vrot.slane %v3255_v42, 2 }
 0x5ac   :  { %v3260_v35 = vsub.f32 1.5, %v3259_v50 }
 0x5ae   :  { %v3261_v8 = vmul.f32 %v3786_v22, %v3260_v35 }
 0x5b0   :  { %v3265_v38 = vsel %vm3264_vm12, %v3786_v22, %v3261_v8 }
 0x5b1   :  { %v3280_v53 = vrot.slane %v3265_v38, 1 }
 0x5b3   :  { %v3285_v27 = vsel %vm614_vm11, %v3279_v63, %v3280_v53 }
 0x5b4   :  { %v3286_v30 = vsel %vm6064_vm1, %v3284_v33, %v3285_v27 }
 0x5b5   :  { %v3287_v11 = vsel %vm6065_vm2, %v3283_v54, %v3286_v30 }
 0x5b6   :  { %v3289_v58 = vmul.f32 %v3287_v11, %v6066_v45 }
 0x5b8   :  { %v3291_v19 = vperm.slane %v3289_v58, 0  ;;  %v3292_v57 = vperm.slane %v3289_v58, 1  ;;  %v3293_v0 = vperm.slane %v3289_v58, 2  ;;  %v3294_v22 = vperm.slane %v3289_v58, 3 }
 0x5b9   :  { %v3295_v4 = vperm.slane %v3289_v58, 4  ;;  %v3296_v62 = vperm.slane %v3289_v58, 5  ;;  %v3297_v10 = vperm.slane %v3289_v58, 6  ;;  %v3298_v28 = vperm.slane %v3289_v58, 7 }
 0x5ba   :  { %v3308_v31 = vmul.f32 %v3292_v57, %v5340_v41  ;;  %v3309_v13 = vmul.f32 %v3293_v0, %v5338_v17  ;;  %v3310_v61 = vmul.f32 %v3294_v22, %v5336_v36  ;;  %v3307_v29 = vmul.f32 %v3291_v19, %v5352_v18 }
 0x5bb   :  { %v3311_v24 = vmul.f32 %v3295_v4, %v5346_v6  ;;  %v3312_v32 = vmul.f32 %v3296_v62, %v5342_v37  ;;  %v3313_v44 = vmul.f32 %v3297_v10, %v5391_v21  ;;  %v3314_v16 = vmul.f32 %v3298_v28, %v5418_v20 }
 0x5bc   :  { %v3323_v51 = vrot.slane %v3308_v31, 7  ;;  %v3324_v9 = vrot.slane %v3309_v13, 6  ;;  %v3325_v7 = vrot.slane %v3310_v61, 5  ;;  %v3339_v14 = vmul.f32 %v3291_v19, %v5313_v60 }
 0x5bd   :  { %v3326_v55 = vrot.slane %v3311_v24, 4  ;;  %v3327_v34 = vrot.slane %v3312_v32, 3  ;;  %v3328_v41 = vrot.slane %v3313_v44, 2  ;;  %v3329_v50 = vrot.slane %v3314_v16, 1 }
 0x5be   :  { %v3330_v17 = vsel %vm606_vm9, %v3307_v29, %v3323_v51  ;;  %v3331_v36 = vsel %vm608_vm7, %v3324_v9, %v3325_v7  ;;  %v3340_v3 = vmul.f32 %v3292_v57, %v5295_v39  ;;  %v3341_v23 = vmul.f32 %v3293_v0, %v5301_v2 }
 0x5bf   :  { %v3332_v6 = vsel %vm6067_vm3, %v3330_v17, %v3331_v36  ;;  %v3333_v37 = vsel %vm612_vm10, %v3326_v55, %v3327_v34  ;;  %v3334_v21 = vsel %vm614_vm11, %v3328_v41, %v3329_v50  ;;  %v3342_v35 = vmul.f32 %v3294_v22, %v5298_v48 }
 0x5c0   :  { %v3335_v20 = vsel %vm6068_vm4, %v3333_v37, %v3334_v21  ;;  %v3343_v25 = vmul.f32 %v3295_v4, %v5325_v46  ;;  %v3344_v52 = vmul.f32 %v3296_v62, %v5319_v43  ;;  %v3345_v42 = vmul.f32 %v3297_v10, %v5357_v1 }
 0x5c1   :  { %v3336_v18 = vsel %vm6069_vm5, %v3332_v6, %v3335_v20  ;;  %v3346_v8 = vmul.f32 %v3298_v28, %v5374_v5 }
 0x5c2   :  { %v3338_v26 = vsub.f32 %v6070_v49, %v3336_v18 }
 0x5c4   :  { %v3348_v59 = vperm.slane %v3338_v26, 0  ;;  %v3349_v47 = vperm.slane %v3338_v26, 1  ;;  %v3350_v40 = vperm.slane %v3338_v26, 2  ;;  %v3351_v60 = vperm.slane %v3338_v26, 3 }
 0x5c5   :  { %v3352_v12 = vperm.slane %v3338_v26, 4  ;;  %v3353_v38 = vperm.slane %v3338_v26, 5  ;;  %v3354_v56 = vperm.slane %v3338_v26, 6  ;;  %v3355_v39 = vperm.slane %v3338_v26, 7 }
 0x5c6   :  { %v5543_v63 = vadd.f32 %v3348_v59, %v3339_v14  ;;  %v5545_v2 = vadd.f32 %v3349_v47, %v3340_v3  ;;  %v5547_v48 = vadd.f32 %v3350_v40, %v3341_v23  ;;  %v5549_v46 = vadd.f32 %v3351_v60, %v3342_v35 }
 0x5c7   :  { %v5551_v43 = vadd.f32 %v3352_v12, %v3343_v25  ;;  %v5553_v1 = vadd.f32 %v3353_v38, %v3344_v52  ;;  %v5555_v5 = vadd.f32 %v3354_v56, %v3345_v42  ;;  %v5557_v53 = vadd.f32 %v3355_v39, %v3346_v8 }
 0x5c8   :  { %v3372_v15 = vmax.f32 %v5543_v63, 0.0  ;;  %v3373_v33 = vmax.f32 %v5545_v2, 0.0  ;;  %v3374_v27 = vmax.f32 %v5547_v48, 0.0  ;;  %v3375_v54 = vmax.f32 %v5549_v46, 0.0 }
 0x5c9   :  { %v3376_v30 = vmax.f32 %v5551_v43, 0.0  ;;  %v3377_v11 = vmax.f32 %v5553_v1, 0.0  ;;  %v3378_v45 = vmax.f32 %v5555_v5, 0.0  ;;  %v3379_v58 = vmax.f32 %v5557_v53, 0.0 }
 0x5ca   :  { %4066 = dma.done.wait [#allocation4 + $0x4], 16384 }
 0x5cb   :  { %4067 = vsyncadd [#allocation4 + $0x4], 4294950912  ;;  %v3430_v19 = vld [vmem:[#allocation3 + $0x178] sm:$0xff]  ;;  %v3429_v0 = vld [vmem:[#allocation3 + $0x170] sm:$0xff]  ;;  %s4082_s5 = smov [#allocation14]   ;;  %s3683_s25 = sshll.u32 %s5593_s7, 4  ;;  %s3684_s25 = int_to_ptr.hbm [resolvable:$true] %s3683_s25 }
 0x5cc   :  { %v3398_v57 = vld [vmem:[#allocation3 + $0x78] sm:$0xff]  ;;  %3555 = vmatpush.msra.mxu2 %v3430_v19  ;;  %v3397_v4 = vld [vmem:[#allocation3 + $0x70] sm:$0xff]  ;;  %v3428_v10 = vld [vmem:[#allocation3 + $0x168] sm:$0xff]  ;;  %s3681_s6 = sshll.u32 %s4082_s5, 4  ;;  %s3682_s6 = int_to_ptr.vmem [resolvable:$true] %s3681_s6 }
 0x5cd   :  { %3515 = vmatpush.msra.mxu0 %v3398_v57  ;;  %v3446_v22 = vld [vmem:[#allocation3 + $0x1f8] sm:$0xff]  ;;  %v3445_v28 = vld [vmem:[#allocation3 + $0x1f0] sm:$0xff]  ;;  %v3396_v31 = vld [vmem:[#allocation3 + $0x68] sm:$0xff] }
 0x5ce   :  { %v3414_v62 = vld [vmem:[#allocation3 + $0xf8] sm:$0xff]  ;;  %3575 = vmatpush.msra.mxu3 %v3446_v22  ;;  %3556 = vmatpush.msra.mxu2 %v3429_v0  ;;  %v3413_v13 = vld [vmem:[#allocation3 + $0xf0] sm:$0xff]  ;;  %v3444_v61 = vld [vmem:[#allocation3 + $0x1e8] sm:$0xff] }
 0x5cf   :  { %3535 = vmatpush.msra.mxu1 %v3414_v62  ;;  %3516 = vmatpush.msra.mxu0 %v3397_v4  ;;  %v3427_v24 = vld [vmem:[#allocation3 + $0x160] sm:$0xff]  ;;  %v3412_v44 = vld [vmem:[#allocation3 + $0xe8] sm:$0xff]  ;;  %v3426_v51 = vld [vmem:[#allocation3 + $0x158] sm:$0xff] }
 0x5d0   :  { %3576 = vmatpush.msra.mxu3 %v3445_v28  ;;  %v3395_v32 = vld [vmem:[#allocation3 + $0x60] sm:$0xff]  ;;  %3557 = vmatpush.msra.mxu2 %v3428_v10  ;;  %v3394_v9 = vld [vmem:[#allocation3 + $0x58] sm:$0xff]  ;;  %v3425_v34 = vld [vmem:[#allocation3 + $0x150] sm:$0xff] }
 0x5d1   :  { %3536 = vmatpush.msra.mxu1 %v3413_v13  ;;  %3517 = vmatpush.msra.mxu0 %v3396_v31  ;;  %v3443_v16 = vld [vmem:[#allocation3 + $0x1e0] sm:$0xff]  ;;  %v3442_v7 = vld [vmem:[#allocation3 + $0x1d8] sm:$0xff]  ;;  %v3393_v41 = vld [vmem:[#allocation3 + $0x50] sm:$0xff] }
 0x5d2   :  { %v3411_v29 = vld [vmem:[#allocation3 + $0xe0] sm:$0xff]  ;;  %3577 = vmatpush.msra.mxu3 %v3444_v61  ;;  %3558 = vmatpush.msra.mxu2 %v3427_v24  ;;  %v3410_v55 = vld [vmem:[#allocation3 + $0xd8] sm:$0xff]  ;;  %v3441_v50 = vld [vmem:[#allocation3 + $0x1d0] sm:$0xff] }
 0x5d3   :  { %3537 = vmatpush.msra.mxu1 %v3412_v44  ;;  %3518 = vmatpush.msra.mxu0 %v3395_v32  ;;  %v3409_v17 = vld [vmem:[#allocation3 + $0xd0] sm:$0xff]  ;;  %v3424_v36 = vld [vmem:[#allocation3 + $0x148] sm:$0xff]  ;;  %v3423_v20 = vld [vmem:[#allocation3 + $0x140] sm:$0xff] }
 0x5d4   :  { %3578 = vmatpush.msra.mxu3 %v3443_v16  ;;  %3559 = vmatpush.msra.mxu2 %v3426_v51  ;;  %v3392_v6 = vld [vmem:[#allocation3 + $0x48] sm:$0xff]  ;;  %v3391_v18 = vld [vmem:[#allocation3 + $0x40] sm:$0xff]  ;;  %v3422_v26 = vld [vmem:[#allocation3 + $0x138] sm:$0xff] }
 0x5d5   :  { %3538 = vmatpush.msra.mxu1 %v3411_v29  ;;  %3519 = vmatpush.msra.mxu0 %v3394_v9  ;;  %v3440_v37 = vld [vmem:[#allocation3 + $0x1c8] sm:$0xff]  ;;  %v3439_v14 = vld [vmem:[#allocation3 + $0x1c0] sm:$0xff]  ;;  %v3390_v3 = vld [vmem:[#allocation3 + $0x38] sm:$0xff] }
 0x5d6   :  { %3579 = vmatpush.msra.mxu3 %v3442_v7  ;;  %3560 = vmatpush.msra.mxu2 %v3425_v34  ;;  %v3408_v21 = vld [vmem:[#allocation3 + $0xc8] sm:$0xff]  ;;  %v3407_v49 = vld [vmem:[#allocation3 + $0xc0] sm:$0xff]  ;;  %v3438_v23 = vld [vmem:[#allocation3 + $0x1b8] sm:$0xff] }
 0x5d7   :  { %3539 = vmatpush.msra.mxu1 %v3410_v55  ;;  %3520 = vmatpush.msra.mxu0 %v3393_v41  ;;  %v3406_v35 = vld [vmem:[#allocation3 + $0xb8] sm:$0xff]  ;;  %v3421_v25 = vld [vmem:[#allocation3 + $0x130] sm:$0xff]  ;;  %v3420_v59 = vld [vmem:[#allocation3 + $0x128] sm:$0xff] }
 0x5d8   :  { %3580 = vmatpush.msra.mxu3 %v3441_v50  ;;  %3561 = vmatpush.msra.mxu2 %v3424_v36  ;;  %v3389_v52 = vld [vmem:[#allocation3 + $0x30] sm:$0xff]  ;;  %v3388_v47 = vld [vmem:[#allocation3 + $0x28] sm:$0xff]  ;;  %v3419_v12 = vld [vmem:[#allocation3 + $0x120] sm:$0xff] }
 0x5d9   :  { %3540 = vmatpush.msra.mxu1 %v3409_v17  ;;  %3521 = vmatpush.msra.mxu0 %v3392_v6  ;;  %v3437_v42 = vld [vmem:[#allocation3 + $0x1b0] sm:$0xff]  ;;  %v3436_v40 = vld [vmem:[#allocation3 + $0x1a8] sm:$0xff]  ;;  %v3387_v38 = vld [vmem:[#allocation3 + $0x20] sm:$0xff] }
 0x5da   :  { %3581 = vmatpush.msra.mxu3 %v3440_v37  ;;  %3562 = vmatpush.msra.mxu2 %v3423_v20  ;;  %v3405_v8 = vld [vmem:[#allocation3 + $0xb0] sm:$0xff]  ;;  %v3404_v60 = vld [vmem:[#allocation3 + $0xa8] sm:$0xff]  ;;  %v3435_v56 = vld [vmem:[#allocation3 + $0x1a0] sm:$0xff] }
 0x5db   :  { %3541 = vmatpush.msra.mxu1 %v3408_v21  ;;  %3522 = vmatpush.msra.mxu0 %v3391_v18  ;;  %v3403_v39 = vld [vmem:[#allocation3 + $0xa0] sm:$0xff]  ;;  %v3418_v19 = vld [vmem:[#allocation3 + $0x118] sm:$0xff]  ;;  %v3417_v4 = vld [vmem:[#allocation3 + $0x110] sm:$0xff] }
 0x5dc   :  { %3582 = vmatpush.msra.mxu3 %v3439_v14  ;;  %3563 = vmatpush.msra.mxu2 %v3422_v26  ;;  %v3386_v57 = vld [vmem:[#allocation3 + $0x18] sm:$0xff]  ;;  %v3385_v62 = vld [vmem:[#allocation3 + $0x10] sm:$0xff]  ;;  %v3416_v31 = vld [vmem:[#allocation3 + $0x108] sm:$0xff] }
 0x5dd   :  { %3542 = vmatpush.msra.mxu1 %v3407_v49  ;;  %3523 = vmatpush.msra.mxu0 %v3390_v3  ;;  %v3434_v0 = vld [vmem:[#allocation3 + $0x198] sm:$0xff]  ;;  %v3433_v10 = vld [vmem:[#allocation3 + $0x190] sm:$0xff]  ;;  %v3384_v13 = vld [vmem:[#allocation3 + $0x8] sm:$0xff] }
 0x5de   :  { %3583 = vmatpush.msra.mxu3 %v3438_v23  ;;  %3564 = vmatpush.msra.mxu2 %v3421_v25  ;;  %v3402_v22 = vld [vmem:[#allocation3 + $0x98] sm:$0xff]  ;;  %v3401_v28 = vld [vmem:[#allocation3 + $0x90] sm:$0xff]  ;;  %v3432_v61 = vld [vmem:[#allocation3 + $0x188] sm:$0xff] }
 0x5df   :  { %3543 = vmatpush.msra.mxu1 %v3406_v35  ;;  %3524 = vmatpush.msra.mxu0 %v3389_v52  ;;  %v3400_v24 = vld [vmem:[#allocation3 + $0x88] sm:$0xff]  ;;  %v3415_v32 = vld [vmem:[#allocation3 + $0x100] sm:$0xff]  ;;  %v3494_v16 = vld [vmem:[#allocation3 + $0x378] sm:$0xff] }
 0x5e0   :  { %3584 = vmatpush.msra.mxu3 %v3437_v42  ;;  %3565 = vmatpush.msra.mxu2 %v3420_v59  ;;  %v3383_v44 = vld [vmem:[#allocation3] sm:$0xff]  ;;  %v3462_v51 = vld [vmem:[#allocation3 + $0x278] sm:$0xff]  ;;  %v3493_v7 = vld [vmem:[#allocation3 + $0x370] sm:$0xff] }
 0x5e1   :  { %3544 = vmatpush.msra.mxu1 %v3405_v8  ;;  %3525 = vmatpush.msra.mxu0 %v3388_v47  ;;  %v3431_v29 = vld [vmem:[#allocation3 + $0x180] sm:$0xff]  ;;  %v3510_v9 = vld [vmem:[#allocation3 + $0x3f8] sm:$0xff]  ;;  %v3461_v34 = vld [vmem:[#allocation3 + $0x270] sm:$0xff] }
 0x5e2   :  { %3585 = vmatpush.msra.mxu3 %v3436_v40  ;;  %3566 = vmatpush.msra.mxu2 %v3419_v12  ;;  %v3399_v55 = vld [vmem:[#allocation3 + $0x80] sm:$0xff]  ;;  %v3478_v41 = vld [vmem:[#allocation3 + $0x2f8] sm:$0xff]  ;;  %v3492_v50 = vld [vmem:[#allocation3 + $0x368] sm:$0xff] }
 0x5e3   :  { %3545 = vmatpush.msra.mxu1 %v3404_v60  ;;  %3526 = vmatpush.msra.mxu0 %v3387_v38  ;;  %v3509_v17 = vld [vmem:[#allocation3 + $0x3f0] sm:$0xff]  ;;  %v3460_v36 = vld [vmem:[#allocation3 + $0x268] sm:$0xff]  ;;  %v3491_v37 = vld [vmem:[#allocation3 + $0x360] sm:$0xff] }
 0x5e4   :  { %3586 = vmatpush.msra.mxu3 %v3435_v56  ;;  %3567 = vmatpush.msra.mxu2 %v3418_v19  ;;  %v3477_v6 = vld [vmem:[#allocation3 + $0x2f0] sm:$0xff]  ;;  %v3508_v21 = vld [vmem:[#allocation3 + $0x3e8] sm:$0xff]  ;;  %v3459_v20 = vld [vmem:[#allocation3 + $0x260] sm:$0xff] }
 0x5e5   :  { %3546 = vmatpush.msra.mxu1 %v3403_v39  ;;  %3527 = vmatpush.msra.mxu0 %v3386_v57  ;;  %v3476_v18 = vld [vmem:[#allocation3 + $0x2e8] sm:$0xff]  ;;  %v3490_v14 = vld [vmem:[#allocation3 + $0x358] sm:$0xff]  ;;  %v3507_v49 = vld [vmem:[#allocation3 + $0x3e0] sm:$0xff] }
 0x5e6   :  { %3587 = vmatpush.msra.mxu3 %v3434_v0  ;;  %3568 = vmatpush.msra.mxu2 %v3417_v4  ;;  %v3458_v26 = vld [vmem:[#allocation3 + $0x258] sm:$0xff]  ;;  %v3475_v3 = vld [vmem:[#allocation3 + $0x2e0] sm:$0xff]  ;;  %v3489_v23 = vld [vmem:[#allocation3 + $0x350] sm:$0xff] }
 0x5e7   :  { %3547 = vmatpush.msra.mxu1 %v3402_v22  ;;  %3528 = vmatpush.msra.mxu0 %v3385_v62  ;;  %v3506_v35 = vld [vmem:[#allocation3 + $0x3d8] sm:$0xff]  ;;  %v3457_v25 = vld [vmem:[#allocation3 + $0x250] sm:$0xff]  ;;  %v3488_v42 = vld [vmem:[#allocation3 + $0x348] sm:$0xff] }
 0x5e8   :  { %3588 = vmatpush.msra.mxu3 %v3433_v10  ;;  %3569 = vmatpush.msra.mxu2 %v3416_v31  ;;  %v3474_v52 = vld [vmem:[#allocation3 + $0x2d8] sm:$0xff]  ;;  %v3505_v8 = vld [vmem:[#allocation3 + $0x3d0] sm:$0xff]  ;;  %v3456_v59 = vld [vmem:[#allocation3 + $0x248] sm:$0xff] }
 0x5e9   :  { %3548 = vmatpush.msra.mxu1 %v3401_v28  ;;  %3529 = vmatpush.msra.mxu0 %v3384_v13  ;;  %v3473_v47 = vld [vmem:[#allocation3 + $0x2d0] sm:$0xff]  ;;  %v3487_v40 = vld [vmem:[#allocation3 + $0x340] sm:$0xff]  ;;  %v3504_v60 = vld [vmem:[#allocation3 + $0x3c8] sm:$0xff] }
 0x5ea   :  { %3589 = vmatpush.msra.mxu3 %v3432_v61  ;;  %3570 = vmatpush.msra.mxu2 %v3415_v32  ;;  %v3455_v12 = vld [vmem:[#allocation3 + $0x240] sm:$0xff]  ;;  %v3472_v38 = vld [vmem:[#allocation3 + $0x2c8] sm:$0xff]  ;;  %v3486_v56 = vld [vmem:[#allocation3 + $0x338] sm:$0xff] }
 0x5eb   :  { %3549 = vmatpush.msra.mxu1 %v3400_v24  ;;  %3530 = vmatpush.msra.mxu0 %v3383_v44  ;;  %v3503_v39 = vld [vmem:[#allocation3 + $0x3c0] sm:$0xff]  ;;  %v3454_v19 = vld [vmem:[#allocation3 + $0x238] sm:$0xff]  ;;  %v3485_v0 = vld [vmem:[#allocation3 + $0x330] sm:$0xff] }
 0x5ec   :  { %3635 = vmatpush.msrb.mxu2 %v3494_v16  ;;  %3590 = vmatpush.msra.mxu3 %v3431_v29  ;;  %v3471_v57 = vld [vmem:[#allocation3 + $0x2c0] sm:$0xff]  ;;  %v3502_v22 = vld [vmem:[#allocation3 + $0x3b8] sm:$0xff]  ;;  %v3453_v4 = vld [vmem:[#allocation3 + $0x230] sm:$0xff] }
 0x5ed   :  { %3595 = vmatpush.msrb.mxu0 %v3462_v51  ;;  %3550 = vmatpush.msra.mxu1 %v3399_v55  ;;  %v3470_v62 = vld [vmem:[#allocation3 + $0x2b8] sm:$0xff]  ;;  %v3484_v10 = vld [vmem:[#allocation3 + $0x328] sm:$0xff]  ;;  %v3501_v28 = vld [vmem:[#allocation3 + $0x3b0] sm:$0xff] }
 0x5ee   :  { %3655 = vmatpush.msrb.mxu3 %v3510_v9  ;;  %3636 = vmatpush.msrb.mxu2 %v3493_v7  ;;  %v3452_v31 = vld [vmem:[#allocation3 + $0x228] sm:$0xff]  ;;  %v3469_v13 = vld [vmem:[#allocation3 + $0x2b0] sm:$0xff]  ;;  %v3483_v61 = vld [vmem:[#allocation3 + $0x320] sm:$0xff] }
 0x5ef   :  { %3596 = vmatpush.msrb.mxu0 %v3461_v34  ;;  %3615 = vmatpush.msrb.mxu1 %v3478_v41  ;;  %v3500_v24 = vld [vmem:[#allocation3 + $0x3a8] sm:$0xff]  ;;  %v3451_v32 = vld [vmem:[#allocation3 + $0x220] sm:$0xff]  ;;  %v3482_v16 = vld [vmem:[#allocation3 + $0x318] sm:$0xff] }
 0x5f0   :  { %3637 = vmatpush.msrb.mxu2 %v3492_v50  ;;  %3656 = vmatpush.msrb.mxu3 %v3509_v17  ;;  %v3468_v44 = vld [vmem:[#allocation3 + $0x2a8] sm:$0xff]  ;;  %v3499_v29 = vld [vmem:[#allocation3 + $0x3a0] sm:$0xff]  ;;  %v3450_v51 = vld [vmem:[#allocation3 + $0x218] sm:$0xff] }
 0x5f1   :  { %3597 = vmatpush.msrb.mxu0 %v3460_v36  ;;  %3616 = vmatpush.msrb.mxu1 %v3477_v6  ;;  %v3467_v9 = vld [vmem:[#allocation3 + $0x2a0] sm:$0xff]  ;;  %v3481_v7 = vld [vmem:[#allocation3 + $0x310] sm:$0xff]  ;;  %v3498_v55 = vld [vmem:[#allocation3 + $0x398] sm:$0xff] }
 0x5f2   :  { %3638 = vmatpush.msrb.mxu2 %v3491_v37  ;;  %3657 = vmatpush.msrb.mxu3 %v3508_v21  ;;  %v3449_v34 = vld [vmem:[#allocation3 + $0x210] sm:$0xff]  ;;  %v3466_v41 = vld [vmem:[#allocation3 + $0x298] sm:$0xff]  ;;  %v3480_v48 = vld [vmem:[#allocation3 + $0x308] sm:$0xff] }
 0x5f3   :  { %3598 = vmatpush.msrb.mxu0 %v3459_v20  ;;  %3617 = vmatpush.msrb.mxu1 %v3476_v18  ;;  %v3448_v50 = vld [vmem:[#allocation3 + $0x208] sm:$0xff]  ;;  %v3465_v17 = vld [vmem:[#allocation3 + $0x290] sm:$0xff]  ;;  %v3479_v63 = vld [vmem:[#allocation3 + $0x300] sm:$0xff] }
 0x5f4   :  { %3639 = vmatpush.msrb.mxu2 %v3490_v14  ;;  %3658 = vmatpush.msrb.mxu3 %v3507_v49  ;;  %v3447_v46 = vld [vmem:[#allocation3 + $0x200] sm:$0xff] }
 0x5f5   :  { %3599 = vmatpush.msrb.mxu0 %v3458_v26  ;;  %3618 = vmatpush.msrb.mxu1 %v3475_v3  ;;  %v3495_v36 = vld [vmem:[#allocation3 + $0x380] sm:$0xff] }
 0x5f6   :  { %3640 = vmatpush.msrb.mxu2 %v3489_v23  ;;  %3659 = vmatpush.msrb.mxu3 %v3506_v35  ;;  %v3463_v2 = vld [vmem:[#allocation3 + $0x280] sm:$0xff] }
 0x5f7   :  { %3600 = vmatpush.msrb.mxu0 %v3457_v25  ;;  %3619 = vmatpush.msrb.mxu1 %v3474_v52 }
 0x5f8   :  { %3641 = vmatpush.msrb.mxu2 %v3488_v42  ;;  %3660 = vmatpush.msrb.mxu3 %v3505_v8 }
 0x5f9   :  { %3601 = vmatpush.msrb.mxu0 %v3456_v59  ;;  %3620 = vmatpush.msrb.mxu1 %v3473_v47 }
 0x5fa   :  { %3642 = vmatpush.msrb.mxu2 %v3487_v40  ;;  %3661 = vmatpush.msrb.mxu3 %v3504_v60 }
 0x5fb   :  { %3602 = vmatpush.msrb.mxu0 %v3455_v12  ;;  %3621 = vmatpush.msrb.mxu1 %v3472_v38 }
 0x5fc   :  { %3643 = vmatpush.msrb.mxu2 %v3486_v56  ;;  %3662 = vmatpush.msrb.mxu3 %v3503_v39 }
 0x5fd   :  { %3603 = vmatpush.msrb.mxu0 %v3454_v19  ;;  %3622 = vmatpush.msrb.mxu1 %v3471_v57 }
 0x5fe   :  { %3644 = vmatpush.msrb.mxu2 %v3485_v0  ;;  %3663 = vmatpush.msrb.mxu3 %v3502_v22 }
 0x5ff   :  { %3604 = vmatpush.msrb.mxu0 %v3453_v4  ;;  %3623 = vmatpush.msrb.mxu1 %v3470_v62 }
 0x600   :  { %3645 = vmatpush.msrb.mxu2 %v3484_v10  ;;  %3664 = vmatpush.msrb.mxu3 %v3501_v28 }
 0x601   :  { %3605 = vmatpush.msrb.mxu0 %v3452_v31  ;;  %3624 = vmatpush.msrb.mxu1 %v3469_v13 }
 0x602   :  { %3646 = vmatpush.msrb.mxu2 %v3483_v61  ;;  %3665 = vmatpush.msrb.mxu3 %v3500_v24 }
 0x603   :  { %3571 = vmatmul.f32.vlgmr.msra.gmra.mxu2 %v3374_v27  ;;  %3606 = vmatpush.msrb.mxu0 %v3451_v32  ;;  %v3497_v27 = vld [vmem:[#allocation3 + $0x390] sm:$0xff] }
 0x604   :  { %3625 = vmatpush.msrb.mxu1 %v3468_v44  ;;  %3647 = vmatpush.msrb.mxu2 %v3482_v16 }
 0x605   :  { %3666 = vmatpush.msrb.mxu3 %v3499_v29  ;;  %3531 = vmatmul.f32.vlgmr.msra.gmra.mxu0 %v3372_v15  ;;  %v3496_v15 = vld [vmem:[#allocation3 + $0x388] sm:$0xff] }
 0x606   :  { %3591 = vmatmul.f32.vlgmr.msra.gmra.mxu3 %v3375_v54  ;;  %3607 = vmatpush.msrb.mxu0 %v3450_v51  ;;  %v3464_v54 = vld [vmem:[#allocation3 + $0x288] sm:$0xff] }
 0x607   :  { %3626 = vmatpush.msrb.mxu1 %v3467_v9  ;;  %3648 = vmatpush.msrb.mxu2 %v3481_v7 }
 0x608   :  { %3667 = vmatpush.msrb.mxu3 %v3498_v55  ;;  %3551 = vmatmul.f32.vlgmr.msra.gmra.mxu1 %v3373_v33  ;;  %v3787_v33 = vld [vmem:[#allocation13] ss:$0 sm:$0xff] }
 0x609   :  { %3608 = vmatpush.msrb.mxu0 %v3449_v34  ;;  %3627 = vmatpush.msrb.mxu1 %v3466_v41 }
 0x60a   :  { %3649 = vmatpush.msrb.mxu2 %v3480_v48  ;;  %3668 = vmatpush.msrb.mxu3 %v3497_v27 }
 0x60b   :  { %3609 = vmatpush.msrb.mxu0 %v3448_v50  ;;  %3628 = vmatpush.msrb.mxu1 %v3465_v17 }
 0x60c   :  { %3650 = vmatpush.msrb.mxu2 %v3479_v63  ;;  %3669 = vmatpush.msrb.mxu3 %v3496_v15 }
 0x60d   :  { %3651 = vmatmul.f32.vlgmr.msrb.gmra.mxu2 %v3378_v45  ;;  %3610 = vmatpush.msrb.mxu0 %v3447_v46 }
 0x60e   :  { %3629 = vmatpush.msrb.mxu1 %v3464_v54  ;;  %3670 = vmatpush.msrb.mxu3 %v3495_v36 }
 0x60f   :  { %3611 = vmatmul.f32.vlgmr.msrb.gmra.mxu0 %v3376_v30  ;;  %3671 = vmatmul.f32.vlgmr.msrb.gmra.mxu3 %v3379_v58 }
 0x610   :  { %3630 = vmatpush.msrb.mxu1 %v3463_v2 }
 0x611   :  { %3631 = vmatmul.f32.vlgmr.msrb.gmra.mxu1 %v3377_v11 }
 0x682   :  { %v3532_v6 = vpop.f32.mrf.mxu0 }
 0x683   :  { %v3533_v37 = vadd.f32 %v3787_v33, %v3532_v6 }
 0x685   :  { %v3552_v21 = vpop.f32.mrf.mxu1 }
 0x686   :  { %v3553_v5 = vadd.f32 %v3552_v21, %v3533_v37  ;;  %v3572_v45 = vpop.f32.mrf.mxu2 }
 0x688   :  { %v3573_v20 = vadd.f32 %v3572_v45, %v3553_v5 }
 0x689   :  { %v3592_v18 = vpop.f32.mrf.mxu3 }
 0x68a   :  { %v3593_v14 = vadd.f32 %v3592_v18, %v3573_v20 }
 0x68c   :  { %v3612_v49 = vpop.f32.mrf.mxu0 }
 0x68d   :  { %v3613_v26 = vadd.f32 %v3612_v49, %v3593_v14 }
 0x68e   :  { %v3632_v43 = vpop.f32.mrf.mxu1 }
 0x68f   :  { %v3633_v30 = vadd.f32 %v3632_v43, %v3613_v26 }
 0x690   :  { %v3652_v3 = vpop.f32.mrf.mxu2 }
 0x691   :  { %v3653_v1 = vadd.f32 %v3652_v3, %v3633_v30 }
 0x692   :  { %v3672_v53 = vpop.f32.mrf.mxu3 }
 0x693   :  { %v3673_v11 = vadd.f32 %v3672_v53, %v3653_v1 }
 0x695   :  { %3675 = vst [vmem:[#allocation14] sm:$0xff] %v3673_v11 }
 0x696   :  { %3686 = dma.vmem_to_hbm [thread:$0]  %s3682_s6, 128, %s3684_s25, [#allocation7]  }
 0x697   :  { %4068 = dma.done.wait [#allocation7], 128  }
 0x698   :  { %4069 = vsyncadd [#allocation7], 4294967168 }
 0x699   :  { %3691 = vsyncpa [#allocation6], 1 }
 0x69a   :  { %3692 = vsyncpa [#allocation9], 1 }
 0x69b   :  { %3693 = vsyncpa [#allocation12], 1 }
 0x69c   :  { %3694 = vsyncpa [#allocation7], 1 }
 0x69d   :  { %3695 = vsyncmov [#allocation4] }
 0x6a0   :  { %s3696_s26 = vpop.sfrf %3695 }
 0x6a1   :  { %p3737_p0 = scmp.ne.s32.totalorder %s3696_s26, 0 }
 0x6a3   :  { %3700 = shalt.err (%p3737_p0)  }
 0x6a4   :  { %3702 = vsyncmov [#allocation4 + $0x1] }
 0x6a7   :  { %s3703_s27 = vpop.sfrf %3702 }
 0x6a8   :  { %p3738_p1 = scmp.ne.s32.totalorder %s3703_s27, 0 }
 0x6aa   :  { %3707 = shalt.err (%p3738_p1)  }
 0x6ab   :  { %3709 = vsyncmov [#allocation4 + $0x2] }
 0x6ae   :  { %s3710_s7 = vpop.sfrf %3709 }
 0x6af   :  { %p3739_p2 = scmp.ne.s32.totalorder %s3710_s7, 0 }
 0x6b1   :  { %3714 = shalt.err (%p3739_p2)  }
 0x6b2   :  { %3716 = vsyncmov [#allocation4 + $0x3] }
 0x6b5   :  { %s3717_s28 = vpop.sfrf %3716 }
 0x6b6   :  { %p3740_p3 = scmp.ne.s32.totalorder %s3717_s28, 0 }
 0x6b8   :  { %3721 = shalt.err (%p3740_p3)  }
 0x6b9   :  { %3723 = vsyncmov [#allocation4 + $0x4] }
 0x6bc   :  { %s3724_s29 = vpop.sfrf %3723 }
 0x6bd   :  { %p3741_p4 = scmp.ne.s32.totalorder %s3724_s29, 0 }
 0x6bf   :  { %3728 = shalt.err (%p3741_p4)  }

</bundles_post_ra>
